<compile_context>
chip_gen: v5e
topology: v5e:2x2
jax: 0.10.0
libtpu: 0.0.40
codegen_flags: <defaults>
</compile_context>

<pallas_src>
import functools

import jax
import jax.numpy as jnp
from jax.experimental import pallas as pl
from jax.experimental.pallas import tpu as pltpu


_LAYER_ORDER = ("conv1", "relu1", "pool1", "conv2", "relu2", "pool2", "fc1")


# ------------------------------ fused kernel -----------------------------------
def _fused_features_kernel(x_ref, w1_ref, b1_ref, w2_ref, b2_ref, wf_ref, bf_ref,
                           *out_refs, emit, H, W, C0, C1, C2, OUT):
    """Per-image (grid over batch) conv1->relu1->pool1->conv2->relu2->pool2->fc1.

    Only layers listed in `emit` are written to HBM outputs; everything else
    lives purely in VMEM / vregs.  All reshapes keep the minor (lane) dim, all
    lane-dim changes are done with concatenation, which Mosaic lowers natively.
    """
    H2, W2, H4, W4 = H // 2, W // 2, H // 4, W // 4
    f32 = jnp.float32

    def pad_hw(v):  # (h, w, c) -> (h+2, w+2, c) with a zero halo, built in VMEM
        h, w, c = v.shape
        zc = jnp.zeros((h, 1, c), f32)
        v = jnp.concatenate([zc, v, zc], axis=1)
        zr = jnp.zeros((1, w + 2, c), f32)
        return jnp.concatenate([zr, v, zr], axis=0)

    def conv3x3(v, w_ref_, b_ref_, h, w, cin):
        # im2col slab built once in VMEM -> one MXU matmul (K = 9*cin).
        vp = pad_hw(v)
        cols = [vp[kh:kh + h, kw:kw + w, :].reshape(h * w, cin)
                for kh in range(3) for kw in range(3)]
        patches = jnp.concatenate(cols, axis=-1)                  # (h*w, 9*cin)
        return jnp.dot(patches, w_ref_[...],
                       preferred_element_type=f32) + b_ref_[...]  # (h*w, cout)

    def pool2x2(v_flat, h, w, c):
        # v_flat: (h*w, c) in (h, w) row order -> (h//2, w//2, c); leading-dim
        # reshapes only, reductions are pairwise maxima.
        t = v_flat.reshape(h * (w // 2), 2, c)
        t = jnp.maximum(t[:, 0, :], t[:, 1, :])                   # pool over w
        t = t.reshape(h // 2, 2, w // 2, c)
        return jnp.maximum(t[:, 0, :, :], t[:, 1, :, :])          # pool over h

    def merge_minor2(v):  # (a, b, c) -> (a, b*c) lane-dense, via lane concat
        return jnp.concatenate([v[:, i, :] for i in range(v.shape[1])], axis=-1)

    x = x_ref[0]                                                  # (H, W, C0)

    conv1 = conv3x3(x, w1_ref, b1_ref, H, W, C0)                  # (H*W, C1)
    relu1 = jnp.maximum(conv1, 0.0)
    pool1 = pool2x2(relu1, H, W, C1)                              # (H2, W2, C1)

    conv2 = conv3x3(pool1, w2_ref, b2_ref, H2, W2, C1)            # (H2*W2, C2)
    relu2 = jnp.maximum(conv2, 0.0)
    pool2 = pool2x2(relu2, H2, W2, C2)                            # (H4, W4, C2)

    # fc1: flatten in NHWC order (the fc weight was pre-permuted in the wrapper
    # so this matches torch's x.view(N, -1) on an NCHW tensor).
    pool2_m = merge_minor2(pool2)                                 # (H4, W4*C2)
    flat = jnp.concatenate([pool2_m[r:r + 1, :] for r in range(H4)], axis=-1)  # (1, F)
    fc1 = jnp.dot(flat, wf_ref[...], preferred_element_type=f32) + bf_ref[...]  # (1, OUT)

    outs = {}
    if "conv1" in emit:
        outs["conv1"] = merge_minor2(conv1.reshape(H, W, C1))     # (H, W*C1)
    if "relu1" in emit:
        outs["relu1"] = merge_minor2(relu1.reshape(H, W, C1))
    if "pool1" in emit:
        outs["pool1"] = merge_minor2(pool1)                       # (H2, W2*C1)
    if "conv2" in emit:
        outs["conv2"] = merge_minor2(conv2.reshape(H2, W2, C2))
    if "relu2" in emit:
        outs["relu2"] = merge_minor2(relu2.reshape(H2, W2, C2))
    if "pool2" in emit:
        outs["pool2"] = pool2_m                                   # (H4, W4*C2)
    if "fc1" in emit:
        outs["fc1"] = fc1                                         # (1, OUT)

    for name, ref in zip(emit, out_refs):
        ref[0] = outs[name]


# -------------------------------- wrapper --------------------------------------
@functools.partial(jax.jit, static_argnames=("emit",))
def _forward_impl(x_nchw, params, emit):
    N, C0, H, W = x_nchw.shape
    C1 = params["conv1_b"].shape[0]
    C2 = params["conv2_b"].shape[0]
    OUT = params["fc1_b"].shape[0]
    H2, W2, H4, W4 = H // 2, W // 2, H // 4, W // 4

    x_nhwc = jnp.transpose(x_nchw, (0, 2, 3, 1)).astype(jnp.float32)

    # im2col weight matrices, rows in (kh, kw, ci) order (matches kernel concat order)
    w1 = params["conv1_w"].reshape(9 * C0, C1)
    w2 = params["conv2_w"].reshape(9 * C1, C2)
    b1 = params["conv1_b"].reshape(1, C1)
    b2 = params["conv2_b"].reshape(1, C2)
    # torch fc weight is (OUT, C*H*W) over NCHW flatten; permute to NHWC-flat x OUT
    wf = (params["fc1_w"].reshape(OUT, C2, H4, W4)
          .transpose(2, 3, 1, 0).reshape(H4 * W4 * C2, OUT))
    bf = params["fc1_b"].reshape(1, OUT)

    feat_shapes = {
        "conv1": (H, W, C1), "relu1": (H, W, C1), "pool1": (H2, W2, C1),
        "conv2": (H2, W2, C2), "relu2": (H2, W2, C2), "pool2": (H4, W4, C2),
    }

    out_shape, out_specs = [], []
    for name in emit:
        if name == "fc1":
            shp = (N, 1, OUT)
        else:
            h_l, w_l, c_l = feat_shapes[name]
            shp = (N, h_l, w_l * c_l)                     # lane-dense layout
        out_shape.append(jax.ShapeDtypeStruct(shp, jnp.float32))
        out_specs.append(pl.BlockSpec((1,) + shp[1:], lambda n: (n, 0, 0)))

    kernel = functools.partial(_fused_features_kernel, emit=emit,
                               H=H, W=W, C0=C0, C1=C1, C2=C2, OUT=OUT)

    results = pl.pallas_call(
        kernel,
        grid=(N,),
        in_specs=[
            pl.BlockSpec((1, H, W, C0), lambda n: (n, 0, 0, 0)),
            pl.BlockSpec((9 * C0, C1), lambda n: (0, 0)),
            pl.BlockSpec((1, C1), lambda n: (0, 0)),
            pl.BlockSpec((9 * C1, C2), lambda n: (0, 0)),
            pl.BlockSpec((1, C2), lambda n: (0, 0)),
            pl.BlockSpec((H4 * W4 * C2, OUT), lambda n: (0, 0)),
            pl.BlockSpec((1, OUT), lambda n: (0, 0)),
        ],
        out_specs=out_specs,
        out_shape=out_shape,
        compiler_params=pltpu.CompilerParams(dimension_semantics=("parallel",)),
    )(x_nhwc, w1, b1, w2, b2, wf, bf)

    outputs = {}
    for name, arr in zip(emit, results):
        if name == "fc1":
            outputs[name] = arr.reshape(N, OUT)
        else:
            h_l, w_l, c_l = feat_shapes[name]
            outputs[name] = jnp.transpose(arr.reshape(N, h_l, w_l, c_l), (0, 3, 1, 2))
    return outputs


def feature_extractor_forward(x_nchw, params, extracted_layers):
    """Mirrors FeatureExtractor.forward over the synthetic features1 sequence."""
    emit = tuple(
        name for name in _LAYER_ORDER
        if extracted_layers is None or (name in extracted_layers and "fc" not in name)
    )
    if not emit:
        return {}
    return dict(_forward_impl(x_nchw, params, emit=emit))


# ------------------------ synthetic features1 parameters -----------------------
def init_params(key):
    k = jax.random.split(key, 6)
    s = 0.1
    return {
        # Conv2d weights stored HWIO (KH, KW, Cin, Cout); torch OIHW is a permute.
        "conv1_w": s * jax.random.normal(k[0], (3, 3, 4, 8), jnp.float32),
        "conv1_b": s * jax.random.normal(k[1], (8,), jnp.float32),
        "conv2_w": s * jax.random.normal(k[2], (3, 3, 8, 16), jnp.float32),
        "conv2_b": s * jax.random.normal(k[3], (16,), jnp.float32),
        # Linear weight in torch layout (out_features, in_features=C*H*W over NCHW).
        "fc1_w": s * jax.random.normal(k[4], (32, 16 * 4 * 4), jnp.float32),
        "fc1_b": s * jax.random.normal(k[5], (32,), jnp.float32),
    }


# ------------------------------ pure-XLA reference -----------------------------
def _reference_forward(x_nchw, params, extracted_layers):
    feats = {}
    v = jnp.transpose(x_nchw, (0, 2, 3, 1)).astype(jnp.float32)  # NHWC

    def conv(v, w_hwio, b):
        n, h, w, _ = v.shape
        vp = jnp.pad(v, ((0, 0), (1, 1), (1, 1), (0, 0)))
        acc = jnp.zeros((n, h, w, w_hwio.shape[-1]), jnp.float32)
        for kh in range(3):
            for kw in range(3):
                acc = acc + jnp.einsum("nhwc,co->nhwo",
                                       vp[:, kh:kh + h, kw:kw + w, :], w_hwio[kh, kw])
        return acc + b

    def pool(v):
        n, h, w, c = v.shape
        return v.reshape(n, h // 2, 2, w // 2, 2, c).max(axis=(2, 4))

    v = conv(v, params["conv1_w"], params["conv1_b"]); feats["conv1"] = v
    v = jnp.maximum(v, 0.0);                           feats["relu1"] = v
    v = pool(v);                                       feats["pool1"] = v
    v = conv(v, params["conv2_w"], params["conv2_b"]); feats["conv2"] = v
    v = jnp.maximum(v, 0.0);                           feats["relu2"] = v
    v = pool(v);                                       feats["pool2"] = v
    flat = jnp.transpose(v, (0, 3, 1, 2)).reshape(v.shape[0], -1)  # torch x.view(N, -1)
    feats["fc1"] = flat @ params["fc1_w"].T + params["fc1_b"]

    outputs = {}
    for name in _LAYER_ORDER:
        if extracted_layers is None or (name in extracted_layers and "fc" not in name):
            val = feats[name]
            outputs[name] = jnp.transpose(val, (0, 3, 1, 2)) if val.ndim == 4 else val
    return outputs


# ----------------------------------- main ---------------------------------------
if __name__ == "__main__":
    key = jax.random.PRNGKey(0)
    pkey, xkey = jax.random.split(key)
    params = init_params(pkey)

    # small NCHW input consistent with the synthetic features1
    x = jax.random.normal(xkey, (2, 4, 16, 16), jnp.float32)

    # explicit extraction list: fc layers are never collected in this mode
    extracted_layers = ["relu1", "pool2", "fc1"]
    outs = feature_extractor_forward(x, params, extracted_layers)
    jax.block_until_ready(outs)

    assert set(outs.keys()) == {"relu1", "pool2"}
    assert outs["relu1"].shape == (2, 8, 16, 16)
    assert outs["pool2"].shape == (2, 16, 4, 4)

    ref = _reference_forward(x, params, extracted_layers)
    for name in outs:
        assert jnp.allclose(outs[name], ref[name], rtol=1e-4, atol=1e-4), name

    # extracted_layers=None collects every layer, including fc1 (torch semantics)
    outs_all = feature_extractor_forward(x, params, None)
    jax.block_until_ready(outs_all)
    assert set(outs_all.keys()) == set(_LAYER_ORDER)
    assert outs_all["fc1"].shape == (2, 32)
    ref_all = _reference_forward(x, params, None)
    for name in outs_all:
        assert jnp.allclose(outs_all[name], ref_all[name], rtol=1e-4, atol=1e-4), name

    print("KERNEL_OK")
</pallas_src>

<mosaic_0001>
module attributes {stable_mosaic.version = 11 : i64} {
  func.func @_fused_features_kernel(%arg0: i32, %arg1: memref<1x16x16x4xf32, #tpu.memory_space<vmem>>, %arg2: memref<36x8xf32, #tpu.memory_space<vmem>>, %arg3: memref<1x8xf32, #tpu.memory_space<vmem>>, %arg4: memref<72x16xf32, #tpu.memory_space<vmem>>, %arg5: memref<1x16xf32, #tpu.memory_space<vmem>>, %arg6: memref<256x32xf32, #tpu.memory_space<vmem>>, %arg7: memref<1x32xf32, #tpu.memory_space<vmem>>, %arg8: memref<1x16x128xf32, #tpu.memory_space<vmem>>, %arg9: memref<1x4x64xf32, #tpu.memory_space<vmem>>) attributes {dimension_semantics = [#tpu.dimension_semantics<parallel>], iteration_bounds = array<i64: 2>, scalar_prefetch = 0 : i64, scratch_operands = 0 : i64, tpu.core_type = #tpu.core_type<tc>, window_params = [{transform_indices = @transform_0, window_bounds = array<i64: 1, 16, 16, 4>}, {pipeline_mode = #tpu.pipeline_mode<synchronous>, transform_indices = @transform_1, window_bounds = array<i64: 36, 8>}, {pipeline_mode = #tpu.pipeline_mode<synchronous>, transform_indices = @transform_2, window_bounds = array<i64: 1, 8>}, {pipeline_mode = #tpu.pipeline_mode<synchronous>, transform_indices = @transform_3, window_bounds = array<i64: 72, 16>}, {pipeline_mode = #tpu.pipeline_mode<synchronous>, transform_indices = @transform_4, window_bounds = array<i64: 1, 16>}, {pipeline_mode = #tpu.pipeline_mode<synchronous>, transform_indices = @transform_5, window_bounds = array<i64: 256, 32>}, {pipeline_mode = #tpu.pipeline_mode<synchronous>, transform_indices = @transform_6, window_bounds = array<i64: 1, 32>}, {transform_indices = @transform_7, window_bounds = array<i64: 1, 16, 128>}, {transform_indices = @transform_8, window_bounds = array<i64: 1, 4, 64>}]} {
    %c0 = arith.constant 0 : index
    %c0_0 = arith.constant 0 : index
    %c0_1 = arith.constant 0 : index
    %c0_2 = arith.constant 0 : index
    %0 = vector.load %arg1[%c0, %c0_0, %c0_1, %c0_2] : memref<1x16x16x4xf32, #tpu.memory_space<vmem>>, vector<1x16x16x4xf32>
    %1 = vector.shape_cast %0 : vector<1x16x16x4xf32> to vector<16x16x4xf32>
    %cst = arith.constant 0.000000e+00 : f32
    %2 = vector.broadcast %cst : f32 to vector<16x1x4xf32>
    %3 = tpu.concatenate %2, %1, %2 in 1 : vector<16x1x4xf32>, vector<16x16x4xf32>, vector<16x1x4xf32> -> vector<16x18x4xf32>
    %cst_3 = arith.constant 0.000000e+00 : f32
    %4 = vector.broadcast %cst_3 : f32 to vector<1x18x4xf32>
    %5 = tpu.concatenate %4, %3, %4 in 0 : vector<1x18x4xf32>, vector<16x18x4xf32>, vector<1x18x4xf32> -> vector<18x18x4xf32>
    %6 = vector.extract_strided_slice %5 {offsets = [0, 0, 0], sizes = [16, 16, 4], strides = [1, 1, 1]} : vector<18x18x4xf32> to vector<16x16x4xf32>
    %7 = vector.shape_cast %6 : vector<16x16x4xf32> to vector<256x4xf32>
    %8 = vector.extract_strided_slice %5 {offsets = [0, 1, 0], sizes = [16, 16, 4], strides = [1, 1, 1]} : vector<18x18x4xf32> to vector<16x16x4xf32>
    %9 = vector.shape_cast %8 : vector<16x16x4xf32> to vector<256x4xf32>
    %10 = vector.extract_strided_slice %5 {offsets = [0, 2, 0], sizes = [16, 16, 4], strides = [1, 1, 1]} : vector<18x18x4xf32> to vector<16x16x4xf32>
    %11 = vector.shape_cast %10 : vector<16x16x4xf32> to vector<256x4xf32>
    %12 = vector.extract_strided_slice %5 {offsets = [1, 0, 0], sizes = [16, 16, 4], strides = [1, 1, 1]} : vector<18x18x4xf32> to vector<16x16x4xf32>
    %13 = vector.shape_cast %12 : vector<16x16x4xf32> to vector<256x4xf32>
    %14 = vector.extract_strided_slice %5 {offsets = [1, 1, 0], sizes = [16, 16, 4], strides = [1, 1, 1]} : vector<18x18x4xf32> to vector<16x16x4xf32>
    %15 = vector.shape_cast %14 : vector<16x16x4xf32> to vector<256x4xf32>
    %16 = vector.extract_strided_slice %5 {offsets = [1, 2, 0], sizes = [16, 16, 4], strides = [1, 1, 1]} : vector<18x18x4xf32> to vector<16x16x4xf32>
    %17 = vector.shape_cast %16 : vector<16x16x4xf32> to vector<256x4xf32>
    %18 = vector.extract_strided_slice %5 {offsets = [2, 0, 0], sizes = [16, 16, 4], strides = [1, 1, 1]} : vector<18x18x4xf32> to vector<16x16x4xf32>
    %19 = vector.shape_cast %18 : vector<16x16x4xf32> to vector<256x4xf32>
    %20 = vector.extract_strided_slice %5 {offsets = [2, 1, 0], sizes = [16, 16, 4], strides = [1, 1, 1]} : vector<18x18x4xf32> to vector<16x16x4xf32>
    %21 = vector.shape_cast %20 : vector<16x16x4xf32> to vector<256x4xf32>
    %22 = vector.extract_strided_slice %5 {offsets = [2, 2, 0], sizes = [16, 16, 4], strides = [1, 1, 1]} : vector<18x18x4xf32> to vector<16x16x4xf32>
    %23 = vector.shape_cast %22 : vector<16x16x4xf32> to vector<256x4xf32>
    %24 = tpu.concatenate %7, %9, %11, %13, %15, %17, %19, %21, %23 in 1 : vector<256x4xf32>, vector<256x4xf32>, vector<256x4xf32>, vector<256x4xf32>, vector<256x4xf32>, vector<256x4xf32>, vector<256x4xf32>, vector<256x4xf32>, vector<256x4xf32> -> vector<256x36xf32>
    %c0_4 = arith.constant 0 : index
    %c0_5 = arith.constant 0 : index
    %25 = vector.load %arg2[%c0_4, %c0_5] : memref<36x8xf32, #tpu.memory_space<vmem>>, vector<36x8xf32>
    %cst_6 = arith.constant dense<0.000000e+00> : vector<256x8xf32>
    %26 = tpu.matmul %24, %25, %cst_6 {dimension_numbers = #tpu.dot_dimension_numbers<[1], [0], [0], [1], [0, 0, 1, 1], [], []>} : vector<256x36xf32>, vector<36x8xf32>, vector<256x8xf32> -> vector<256x8xf32>
    %c0_7 = arith.constant 0 : index
    %c0_8 = arith.constant 0 : index
    %27 = vector.load %arg3[%c0_7, %c0_8] : memref<1x8xf32, #tpu.memory_space<vmem>>, vector<1x8xf32>
    %28 = vector.broadcast %27 : vector<1x8xf32> to vector<256x8xf32>
    %29 = arith.addf %26, %28 : vector<256x8xf32>
    %cst_9 = arith.constant 0.000000e+00 : f32
    %30 = vector.broadcast %cst_9 : f32 to vector<256x8xf32>
    %31 = arith.maximumf %29, %30 : vector<256x8xf32>
    %32 = vector.shape_cast %31 : vector<256x8xf32> to vector<128x2x8xf32>
    %33 = vector.extract_strided_slice %32 {offsets = [0, 0, 0], sizes = [128, 1, 8], strides = [1, 1, 1]} : vector<128x2x8xf32> to vector<128x1x8xf32>
    %34 = vector.shape_cast %33 : vector<128x1x8xf32> to vector<128x8xf32>
    %35 = vector.extract_strided_slice %32 {offsets = [0, 1, 0], sizes = [128, 1, 8], strides = [1, 1, 1]} : vector<128x2x8xf32> to vector<128x1x8xf32>
    %36 = vector.shape_cast %35 : vector<128x1x8xf32> to vector<128x8xf32>
    %37 = arith.maximumf %34, %36 : vector<128x8xf32>
    %38 = vector.shape_cast %37 : vector<128x8xf32> to vector<8x2x8x8xf32>
    %39 = vector.extract_strided_slice %38 {offsets = [0, 0, 0, 0], sizes = [8, 1, 8, 8], strides = [1, 1, 1, 1]} : vector<8x2x8x8xf32> to vector<8x1x8x8xf32>
    %40 = vector.shape_cast %39 : vector<8x1x8x8xf32> to vector<8x8x8xf32>
    %41 = vector.extract_strided_slice %38 {offsets = [0, 1, 0, 0], sizes = [8, 1, 8, 8], strides = [1, 1, 1, 1]} : vector<8x2x8x8xf32> to vector<8x1x8x8xf32>
    %42 = vector.shape_cast %41 : vector<8x1x8x8xf32> to vector<8x8x8xf32>
    %43 = arith.maximumf %40, %42 : vector<8x8x8xf32>
    %cst_10 = arith.constant 0.000000e+00 : f32
    %44 = vector.broadcast %cst_10 : f32 to vector<8x1x8xf32>
    %45 = tpu.concatenate %44, %43, %44 in 1 : vector<8x1x8xf32>, vector<8x8x8xf32>, vector<8x1x8xf32> -> vector<8x10x8xf32>
    %cst_11 = arith.constant 0.000000e+00 : f32
    %46 = vector.broadcast %cst_11 : f32 to vector<1x10x8xf32>
    %47 = tpu.concatenate %46, %45, %46 in 0 : vector<1x10x8xf32>, vector<8x10x8xf32>, vector<1x10x8xf32> -> vector<10x10x8xf32>
    %48 = vector.extract_strided_slice %47 {offsets = [0, 0, 0], sizes = [8, 8, 8], strides = [1, 1, 1]} : vector<10x10x8xf32> to vector<8x8x8xf32>
    %49 = vector.shape_cast %48 : vector<8x8x8xf32> to vector<64x8xf32>
    %50 = vector.extract_strided_slice %47 {offsets = [0, 1, 0], sizes = [8, 8, 8], strides = [1, 1, 1]} : vector<10x10x8xf32> to vector<8x8x8xf32>
    %51 = vector.shape_cast %50 : vector<8x8x8xf32> to vector<64x8xf32>
    %52 = vector.extract_strided_slice %47 {offsets = [0, 2, 0], sizes = [8, 8, 8], strides = [1, 1, 1]} : vector<10x10x8xf32> to vector<8x8x8xf32>
    %53 = vector.shape_cast %52 : vector<8x8x8xf32> to vector<64x8xf32>
    %54 = vector.extract_strided_slice %47 {offsets = [1, 0, 0], sizes = [8, 8, 8], strides = [1, 1, 1]} : vector<10x10x8xf32> to vector<8x8x8xf32>
    %55 = vector.shape_cast %54 : vector<8x8x8xf32> to vector<64x8xf32>
    %56 = vector.extract_strided_slice %47 {offsets = [1, 1, 0], sizes = [8, 8, 8], strides = [1, 1, 1]} : vector<10x10x8xf32> to vector<8x8x8xf32>
    %57 = vector.shape_cast %56 : vector<8x8x8xf32> to vector<64x8xf32>
    %58 = vector.extract_strided_slice %47 {offsets = [1, 2, 0], sizes = [8, 8, 8], strides = [1, 1, 1]} : vector<10x10x8xf32> to vector<8x8x8xf32>
    %59 = vector.shape_cast %58 : vector<8x8x8xf32> to vector<64x8xf32>
    %60 = vector.extract_strided_slice %47 {offsets = [2, 0, 0], sizes = [8, 8, 8], strides = [1, 1, 1]} : vector<10x10x8xf32> to vector<8x8x8xf32>
    %61 = vector.shape_cast %60 : vector<8x8x8xf32> to vector<64x8xf32>
    %62 = vector.extract_strided_slice %47 {offsets = [2, 1, 0], sizes = [8, 8, 8], strides = [1, 1, 1]} : vector<10x10x8xf32> to vector<8x8x8xf32>
    %63 = vector.shape_cast %62 : vector<8x8x8xf32> to vector<64x8xf32>
    %64 = vector.extract_strided_slice %47 {offsets = [2, 2, 0], sizes = [8, 8, 8], strides = [1, 1, 1]} : vector<10x10x8xf32> to vector<8x8x8xf32>
    %65 = vector.shape_cast %64 : vector<8x8x8xf32> to vector<64x8xf32>
    %66 = tpu.concatenate %49, %51, %53, %55, %57, %59, %61, %63, %65 in 1 : vector<64x8xf32>, vector<64x8xf32>, vector<64x8xf32>, vector<64x8xf32>, vector<64x8xf32>, vector<64x8xf32>, vector<64x8xf32>, vector<64x8xf32>, vector<64x8xf32> -> vector<64x72xf32>
    %c0_12 = arith.constant 0 : index
    %c0_13 = arith.constant 0 : index
    %67 = vector.load %arg4[%c0_12, %c0_13] : memref<72x16xf32, #tpu.memory_space<vmem>>, vector<72x16xf32>
    %cst_14 = arith.constant dense<0.000000e+00> : vector<64x16xf32>
    %68 = tpu.matmul %66, %67, %cst_14 {dimension_numbers = #tpu.dot_dimension_numbers<[1], [0], [0], [1], [0, 0, 1, 1], [], []>} : vector<64x72xf32>, vector<72x16xf32>, vector<64x16xf32> -> vector<64x16xf32>
    %c0_15 = arith.constant 0 : index
    %c0_16 = arith.constant 0 : index
    %69 = vector.load %arg5[%c0_15, %c0_16] : memref<1x16xf32, #tpu.memory_space<vmem>>, vector<1x16xf32>
    %70 = vector.broadcast %69 : vector<1x16xf32> to vector<64x16xf32>
    %71 = arith.addf %68, %70 : vector<64x16xf32>
    %cst_17 = arith.constant 0.000000e+00 : f32
    %72 = vector.broadcast %cst_17 : f32 to vector<64x16xf32>
    %73 = arith.maximumf %71, %72 : vector<64x16xf32>
    %74 = vector.shape_cast %73 : vector<64x16xf32> to vector<32x2x16xf32>
    %75 = vector.extract_strided_slice %74 {offsets = [0, 0, 0], sizes = [32, 1, 16], strides = [1, 1, 1]} : vector<32x2x16xf32> to vector<32x1x16xf32>
    %76 = vector.shape_cast %75 : vector<32x1x16xf32> to vector<32x16xf32>
    %77 = vector.extract_strided_slice %74 {offsets = [0, 1, 0], sizes = [32, 1, 16], strides = [1, 1, 1]} : vector<32x2x16xf32> to vector<32x1x16xf32>
    %78 = vector.shape_cast %77 : vector<32x1x16xf32> to vector<32x16xf32>
    %79 = arith.maximumf %76, %78 : vector<32x16xf32>
    %80 = vector.shape_cast %79 : vector<32x16xf32> to vector<4x2x4x16xf32>
    %81 = vector.extract_strided_slice %80 {offsets = [0, 0, 0, 0], sizes = [4, 1, 4, 16], strides = [1, 1, 1, 1]} : vector<4x2x4x16xf32> to vector<4x1x4x16xf32>
    %82 = vector.shape_cast %81 : vector<4x1x4x16xf32> to vector<4x4x16xf32>
    %83 = vector.extract_strided_slice %80 {offsets = [0, 1, 0, 0], sizes = [4, 1, 4, 16], strides = [1, 1, 1, 1]} : vector<4x2x4x16xf32> to vector<4x1x4x16xf32>
    %84 = vector.shape_cast %83 : vector<4x1x4x16xf32> to vector<4x4x16xf32>
    %85 = arith.maximumf %82, %84 : vector<4x4x16xf32>
    %86 = vector.extract_strided_slice %85 {offsets = [0, 0, 0], sizes = [4, 1, 16], strides = [1, 1, 1]} : vector<4x4x16xf32> to vector<4x1x16xf32>
    %87 = vector.shape_cast %86 : vector<4x1x16xf32> to vector<4x16xf32>
    %88 = vector.extract_strided_slice %85 {offsets = [0, 1, 0], sizes = [4, 1, 16], strides = [1, 1, 1]} : vector<4x4x16xf32> to vector<4x1x16xf32>
    %89 = vector.shape_cast %88 : vector<4x1x16xf32> to vector<4x16xf32>
    %90 = vector.extract_strided_slice %85 {offsets = [0, 2, 0], sizes = [4, 1, 16], strides = [1, 1, 1]} : vector<4x4x16xf32> to vector<4x1x16xf32>
    %91 = vector.shape_cast %90 : vector<4x1x16xf32> to vector<4x16xf32>
    %92 = vector.extract_strided_slice %85 {offsets = [0, 3, 0], sizes = [4, 1, 16], strides = [1, 1, 1]} : vector<4x4x16xf32> to vector<4x1x16xf32>
    %93 = vector.shape_cast %92 : vector<4x1x16xf32> to vector<4x16xf32>
    %94 = tpu.concatenate %87, %89, %91, %93 in 1 : vector<4x16xf32>, vector<4x16xf32>, vector<4x16xf32>, vector<4x16xf32> -> vector<4x64xf32>
    %95 = vector.shape_cast %31 : vector<256x8xf32> to vector<16x16x8xf32>
    %96 = vector.extract_strided_slice %95 {offsets = [0, 0, 0], sizes = [16, 1, 8], strides = [1, 1, 1]} : vector<16x16x8xf32> to vector<16x1x8xf32>
    %97 = vector.shape_cast %96 : vector<16x1x8xf32> to vector<16x8xf32>
    %98 = vector.extract_strided_slice %95 {offsets = [0, 1, 0], sizes = [16, 1, 8], strides = [1, 1, 1]} : vector<16x16x8xf32> to vector<16x1x8xf32>
    %99 = vector.shape_cast %98 : vector<16x1x8xf32> to vector<16x8xf32>
    %100 = vector.extract_strided_slice %95 {offsets = [0, 2, 0], sizes = [16, 1, 8], strides = [1, 1, 1]} : vector<16x16x8xf32> to vector<16x1x8xf32>
    %101 = vector.shape_cast %100 : vector<16x1x8xf32> to vector<16x8xf32>
    %102 = vector.extract_strided_slice %95 {offsets = [0, 3, 0], sizes = [16, 1, 8], strides = [1, 1, 1]} : vector<16x16x8xf32> to vector<16x1x8xf32>
    %103 = vector.shape_cast %102 : vector<16x1x8xf32> to vector<16x8xf32>
    %104 = vector.extract_strided_slice %95 {offsets = [0, 4, 0], sizes = [16, 1, 8], strides = [1, 1, 1]} : vector<16x16x8xf32> to vector<16x1x8xf32>
    %105 = vector.shape_cast %104 : vector<16x1x8xf32> to vector<16x8xf32>
    %106 = vector.extract_strided_slice %95 {offsets = [0, 5, 0], sizes = [16, 1, 8], strides = [1, 1, 1]} : vector<16x16x8xf32> to vector<16x1x8xf32>
    %107 = vector.shape_cast %106 : vector<16x1x8xf32> to vector<16x8xf32>
    %108 = vector.extract_strided_slice %95 {offsets = [0, 6, 0], sizes = [16, 1, 8], strides = [1, 1, 1]} : vector<16x16x8xf32> to vector<16x1x8xf32>
    %109 = vector.shape_cast %108 : vector<16x1x8xf32> to vector<16x8xf32>
    %110 = vector.extract_strided_slice %95 {offsets = [0, 7, 0], sizes = [16, 1, 8], strides = [1, 1, 1]} : vector<16x16x8xf32> to vector<16x1x8xf32>
    %111 = vector.shape_cast %110 : vector<16x1x8xf32> to vector<16x8xf32>
    %112 = vector.extract_strided_slice %95 {offsets = [0, 8, 0], sizes = [16, 1, 8], strides = [1, 1, 1]} : vector<16x16x8xf32> to vector<16x1x8xf32>
    %113 = vector.shape_cast %112 : vector<16x1x8xf32> to vector<16x8xf32>
    %114 = vector.extract_strided_slice %95 {offsets = [0, 9, 0], sizes = [16, 1, 8], strides = [1, 1, 1]} : vector<16x16x8xf32> to vector<16x1x8xf32>
    %115 = vector.shape_cast %114 : vector<16x1x8xf32> to vector<16x8xf32>
    %116 = vector.extract_strided_slice %95 {offsets = [0, 10, 0], sizes = [16, 1, 8], strides = [1, 1, 1]} : vector<16x16x8xf32> to vector<16x1x8xf32>
    %117 = vector.shape_cast %116 : vector<16x1x8xf32> to vector<16x8xf32>
    %118 = vector.extract_strided_slice %95 {offsets = [0, 11, 0], sizes = [16, 1, 8], strides = [1, 1, 1]} : vector<16x16x8xf32> to vector<16x1x8xf32>
    %119 = vector.shape_cast %118 : vector<16x1x8xf32> to vector<16x8xf32>
    %120 = vector.extract_strided_slice %95 {offsets = [0, 12, 0], sizes = [16, 1, 8], strides = [1, 1, 1]} : vector<16x16x8xf32> to vector<16x1x8xf32>
    %121 = vector.shape_cast %120 : vector<16x1x8xf32> to vector<16x8xf32>
    %122 = vector.extract_strided_slice %95 {offsets = [0, 13, 0], sizes = [16, 1, 8], strides = [1, 1, 1]} : vector<16x16x8xf32> to vector<16x1x8xf32>
    %123 = vector.shape_cast %122 : vector<16x1x8xf32> to vector<16x8xf32>
    %124 = vector.extract_strided_slice %95 {offsets = [0, 14, 0], sizes = [16, 1, 8], strides = [1, 1, 1]} : vector<16x16x8xf32> to vector<16x1x8xf32>
    %125 = vector.shape_cast %124 : vector<16x1x8xf32> to vector<16x8xf32>
    %126 = vector.extract_strided_slice %95 {offsets = [0, 15, 0], sizes = [16, 1, 8], strides = [1, 1, 1]} : vector<16x16x8xf32> to vector<16x1x8xf32>
    %127 = vector.shape_cast %126 : vector<16x1x8xf32> to vector<16x8xf32>
    %128 = tpu.concatenate %97, %99, %101, %103, %105, %107, %109, %111, %113, %115, %117, %119, %121, %123, %125, %127 in 1 : vector<16x8xf32>, vector<16x8xf32>, vector<16x8xf32>, vector<16x8xf32>, vector<16x8xf32>, vector<16x8xf32>, vector<16x8xf32>, vector<16x8xf32>, vector<16x8xf32>, vector<16x8xf32>, vector<16x8xf32>, vector<16x8xf32>, vector<16x8xf32>, vector<16x8xf32>, vector<16x8xf32>, vector<16x8xf32> -> vector<16x128xf32>
    %c0_18 = arith.constant 0 : index
    %c0_19 = arith.constant 0 : index
    %c0_20 = arith.constant 0 : index
    %129 = vector.load %arg8[%c0_18, %c0_19, %c0_20] : memref<1x16x128xf32, #tpu.memory_space<vmem>>, vector<1x16x128xf32>
    %130 = vector.shape_cast %129 : vector<1x16x128xf32> to vector<16x128xf32>
    %131 = vector.shape_cast %128 : vector<16x128xf32> to vector<1x16x128xf32>
    tpu.vector_store %arg8[%c0_18, %c0_19, %c0_20], %131 {strides = array<i32>} : memref<1x16x128xf32, #tpu.memory_space<vmem>>, vector<1x16x128xf32>,
    %c0_21 = arith.constant 0 : index
    %c0_22 = arith.constant 0 : index
    %c0_23 = arith.constant 0 : index
    %132 = vector.load %arg9[%c0_21, %c0_22, %c0_23] : memref<1x4x64xf32, #tpu.memory_space<vmem>>, vector<1x4x64xf32>
    %133 = vector.shape_cast %132 : vector<1x4x64xf32> to vector<4x64xf32>
    %134 = vector.shape_cast %94 : vector<4x64xf32> to vector<1x4x64xf32>
    tpu.vector_store %arg9[%c0_21, %c0_22, %c0_23], %134 {strides = array<i32>} : memref<1x4x64xf32, #tpu.memory_space<vmem>>, vector<1x4x64xf32>,
    return
  }
  func.func @transform_0(%arg0: i32) -> (i32, i32, i32, i32) {
    %c0_i32 = arith.constant 0 : i32
    %c0_i32_0 = arith.constant 0 : i32
    %c0_i32_1 = arith.constant 0 : i32
    %c0_i32_2 = arith.constant 0 : i32
    return %arg0, %c0_i32, %c0_i32_0, %c0_i32_1 : i32, i32, i32, i32
  }
  func.func @transform_1(%arg0: i32) -> (i32, i32) {
    %c0_i32 = arith.constant 0 : i32
    %c0_i32_0 = arith.constant 0 : i32
    %c0_i32_1 = arith.constant 0 : i32
    return %c0_i32, %c0_i32_0 : i32, i32
  }
  func.func @transform_2(%arg0: i32) -> (i32, i32) {
    %c0_i32 = arith.constant 0 : i32
    %c0_i32_0 = arith.constant 0 : i32
    %c0_i32_1 = arith.constant 0 : i32
    return %c0_i32, %c0_i32_0 : i32, i32
  }
  func.func @transform_3(%arg0: i32) -> (i32, i32) {
    %c0_i32 = arith.constant 0 : i32
    %c0_i32_0 = arith.constant 0 : i32
    %c0_i32_1 = arith.constant 0 : i32
    return %c0_i32, %c0_i32_0 : i32, i32
  }
  func.func @transform_4(%arg0: i32) -> (i32, i32) {
    %c0_i32 = arith.constant 0 : i32
    %c0_i32_0 = arith.constant 0 : i32
    %c0_i32_1 = arith.constant 0 : i32
    return %c0_i32, %c0_i32_0 : i32, i32
  }
  func.func @transform_5(%arg0: i32) -> (i32, i32) {
    %c0_i32 = arith.constant 0 : i32
    %c0_i32_0 = arith.constant 0 : i32
    %c0_i32_1 = arith.constant 0 : i32
    return %c0_i32, %c0_i32_0 : i32, i32
  }
  func.func @transform_6(%arg0: i32) -> (i32, i32) {
    %c0_i32 = arith.constant 0 : i32
    %c0_i32_0 = arith.constant 0 : i32
    %c0_i32_1 = arith.constant 0 : i32
    return %c0_i32, %c0_i32_0 : i32, i32
  }
  func.func @transform_7(%arg0: i32) -> (i32, i32, i32) {
    %c0_i32 = arith.constant 0 : i32
    %c0_i32_0 = arith.constant 0 : i32
    %c0_i32_1 = arith.constant 0 : i32
    return %arg0, %c0_i32, %c0_i32_0 : i32, i32, i32
  }
  func.func @transform_8(%arg0: i32) -> (i32, i32, i32) {
    %c0_i32 = arith.constant 0 : i32
    %c0_i32_0 = arith.constant 0 : i32
    %c0_i32_1 = arith.constant 0 : i32
    return %arg0, %c0_i32, %c0_i32_0 : i32, i32, i32
  }
}

</mosaic_0001>

<bundles_post_ra>
// kernel: _forward_impl.1
= control target key start
LH: loop header
LB: loop body
LE: loop exit
PB: predicated region body
PF: predicated region fallthrough
CT: control target
= control target key end

     0   :  { %s4496_s27 = smov 0   ;;  %s8328_s0 = inlined_call_operand.vmem [shape: f32[2,16,16,4], index: 0, kind: input, shape index: {}]   ;;  %s8329_s1 = inlined_call_operand.vmem [shape: f32[36,8], index: 1, kind: input, shape index: {}]   ;;  %s8330_s2 = inlined_call_operand.vmem [shape: f32[1,8], index: 2, kind: input, shape index: {}]   ;;  %s8331_s3 = inlined_call_operand.vmem [shape: f32[72,16], index: 3, kind: input, shape index: {}]   ;;  %s8332_s4 = inlined_call_operand.vmem [shape: f32[1,16], index: 4, kind: input, shape index: {}]   ;;  %s8333_s5 = inlined_call_operand.vmem [shape: f32[256,32], index: 5, kind: input, shape index: {}]   ;;  %s8334_s6 = inlined_call_operand.vmem [shape: f32[1,32], index: 6, kind: input, shape index: {}]   ;;  %s8335_s7 = inlined_call_operand.vmem [shape: f32[2,16,128], index: 7, kind: output, shape index: {0}]   ;;  %s8336_s8 = inlined_call_operand.vmem [shape: f32[2,4,64], index: 8, kind: output, shape index: {1}]  }
   0x1 LB: > { %s4199_s5 = sadd.s32 4294967295, %s4429_s27   ;;  %p4203_p0 = scmp.ge.s32.totalorder %s4429_s27, 1  ;;  %s4429_s27 = sphi %s4496_s27, %s19_s27  }
   0x2   : > { %p265_p1 = scmp.lt.s32.totalorder %s4429_s27, 3 }
   0x4   : > { %p266_p2 = pnand %p4203_p0, %p265_p1 }
   0x6   : > { %269 = sbr.rel (%p266_p2) target bundleno = 1476 (0x5c4), region = 48 }
   0xb   : > { %p303_p3 = scmp.lt.s32.totalorder %s4199_s5, 1  ;;  %v8337_v0 = vmov 0.0   ;;  %s4432_s6 = smov 4   ;;  %vm8452_vm0 = vcmask 1040384   ;;  %vm8453_vm1 = vcmask 1046528   ;;  %vm8454_vm2 = vcmask 1045504  }
   0xc   : > { %v4505_v1 = vrot.slane %v8337_v0, 1  ;;  %s4433_s10 = smov 8   ;;  %s4434_s11 = smov 12   ;;  %vm1829_vm3 = vcmask 1043456   ;;  %vm1461_vm4 = vcmask 31744   ;;  %vm1525_vm5 = vcmask 97280  }
   0xd   : > { %s9468_s5 = smov (!%p303_p3, %s4199_s5), 1  ;;  %s4435_s12 = smov 16   ;;  %vm1493_vm6 = vcmask 64512   ;;  %vm1558_vm7 = vcmask 130048   ;;  %vm1624_vm8 = vcmask 195584   ;;  %vm8450_vm9 = vcmask 162816  }
   0xe   : > { %8601 = vst [vmem:[#allocation2_spill] sm:$0xff] %v4505_v1  ;;  %708 = vrot.lane.b32.xlu0 %v4505_v1, %s4432_s6  ;;  %s4380_s28 = sshll.u32 %s9468_s5, 8  ;;  %s4436_s13 = smov 20   ;;  %vm1690_vm10 = vcmask 261120   ;;  %vm1657_vm11 = vcmask 228352   ;;  %vm1732_vm12 = vcmask 293888  }
   0xf   : > { %s4515_s9 = scalar_lea.vmem %s8328_s0, %s4380_s28  ;;  %s4437_s14 = smov 24   ;;  %vm8449_vm13 = vcmask 1042434   ;;  %vm2908_vm14 = vcmask 1043459   ;;  %vm2910_vm15 = vcmask 1044484  }
  0x10   : > { %v319_v2 = vld [vmem:[%s4515_s9 + $0x10] sm:$0xff]  ;;  %v320_v3 = vld [vmem:[%s4515_s9 + $0x18] sm:$0xff]  ;;  %v317_v4 = vld [vmem:[%s4515_s9] sm:$0xff]  ;;  %s4438_s15 = smov 28   ;;  %s4439_s16 = smov 32  }
  0x11   : > { %v385_v5 = vrot.slane %v319_v2, 7  ;;  %v386_v6 = vrot.slane %v320_v3, 7  ;;  %v318_v7 = vld [vmem:[%s4515_s9 + $0x8] sm:$0xff]  ;;  %v382_v8 = vrot.slane %v317_v4, 7  ;;  %v321_v9 = vld [vmem:[%s4515_s9 + $0x20] sm:$0xff]  ;;  %v323_v28 = vld [vmem:[%s4515_s9 + $0x30] sm:$0xff] }
  0x12   : > { %v322_v10 = vld [vmem:[%s4515_s9 + $0x28] sm:$0xff]  ;;  %v383_v11 = vrot.slane %v318_v7, 7  ;;  %v388_v12 = vrot.slane %v321_v9, 7  ;;  %v324_v29 = vld [vmem:[%s4515_s9 + $0x38] sm:$0xff]  ;;  %v325_v33 = vld [vmem:[%s4515_s9 + $0x40] sm:$0xff]  ;;  %v391_v39 = vrot.slane %v323_v28, 7 }
  0x13   : > { %v389_v13 = vrot.slane %v322_v10, 7  ;;  %v4524_v14 = vsel %vm8452_vm0, %v385_v5, %v386_v6  ;;  %v4527_v15 = vsel %vm8452_vm0, %v386_v6, 0.0  ;;  %v4530_v16 = vsel %vm8452_vm0, 0.0, %v382_v8  ;;  %v326_v34 = vld [vmem:[%s4515_s9 + $0x48] sm:$0xff]  ;;  %v327_v48 = vld [vmem:[%s4515_s9 + $0x50] sm:$0xff]  ;;  %v328_v52 = vld [vmem:[%s4515_s9 + $0x58] sm:$0xff] }
  0x14   : > { %8602 = vst [vmem:[#allocation3_spill] sm:$0xff] %v4530_v16  ;;  %v549_v17 = vrot.slane %v4524_v14, 1  ;;  %v551_v18 = vrot.slane %v4527_v15, 1  ;;  %v4535_v19 = vsel %vm8452_vm0, %v382_v8, %v383_v11  ;;  %v4538_v20 = vsel %vm8452_vm0, %v383_v11, 0.0  ;;  %v329_v3 = vld [vmem:[%s4515_s9 + $0x60] sm:$0xff]  ;;  %v330_v6 = vld [vmem:[%s4515_s9 + $0x68] sm:$0xff] }
  0x15   : > { %8603 = vst [vmem:[#allocation4_spill] sm:$0xff] %v4535_v19  ;;  %v544_v21 = vrot.slane %v4535_v19, 1  ;;  %v546_v22 = vrot.slane %v4538_v20, 1  ;;  %v543_v23 = vrot.slane %v4530_v16, 1  ;;  %v4544_v24 = vsel %vm8452_vm0, %v388_v12, %v389_v13  ;;  %v331_v7 = vld [vmem:[%s4515_s9 + $0x70] sm:$0xff]  ;;  %v332_v8 = vld [vmem:[%s4515_s9 + $0x78] sm:$0xff] }
  0x16   : > { %8604 = vst [vmem:[#allocation5_spill] sm:$0xff] %v4544_v24  ;;  %v4547_v25 = vsel %vm8453_vm1, %v549_v17, %v551_v18  ;;  %v4550_v26 = vsel %vm8452_vm0, 0.0, %v388_v12  ;;  %v4553_v27 = vsel %vm8452_vm0, 0.0, %v385_v5  ;;  %v4566_v32 = vsel %vm8452_vm0, %v389_v13, 0.0  ;;  %s4440_s29 = smov 40   ;;  %s4441_s30 = smov 48  }
  0x17   : > { %716 = vrot.lane.b32.xlu2 %v4547_v25, %s4432_s6  ;;  %v4560_v30 = vsel %vm8453_vm1, %v544_v21, %v546_v22  ;;  %v4563_v31 = vsel %vm8453_vm1, %v543_v23, %v544_v21  ;;  %v553_v35 = vrot.slane %v4550_v26, 1  ;;  %v554_v36 = vrot.slane %v4544_v24, 1  ;;  %s4381_s26 = sshll.u32 %s9468_s5, 4 }
  0x18   : > { %712 = vrot.lane.b32.xlu1 %v4560_v30, %s4432_s6  ;;  %710 = vrot.lane.b32.xlu0 %v4563_v31, %s4432_s6  ;;  %v548_v37 = vrot.slane %v4553_v27, 1  ;;  %v556_v38 = vrot.slane %v4566_v32, 1  ;;  %v392_v40 = vrot.slane %v324_v29, 7  ;;  %v394_v41 = vrot.slane %v325_v33, 7 }
  0x19   : > { %v395_v42 = vrot.slane %v326_v34, 7  ;;  %v4579_v43 = vsel %vm8453_vm1, %v553_v35, %v554_v36  ;;  %v4595_v49 = vsel %vm8452_vm0, 0.0, %v391_v39  ;;  %v397_v55 = vrot.slane %v327_v48, 7 }
  0x1a   : > { %v4582_v44 = vsel %vm8453_vm1, %v548_v37, %v549_v17  ;;  %v4585_v45 = vsel %vm8453_vm1, %v554_v36, %v556_v38  ;;  %v4588_v46 = vsel %vm8452_vm0, %v391_v39, %v392_v40  ;;  %v4591_v47 = vsel %vm8452_vm0, %v392_v40, 0.0  ;;  %8606 = vst [vmem:[#allocation7_spill] sm:$0xff] %v4595_v49  ;;  %v333_v37 = vld [vmem:[%s4515_s9 + $0x80] sm:$0xff]  ;;  %v334_v38 = vld [vmem:[%s4515_s9 + $0x88] sm:$0xff] }
  0x1b   : > { %8605 = vst [vmem:[#allocation6_spill] sm:$0xff] %v4588_v46  ;;  %v4598_v50 = vsel %vm8452_vm0, %v394_v41, %v395_v42  ;;  %v4601_v51 = vsel %vm8452_vm0, 0.0, %v394_v41  ;;  %v559_v53 = vrot.slane %v4588_v46, 1  ;;  %v561_v54 = vrot.slane %v4591_v47, 1 }
  0x1c   : > { %v558_v56 = vrot.slane %v4595_v49, 1  ;;  %v563_v57 = vrot.slane %v4601_v51, 1  ;;  %v564_v58 = vrot.slane %v4598_v50, 1  ;;  %v398_v59 = vrot.slane %v328_v52, 7 }
  0x1d   : > { %v4616_v60 = vsel %vm8453_vm1, %v559_v53, %v561_v54  ;;  %v4628_v2 = vsel %vm8452_vm0, 0.0, %v397_v55  ;;  %v4632_v4 = vsel %vm8452_vm0, %v395_v42, 0.0  ;;  %v400_v11 = vrot.slane %v329_v3, 7 }
  0x1e   : > { %v4619_v61 = vsel %vm8453_vm1, %v558_v56, %v559_v53  ;;  %v4622_v62 = vsel %vm8453_vm1, %v563_v57, %v564_v58  ;;  %v4625_v63 = vsel %vm8452_vm0, %v397_v55, %v398_v59  ;;  %v4635_v5 = vsel %vm8452_vm0, %v398_v59, 0.0 }
  0x1f   : > { %718 = vrot.lane.b32.xlu2 %v4579_v43, %s4432_s6  ;;  %8607 = vst [vmem:[#allocation8_spill] sm:$0xff] %v4619_v61  ;;  %v568_v9 = vrot.slane %v4628_v2, 1  ;;  %v569_v10 = vrot.slane %v4625_v63, 1  ;;  %v566_v12 = vrot.slane %v4632_v4, 1  ;;  %v571_v13 = vrot.slane %v4635_v5, 1 }
  0x20   : > { %714 = vrot.lane.b32.xlu1 %v4582_v44, %s4432_s6  ;;  %720 = vrot.lane.b32.xlu0 %v4585_v45, %s4432_s6  ;;  %8608 = vst [vmem:[#allocation9_spill] sm:$0xff] %v4622_v62  ;;  %v401_v17 = vrot.slane %v330_v6, 7  ;;  %v403_v18 = vrot.slane %v331_v7, 7  ;;  %v404_v21 = vrot.slane %v332_v8, 7  ;;  %v4654_v23 = vsel %vm8452_vm0, 0.0, %v400_v11  ;;  %v335_v6 = vld [vmem:[%s4515_s9 + $0x90] sm:$0xff] }
  0x21   : > { %v4651_v22 = vsel %vm8453_vm1, %v568_v9, %v569_v10  ;;  %v4657_v28 = vsel %vm8453_vm1, %v564_v58, %v566_v12  ;;  %v4660_v29 = vsel %vm8453_vm1, %v569_v10, %v571_v13  ;;  %v573_v41 = vrot.slane %v4654_v23, 1  ;;  %v336_v7 = vld [vmem:[%s4515_s9 + $0x98] sm:$0xff]  ;;  %v337_v8 = vld [vmem:[%s4515_s9 + $0xa0] sm:$0xff]  ;;  %v338_v9 = vld [vmem:[%s4515_s9 + $0xa8] sm:$0xff] }
  0x22   : > { %8609 = vst [vmem:[#allocation10_spill] sm:$0xff] %v4651_v22  ;;  %v4663_v33 = vsel %vm8452_vm0, %v400_v11, %v401_v17  ;;  %v4666_v34 = vsel %vm8452_vm0, %v401_v17, 0.0  ;;  %v4669_v35 = vsel %vm8452_vm0, %v403_v18, %v404_v21  ;;  %v4672_v36 = vsel %vm8452_vm0, 0.0, %v403_v18 }
  0x23   : > { %8610 = vst [vmem:[#allocation11_spill] sm:$0xff] %v4657_v28  ;;  %v574_v39 = vrot.slane %v4663_v33, 1  ;;  %v576_v40 = vrot.slane %v4666_v34, 1  ;;  %v578_v42 = vrot.slane %v4672_v36, 1  ;;  %v579_v48 = vrot.slane %v4669_v35, 1 }
  0x24   : > { %8611 = vst [vmem:[#allocation12_spill] sm:$0xff] %v4660_v29  ;;  %v406_v52 = vrot.slane %v333_v37, 7  ;;  %v407_v53 = vrot.slane %v334_v38, 7  ;;  %v4691_v55 = vsel %vm8452_vm0, %v404_v21, 0.0  ;;  %v409_v17 = vrot.slane %v335_v6, 7 }
  0x25   : > { %8612 = vst [vmem:[#allocation13_spill] sm:$0xff] %v4669_v35  ;;  %v4688_v54 = vsel %vm8453_vm1, %v574_v39, %v576_v40  ;;  %v4694_v56 = vsel %vm8453_vm1, %v573_v41, %v574_v39  ;;  %v4697_v57 = vsel %vm8453_vm1, %v578_v42, %v579_v48  ;;  %v581_v12 = vrot.slane %v4691_v55, 1 }
  0x26   : > { %8613 = vst [vmem:[#allocation14_spill] sm:$0xff] %v4688_v54  ;;  %v4700_v58 = vsel %vm8452_vm0, %v406_v52, %v407_v53  ;;  %v4703_v59 = vsel %vm8452_vm0, 0.0, %v406_v52  ;;  %v4706_v3 = vsel %vm8452_vm0, %v407_v53, 0.0  ;;  %v410_v18 = vrot.slane %v336_v7, 7  ;;  %v340_v7 = vld [vmem:[%s4515_s9 + $0xb8] sm:$0xff] }
  0x27   : > { %724 = vrot.lane.b32.xlu2 %v4616_v60, %s4432_s6  ;;  %8614 = vst [vmem:[#allocation15_spill] sm:$0xff] %v4694_v56  ;;  %v583_v10 = vrot.slane %v4703_v59, 1  ;;  %v584_v11 = vrot.slane %v4700_v58, 1  ;;  %v586_v13 = vrot.slane %v4706_v3, 1  ;;  %v412_v21 = vrot.slane %v337_v8, 7 }
  0x28   : > { %722 = vrot.lane.b32.xlu1 %v4619_v61, %s4432_s6  ;;  %726 = vrot.lane.b32.xlu0 %v4622_v62, %s4432_s6  ;;  %8615 = vst [vmem:[#allocation16_spill] sm:$0xff] %v4697_v57  ;;  %v413_v37 = vrot.slane %v338_v9, 7  ;;  %v4726_v39 = vsel %vm8453_vm1, %v579_v48, %v581_v12  ;;  %v4732_v41 = vsel %vm8452_vm0, %v409_v17, %v410_v18  ;;  %v4735_v42 = vsel %vm8452_vm0, %v410_v18, 0.0  ;;  %v339_v48 = vld [vmem:[%s4515_s9 + $0xb0] sm:$0xff] }
  0x29   : > { %8616 = vst [vmem:[#allocation17_spill] sm:$0xff] %v4700_v58  ;;  %v4723_v38 = vsel %vm8453_vm1, %v583_v10, %v584_v11  ;;  %v4729_v40 = vsel %vm8453_vm1, %v584_v11, %v586_v13  ;;  %v4738_v52 = vsel %vm8452_vm0, 0.0, %v409_v17  ;;  %v4744_v6 = vsel %vm8452_vm0, 0.0, %v412_v21 }
  0x2a   : > { %8617 = vst [vmem:[#allocation18_spill] sm:$0xff] %v4703_v59  ;;  %v4741_v53 = vsel %vm8452_vm0, %v412_v21, %v413_v37  ;;  %v589_v8 = vrot.slane %v4732_v41, 1  ;;  %v591_v9 = vrot.slane %v4735_v42, 1  ;;  %v588_v10 = vrot.slane %v4738_v52, 1 }
  0x2b   : > { %8618 = vst [vmem:[#allocation19_spill] sm:$0xff] %v4723_v38  ;;  %v593_v11 = vrot.slane %v4744_v6, 1  ;;  %v594_v12 = vrot.slane %v4741_v53, 1  ;;  %v415_v13 = vrot.slane %v339_v48, 7  ;;  %v416_v17 = vrot.slane %v340_v7, 7  ;;  %v341_v7 = vld [vmem:[%s4515_s9 + $0xc0] sm:$0xff] }
  0x2c   : > { %8619 = vst [vmem:[#allocation20_spill] sm:$0xff] %v4726_v39  ;;  %v4760_v18 = vsel %vm8453_vm1, %v589_v8, %v591_v9  ;;  %v4763_v21 = vsel %vm8453_vm1, %v588_v10, %v589_v8  ;;  %v342_v9 = vld [vmem:[%s4515_s9 + $0xc8] sm:$0xff]  ;;  %v343_v8 = vld [vmem:[%s4515_s9 + $0xd0] sm:$0xff]  ;;  %v344_v10 = vld [vmem:[%s4515_s9 + $0xd8] sm:$0xff] }
  0x2d   : > { %8620 = vst [vmem:[#allocation21_spill] sm:$0xff] %v4729_v40  ;;  %v4766_v0 = vsel %vm8453_vm1, %v593_v11, %v594_v12  ;;  %v4769_v1 = vsel %vm8452_vm0, %v415_v13, %v416_v17  ;;  %v4778_v48 = vsel %vm8452_vm0, %v416_v17, 0.0 }
  0x2e   : > { %8621 = vst [vmem:[#allocation22_spill] sm:$0xff] %v4732_v41  ;;  %v601_v17 = vrot.slane %v4778_v48, 1 }
  0x2f   : > { %730 = vrot.lane.b32.xlu2 %v4651_v22, %s4432_s6  ;;  %8622 = vst [vmem:[#allocation23_spill] sm:$0xff] %v4738_v52 }
  0x30   : > { %728 = vrot.lane.b32.xlu1 %v4657_v28, %s4432_s6  ;;  %732 = vrot.lane.b32.xlu0 %v4660_v29, %s4432_s6  ;;  %8623 = vst [vmem:[#allocation24_spill] sm:$0xff] %v4741_v53 }
  0x31   : > { %8624 = vst [vmem:[#allocation25_spill] sm:$0xff] %v4744_v6 }
  0x32   : > { %8625 = vst [vmem:[#allocation26_spill] sm:$0xff] %v4760_v18 }
  0x33   : > { %8626 = vst [vmem:[#allocation27_spill] sm:$0xff] %v4763_v21 }
  0x34   : > { %8627 = vst [vmem:[#allocation28_spill] sm:$0xff] %v4766_v0 }
  0x35   : > { %8628 = vst [vmem:[#allocation29_spill] sm:$0xff] %v4769_v1 }
  0x37   : > { %736 = vrot.lane.b32.xlu2 %v4688_v54, %s4432_s6 }
  0x38   : > { %734 = vrot.lane.b32.xlu1 %v4694_v56, %s4432_s6  ;;  %738 = vrot.lane.b32.xlu0 %v4697_v57, %s4432_s6  ;;  %v421_v57 = vrot.slane %v343_v8, 7  ;;  %v422_v56 = vrot.slane %v344_v10, 7  ;;  %v346_v10 = vld [vmem:[%s4515_s9 + $0xe8] sm:$0xff] }
  0x3a   : > { %v4816_v8 = vsel %vm8452_vm0, 0.0, %v421_v57  ;;  %v4847_v61 = vsel %vm8452_vm0, %v422_v56, 0.0 }
  0x3b   : > { %8636 = vst [vmem:[#allocation37_spill] sm:$0xff] %v4816_v8 }
  0x3f   : > { %742 = vrot.lane.b32.xlu2 %v4723_v38, %s4432_s6  ;;  %v418_v38 = vrot.slane %v341_v7, 7 }
  0x40   : > { %740 = vrot.lane.b32.xlu1 %v4726_v39, %s4432_s6  ;;  %744 = vrot.lane.b32.xlu0 %v4729_v40, %s4432_s6  ;;  %v4772_v40 = vsel %vm8452_vm0, 0.0, %v415_v13  ;;  %v4775_v39 = vsel %vm8452_vm0, %v413_v37, 0.0  ;;  %v599_v37 = vrot.slane %v4769_v1, 1 }
  0x41   : > { %8629 = vst [vmem:[#allocation30_spill] sm:$0xff] %v4772_v40  ;;  %v598_v11 = vrot.slane %v4772_v40, 1  ;;  %v596_v13 = vrot.slane %v4775_v39, 1  ;;  %v4810_v7 = vsel %vm8452_vm0, 0.0, %v418_v38 }
  0x42   : > { %8634 = vst [vmem:[#allocation35_spill] sm:$0xff] %v4810_v7 }
  0x43   : > { %v4795_v54 = vsel %vm8453_vm1, %v598_v11, %v599_v37  ;;  %v603_v11 = vrot.slane %v4810_v7, 1 }
  0x44   : > { %8630 = vst [vmem:[#allocation31_spill] sm:$0xff] %v4795_v54 }
  0x47   : > { %748 = vrot.lane.b32.xlu2 %v4760_v18, %s4432_s6  ;;  %v419_v18 = vrot.slane %v342_v9, 7  ;;  %v4813_v9 = vsel %vm8452_vm0, %v421_v57, %v422_v56  ;;  %v608_v57 = vrot.slane %v4816_v8, 1 }
  0x48   : > { %746 = vrot.lane.b32.xlu1 %v4763_v21, %s4432_s6  ;;  %750 = vrot.lane.b32.xlu0 %v4766_v0, %s4432_s6  ;;  %v4798_v21 = vsel %vm8453_vm1, %v594_v12, %v596_v13  ;;  %v4801_v0 = vsel %vm8453_vm1, %v599_v37, %v601_v17  ;;  %8635 = vst [vmem:[#allocation36_spill] sm:$0xff] %v4813_v9  ;;  %v345_v12 = vld [vmem:[%s4515_s9 + $0xe0] sm:$0xff]  ;;  %v609_v37 = vrot.slane %v4813_v9, 1  ;;  %v425_v17 = vrot.slane %v346_v10, 7 }
  0x49   : > { %8631 = vst [vmem:[#allocation32_spill] sm:$0xff] %v4798_v21  ;;  %v4804_v29 = vsel %vm8452_vm0, %v418_v38, %v419_v18  ;;  %v4807_v28 = vsel %vm8452_vm0, %v419_v18, 0.0  ;;  %v424_v13 = vrot.slane %v345_v12, 7 }
  0x4a   : > { %8632 = vst [vmem:[#allocation33_spill] sm:$0xff] %v4801_v0  ;;  %v604_v38 = vrot.slane %v4804_v29, 1  ;;  %v606_v18 = vrot.slane %v4807_v28, 1  ;;  %v4850_v12 = vsel %vm8452_vm0, %v425_v17, 0.0 }
  0x4b   : > { %8633 = vst [vmem:[#allocation34_spill] sm:$0xff] %v4804_v29  ;;  %v4841_v22 = vsel %vm8452_vm0, %v424_v13, %v425_v17  ;;  %v4844_v62 = vsel %vm8452_vm0, 0.0, %v424_v13  ;;  %v616_v56 = vrot.slane %v4850_v12, 1  ;;  %v621_v17 = vrot.slane %v4530_v16, 2 }
  0x4c   : > { %8638 = vst [vmem:[#allocation39_spill] sm:$0xff] %v4841_v22  ;;  %v613_v10 = vrot.slane %v4844_v62, 1 }
  0x4d   : > { %8639 = vst [vmem:[#allocation40_spill] sm:$0xff] %v4844_v62 }
  0x4f   : > { %754 = vrot.lane.b32.xlu2 %v4795_v54, %s4432_s6  ;;  %v4832_v54 = vsel %vm8453_vm1, %v604_v38, %v606_v18  ;;  %v611_v18 = vrot.slane %v4847_v61, 1 }
  0x50   : > { %752 = vrot.lane.b32.xlu1 %v4798_v21, %s4432_s6  ;;  %756 = vrot.lane.b32.xlu0 %v4801_v0, %s4432_s6  ;;  %v4835_v21 = vsel %vm8453_vm1, %v603_v11, %v604_v38  ;;  %v4838_v0 = vsel %vm8453_vm1, %v608_v57, %v609_v37  ;;  %v614_v38 = vrot.slane %v4841_v22, 1 }
  0x51   : > { %8637 = vst [vmem:[#allocation38_spill] sm:$0xff] %v4838_v0  ;;  %v4866_v57 = vsel %vm8453_vm1, %v609_v37, %v611_v18  ;;  %v624_v37 = vrot.slane %v4538_v20, 2  ;;  %v627_v20 = vrot.slane %v4524_v14, 2 }
  0x52   : > { %v4863_v11 = vsel %vm8453_vm1, %v613_v10, %v614_v38  ;;  %8641 = vst [vmem:[#allocation42_spill] sm:$0xff] %v4866_v57  ;;  %v4869_v13 = vsel %vm8453_vm1, %v614_v38, %v616_v56  ;;  %v622_v10 = vrot.slane %v4535_v19, 2  ;;  %v8644_v38 = vmov 0.0  }
  0x53   : > { %8640 = vst [vmem:[#allocation41_spill] sm:$0xff] %v4863_v11  ;;  %v4884_v56 = vrot.slane %v8644_v38, 2  ;;  %v626_v38 = vrot.slane %v4553_v27, 2 }
  0x54   : > { %8642 = vst [vmem:[#allocation43_spill] sm:$0xff] %v4869_v13  ;;  %v4881_v18 = vsel %vm8454_vm2, %v621_v17, %v622_v10  ;;  %v629_v17 = vrot.slane %v4527_v15, 2  ;;  %v636_v15 = vrot.slane %v4595_v49, 2 }
  0x55   : > { %8643 = vst [vmem:[#allocation44_spill] sm:$0xff] %v4881_v18 }
  0x56   : > { %8645 = vst [vmem:[#allocation45_spill] sm:$0xff] %v4884_v56 }
  0x57   : > { %760 = vrot.lane.b32.xlu2 %v4832_v54, %s4432_s6 }
  0x58   : > { %758 = vrot.lane.b32.xlu1 %v4835_v21, %s4432_s6  ;;  %762 = vrot.lane.b32.xlu0 %v4838_v0, %s4432_s6 }
  0x5f   : > { %766 = vrot.lane.b32.xlu2 %v4863_v11, %s4432_s6  ;;  %v4887_v11 = vsel %vm8454_vm2, %v622_v10, %v624_v37  ;;  %v632_v10 = vrot.slane %v4544_v24, 2  ;;  %v4901_v37 = vsel %vm8454_vm2, %v627_v20, %v629_v17  ;;  %v637_v17 = vrot.slane %v4588_v46, 2 }
  0x60   : > { %764 = vrot.lane.b32.xlu1 %v4866_v57, %s4432_s6  ;;  %768 = vrot.lane.b32.xlu0 %v4869_v13, %s4432_s6  ;;  %8646 = vst [vmem:[#allocation46_spill] sm:$0xff] %v4887_v11  ;;  %v631_v13 = vrot.slane %v4550_v26, 2 }
  0x61   : > { %8647 = vst [vmem:[#allocation47_spill] sm:$0xff] %v4901_v37 }
  0x67   : > { %803 = vrot.lane.b32.xlu2 %v4881_v18, %s4433_s10  ;;  %v4904_v18 = vsel %vm8454_vm2, %v626_v38, %v627_v20  ;;  %v634_v38 = vrot.slane %v4566_v32, 2  ;;  %v4922_v20 = vsel %vm8454_vm2, %v636_v15, %v637_v17  ;;  %v642_v32 = vrot.slane %v4598_v50, 2 }
  0x68   : > { %801 = vrot.lane.b32.xlu1 %v4884_v56, %s4433_s10  ;;  %805 = vrot.lane.b32.xlu0 %v4887_v11, %s4433_s10  ;;  %8648 = vst [vmem:[#allocation48_spill] sm:$0xff] %v4904_v18  ;;  %v4907_v56 = vsel %vm8454_vm2, %v631_v13, %v632_v10  ;;  %v639_v13 = vrot.slane %v4591_v47, 2  ;;  %v644_v47 = vrot.slane %v4632_v4, 2 }
  0x6f   : > { %809 = vrot.lane.b32.xlu2 %v4901_v37, %s4433_s10  ;;  %v4925_v37 = vsel %vm8454_vm2, %v632_v10, %v634_v38  ;;  %v641_v10 = vrot.slane %v4601_v51, 2  ;;  %v647_v38 = vrot.slane %v4625_v63, 2 }
  0x70   : > { %807 = vrot.lane.b32.xlu1 %v4904_v18, %s4433_s10  ;;  %811 = vrot.lane.b32.xlu0 %v4907_v56, %s4433_s10  ;;  %v4928_v18 = vsel %vm8454_vm2, %v637_v17, %v639_v13  ;;  %v646_v17 = vrot.slane %v4628_v2, 2  ;;  %v4944_v13 = vsel %vm8454_vm2, %v642_v32, %v644_v47  ;;  %v651_v47 = vrot.slane %v4654_v23, 2 }
  0x71   : > { %v4917_v11 = vpop.permute.xlu2 %716  ;;  %8650 = vst [vmem:[#allocation50_spill] sm:$0xff] %v4928_v18 }
  0x72   : > { %8649 = vst [vmem:[#allocation49_spill] sm:$0xff] %v4917_v11  ;;  %v4947_v11 = vsel %vm8454_vm2, %v641_v10, %v642_v32  ;;  %v649_v10 = vrot.slane %v4635_v5, 2  ;;  %v657_v5 = vrot.slane %v4669_v35, 2 }
  0x73   : > { %8652 = vst [vmem:[#allocation52_spill] sm:$0xff] %v4944_v13 }
  0x74   : > { %8653 = vst [vmem:[#allocation53_spill] sm:$0xff] %v4947_v11 }
  0x77   : > { %815 = vrot.lane.b32.xlu2 %v4922_v20, %s4433_s10 }
  0x78   : > { %813 = vrot.lane.b32.xlu1 %v4925_v37, %s4433_s10  ;;  %817 = vrot.lane.b32.xlu0 %v4928_v18, %s4433_s10  ;;  %v4950_v18 = vsel %vm8454_vm2, %v646_v17, %v647_v38  ;;  %v654_v17 = vrot.slane %v4666_v34, 2  ;;  %v659_v34 = vrot.slane %v4691_v55, 2 }
  0x79   : > { %v4938_v15 = vpop.permute.xlu2 %718  ;;  %8654 = vst [vmem:[#allocation54_spill] sm:$0xff] %v4950_v18 }
  0x7a   : > { %8651 = vst [vmem:[#allocation51_spill] sm:$0xff] %v4938_v15  ;;  %v652_v15 = vrot.slane %v4663_v33, 2 }
  0x7f   : > { %821 = vrot.lane.b32.xlu2 %v4944_v13, %s4433_s10  ;;  %v4967_v13 = vsel %vm8454_vm2, %v651_v47, %v652_v15 }
  0x80   : > { %819 = vrot.lane.b32.xlu1 %v4947_v11, %s4433_s10  ;;  %823 = vrot.lane.b32.xlu0 %v4950_v18, %s4433_s10  ;;  %v4958_v4 = vpop.permute.xlu0 %708  ;;  %v4970_v11 = vsel %vm8454_vm2, %v647_v38, %v649_v10  ;;  %v4973_v18 = vsel %vm8454_vm2, %v652_v15, %v654_v17  ;;  %v656_v38 = vrot.slane %v4672_v36, 2  ;;  %v661_v15 = vrot.slane %v4703_v59, 2 }
  0x81   : > { %8655 = vst [vmem:[#allocation55_spill] sm:$0xff] %v4958_v4  ;;  %v4962_v32 = vpop.permute.xlu2 %724  ;;  %v662_v10 = vrot.slane %v4700_v58, 2  ;;  %v4993_v4 = vsel %vm8454_vm2, %v657_v5, %v659_v34  ;;  %v667_v34 = vrot.slane %v4732_v41, 2 }
  0x82   : > { %8656 = vst [vmem:[#allocation56_spill] sm:$0xff] %v4962_v32 }
  0x83   : > { %8657 = vst [vmem:[#allocation57_spill] sm:$0xff] %v4970_v11  ;;  %v4999_v55 = vsel %vm8454_vm2, %v661_v15, %v662_v10 }
  0x84   : > { %8658 = vst [vmem:[#allocation58_spill] sm:$0xff] %v4973_v18 }
  0x85   : > { %8662 = vst [vmem:[#allocation62_spill] sm:$0xff] %v4993_v4 }
  0x86   : > { %8664 = vst [vmem:[#allocation64_spill] sm:$0xff] %v4999_v55 }
  0x87   : > { %827 = vrot.lane.b32.xlu2 %v4967_v13, %s4433_s10 }
  0x88   : > { %825 = vrot.lane.b32.xlu1 %v4970_v11, %s4433_s10  ;;  %829 = vrot.lane.b32.xlu0 %v4973_v18, %s4433_s10  ;;  %v4996_v18 = vsel %vm8454_vm2, %v656_v38, %v657_v5  ;;  %v664_v5 = vrot.slane %v4706_v3, 2  ;;  %v669_v38 = vrot.slane %v4735_v42, 2  ;;  %v672_v3 = vrot.slane %v4741_v53, 2 }
  0x89   : > { %v4983_v47 = vpop.permute.xlu2 %730  ;;  %8663 = vst [vmem:[#allocation63_spill] sm:$0xff] %v4996_v18  ;;  %v674_v42 = vrot.slane %v4775_v39, 2 }
  0x8a   : > { %8659 = vst [vmem:[#allocation59_spill] sm:$0xff] %v4983_v47  ;;  %v4988_v17 = vpop.permute.xlu1 %712  ;;  %v4990_v32 = vpop.permute.xlu0 %710 }
  0x8b   : > { %8660 = vst [vmem:[#allocation60_spill] sm:$0xff] %v4988_v17  ;;  %v666_v17 = vrot.slane %v4738_v52, 2 }
  0x8c   : > { %8661 = vst [vmem:[#allocation61_spill] sm:$0xff] %v4990_v32 }
  0x8f   : > { %833 = vrot.lane.b32.xlu2 %v4993_v4, %s4433_s10  ;;  %v5018_v4 = vsel %vm8454_vm2, %v666_v17, %v667_v34 }
  0x90   : > { %831 = vrot.lane.b32.xlu1 %v4996_v18, %s4433_s10  ;;  %835 = vrot.lane.b32.xlu0 %v4999_v55, %s4433_s10  ;;  %8668 = vst [vmem:[#allocation68_spill] sm:$0xff] %v5018_v4  ;;  %v5021_v18 = vsel %vm8454_vm2, %v662_v10, %v664_v5  ;;  %v5024_v55 = vsel %vm8454_vm2, %v667_v34, %v669_v38  ;;  %v671_v10 = vrot.slane %v4744_v6, 2  ;;  %v676_v34 = vrot.slane %v4772_v40, 2 }
  0x91   : > { %v5009_v47 = vpop.permute.xlu2 %736  ;;  %8669 = vst [vmem:[#allocation69_spill] sm:$0xff] %v5021_v18  ;;  %v677_v5 = vrot.slane %v4769_v1, 2 }
  0x92   : > { %8665 = vst [vmem:[#allocation65_spill] sm:$0xff] %v5009_v47  ;;  %v5013_v15 = vpop.permute.xlu1 %714  ;;  %v5015_v32 = vpop.permute.xlu0 %720  ;;  %v5044_v47 = vsel %vm8454_vm2, %v672_v3, %v674_v42  ;;  %v682_v42 = vrot.slane %v4804_v29, 2 }
  0x93   : > { %8666 = vst [vmem:[#allocation66_spill] sm:$0xff] %v5013_v15  ;;  %v5047_v15 = vsel %vm8454_vm2, %v671_v10, %v672_v3  ;;  %v5050_v39 = vsel %vm8454_vm2, %v676_v34, %v677_v5  ;;  %v679_v3 = vrot.slane %v4778_v48, 2  ;;  %v684_v10 = vrot.slane %v4807_v28, 2 }
  0x94   : > { %8667 = vst [vmem:[#allocation67_spill] sm:$0xff] %v5015_v32  ;;  %v687_v28 = vrot.slane %v4813_v9, 2  ;;  %v689_v48 = vrot.slane %v4847_v61, 2 }
  0x95   : > { %8670 = vst [vmem:[#allocation70_spill] sm:$0xff] %v5024_v55 }
  0x96   : > { %8674 = vst [vmem:[#allocation74_spill] sm:$0xff] %v5044_v47 }
  0x97   : > { %839 = vrot.lane.b32.xlu2 %v5018_v4, %s4433_s10  ;;  %8675 = vst [vmem:[#allocation75_spill] sm:$0xff] %v5047_v15 }
  0x98   : > { %837 = vrot.lane.b32.xlu1 %v5021_v18, %s4433_s10  ;;  %841 = vrot.lane.b32.xlu0 %v5024_v55, %s4433_s10  ;;  %8676 = vst [vmem:[#allocation76_spill] sm:$0xff] %v5050_v39  ;;  %v5072_v55 = vsel %vm8454_vm2, %v677_v5, %v679_v3  ;;  %v686_v5 = vrot.slane %v4816_v8, 2  ;;  %v692_v3 = vrot.slane %v4841_v22, 2 }
  0x99   : > { %v5034_v17 = vpop.permute.xlu2 %742 }
  0x9a   : > { %8671 = vst [vmem:[#allocation71_spill] sm:$0xff] %v5034_v17  ;;  %v5039_v38 = vpop.permute.xlu1 %722  ;;  %v5041_v32 = vpop.permute.xlu0 %726  ;;  %v681_v17 = vrot.slane %v4810_v7, 2 }
  0x9b   : > { %8672 = vst [vmem:[#allocation72_spill] sm:$0xff] %v5039_v38 }
  0x9c   : > { %8673 = vst [vmem:[#allocation73_spill] sm:$0xff] %v5041_v32 }
  0x9f   : > { %845 = vrot.lane.b32.xlu2 %v5044_v47, %s4433_s10  ;;  %v5069_v47 = vsel %vm8454_vm2, %v681_v17, %v682_v42 }
  0xa0   : > { %843 = vrot.lane.b32.xlu1 %v5047_v15, %s4433_s10  ;;  %847 = vrot.lane.b32.xlu0 %v5050_v39, %s4433_s10  ;;  %v5075_v39 = vsel %vm8454_vm2, %v682_v42, %v684_v10  ;;  %v691_v42 = vrot.slane %v4844_v62, 2 }
  0xa1   : > { %v5060_v38 = vpop.permute.xlu2 %748 }
  0xa2   : > { %8677 = vst [vmem:[#allocation77_spill] sm:$0xff] %v5060_v38  ;;  %v5064_v34 = vpop.permute.xlu1 %728  ;;  %v5066_v32 = vpop.permute.xlu0 %732  ;;  %v5095_v38 = vsel %vm8454_vm2, %v687_v28, %v689_v48  ;;  %v5101_v61 = vsel %vm8454_vm2, %v691_v42, %v692_v3  ;;  %v694_v48 = vrot.slane %v4850_v12, 2 }
  0xa3   : > { %8678 = vst [vmem:[#allocation78_spill] sm:$0xff] %v5064_v34  ;;  %v5098_v34 = vsel %vm8454_vm2, %v686_v5, %v687_v28 }
  0xa4   : > { %8679 = vst [vmem:[#allocation79_spill] sm:$0xff] %v5066_v32  ;;  %v5117_v5 = vsel %vm8454_vm2, %v692_v3, %v694_v48 }
  0xa7   : > { %851 = vrot.lane.b32.xlu2 %v5069_v47, %s4433_s10 }
  0xa8   : > { %849 = vrot.lane.b32.xlu1 %v5072_v55, %s4433_s10  ;;  %853 = vrot.lane.b32.xlu0 %v5075_v39, %s4433_s10 }
  0xa9   : > { %v5085_v17 = vpop.permute.xlu2 %754 }
  0xaa   : > { %8680 = vst [vmem:[#allocation80_spill] sm:$0xff] %v5085_v17  ;;  %v5090_v10 = vpop.permute.xlu1 %734  ;;  %v5092_v32 = vpop.permute.xlu0 %738 }
  0xab   : > { %8681 = vst [vmem:[#allocation81_spill] sm:$0xff] %v5090_v10 }
  0xac   : > { %8682 = vst [vmem:[#allocation82_spill] sm:$0xff] %v5092_v32 }
  0xaf   : > { %857 = vrot.lane.b32.xlu2 %v5095_v38, %s4433_s10 }
  0xb0   : > { %855 = vrot.lane.b32.xlu1 %v5098_v34, %s4433_s10  ;;  %859 = vrot.lane.b32.xlu0 %v5101_v61, %s4433_s10 }
  0xb1   : > { %v5109_v17 = vpop.permute.xlu2 %760 }
  0xb2   : > { %8683 = vst [vmem:[#allocation83_spill] sm:$0xff] %v5109_v17  ;;  %v5112_v32 = vpop.permute.xlu1 %740  ;;  %v5114_v28 = vpop.permute.xlu0 %744 }
  0xb3   : > { %8684 = vst [vmem:[#allocation84_spill] sm:$0xff] %v5112_v32 }
  0xb4   : > { %8685 = vst [vmem:[#allocation85_spill] sm:$0xff] %v5114_v28 }
  0xb7   : > { %894 = vrot.lane.b32.xlu2 %v4530_v16, %s4434_s11 }
  0xb8   : > { %861 = vrot.lane.b32.xlu1 %v5117_v5, %s4433_s10  ;;  %896 = vrot.lane.b32.xlu0 %v4535_v19, %s4434_s11 }
  0xb9   : > { %v5125_v42 = vpop.permute.xlu2 %766 }
  0xba   : > { %8686 = vst [vmem:[#allocation86_spill] sm:$0xff] %v5125_v42  ;;  %v5127_v12 = vpop.permute.xlu1 %746  ;;  %v5129_v17 = vpop.permute.xlu0 %750 }
  0xbb   : > { %8687 = vst [vmem:[#allocation87_spill] sm:$0xff] %v5127_v12 }
  0xbc   : > { %8688 = vst [vmem:[#allocation88_spill] sm:$0xff] %v5129_v17 }
  0xbf   : > { %900 = vrot.lane.b32.xlu2 %v4524_v14, %s4434_s11 }
  0xc0   : > { %898 = vrot.lane.b32.xlu1 %v4553_v27, %s4434_s11  ;;  %902 = vrot.lane.b32.xlu0 %v4550_v26, %s4434_s11 }
  0xc1   : > { %v5137_v3 = vpop.permute.xlu2 %803 }
  0xc2   : > { %8689 = vst [vmem:[#allocation89_spill] sm:$0xff] %v5137_v3  ;;  %v5139_v48 = vpop.permute.xlu1 %752  ;;  %v5141_v28 = vpop.permute.xlu0 %756 }
  0xc3   : > { %8690 = vst [vmem:[#allocation90_spill] sm:$0xff] %v5139_v48 }
  0xc4   : > { %8691 = vst [vmem:[#allocation91_spill] sm:$0xff] %v5141_v28 }
  0xc7   : > { %906 = vrot.lane.b32.xlu2 %v4595_v49, %s4434_s11 }
  0xc8   : > { %904 = vrot.lane.b32.xlu1 %v4544_v24, %s4434_s11  ;;  %908 = vrot.lane.b32.xlu0 %v4588_v46, %s4434_s11 }
  0xc9   : > { %v5149_v42 = vpop.permute.xlu2 %809 }
  0xca   : > { %8692 = vst [vmem:[#allocation92_spill] sm:$0xff] %v5149_v42  ;;  %v5151_v12 = vpop.permute.xlu1 %758  ;;  %v5153_v32 = vpop.permute.xlu0 %762 }
  0xcb   : > { %8693 = vst [vmem:[#allocation93_spill] sm:$0xff] %v5151_v12 }
  0xcc   : > { %8694 = vst [vmem:[#allocation94_spill] sm:$0xff] %v5153_v32 }
  0xcf   : > { %912 = vrot.lane.b32.xlu2 %v4598_v50, %s4434_s11 }
  0xd0   : > { %910 = vrot.lane.b32.xlu1 %v4601_v51, %s4434_s11  ;;  %914 = vrot.lane.b32.xlu0 %v4628_v2, %s4434_s11 }
  0xd1   : > { %v5161_v28 = vpop.permute.xlu2 %815 }
  0xd2   : > { %8695 = vst [vmem:[#allocation95_spill] sm:$0xff] %v5161_v28  ;;  %v5163_v48 = vpop.permute.xlu1 %764  ;;  %v5165_v10 = vpop.permute.xlu0 %768 }
  0xd3   : > { %8696 = vst [vmem:[#allocation96_spill] sm:$0xff] %v5163_v48 }
  0xd4   : > { %8697 = vst [vmem:[#allocation97_spill] sm:$0xff] %v5165_v10 }
  0xd7   : > { %918 = vrot.lane.b32.xlu2 %v4654_v23, %s4434_s11 }
  0xd8   : > { %916 = vrot.lane.b32.xlu1 %v4625_v63, %s4434_s11  ;;  %920 = vrot.lane.b32.xlu0 %v4663_v33, %s4434_s11 }
  0xd9   : > { %v5173_v32 = vpop.permute.xlu2 %821 }
  0xda   : > { %8698 = vst [vmem:[#allocation98_spill] sm:$0xff] %v5173_v32  ;;  %v5175_v12 = vpop.permute.xlu1 %801  ;;  %v5177_v42 = vpop.permute.xlu0 %805 }
  0xdb   : > { %8699 = vst [vmem:[#allocation99_spill] sm:$0xff] %v5175_v12 }
  0xdc   : > { %8700 = vst [vmem:[#allocation100_spill] sm:$0xff] %v5177_v42 }
  0xdf   : > { %924 = vrot.lane.b32.xlu2 %v4669_v35, %s4434_s11 }
  0xe0   : > { %922 = vrot.lane.b32.xlu1 %v4672_v36, %s4434_s11  ;;  %926 = vrot.lane.b32.xlu0 %v4703_v59, %s4434_s11 }
  0xe1   : > { %v5185_v10 = vpop.permute.xlu2 %827 }
  0xe2   : > { %8701 = vst [vmem:[#allocation101_spill] sm:$0xff] %v5185_v10  ;;  %v5187_v48 = vpop.permute.xlu1 %807  ;;  %v5189_v28 = vpop.permute.xlu0 %811 }
  0xe3   : > { %8702 = vst [vmem:[#allocation102_spill] sm:$0xff] %v5187_v48 }
  0xe4   : > { %8703 = vst [vmem:[#allocation103_spill] sm:$0xff] %v5189_v28 }
  0xe7   : > { %930 = vrot.lane.b32.xlu2 %v4738_v52, %s4434_s11 }
  0xe8   : > { %928 = vrot.lane.b32.xlu1 %v4700_v58, %s4434_s11  ;;  %932 = vrot.lane.b32.xlu0 %v4732_v41, %s4434_s11 }
  0xe9   : > { %v5197_v17 = vpop.permute.xlu2 %833 }
  0xea   : > { %8704 = vst [vmem:[#allocation104_spill] sm:$0xff] %v5197_v17  ;;  %v5199_v42 = vpop.permute.xlu1 %813  ;;  %v5201_v10 = vpop.permute.xlu0 %817 }
  0xeb   : > { %8705 = vst [vmem:[#allocation105_spill] sm:$0xff] %v5199_v42 }
  0xec   : > { %8706 = vst [vmem:[#allocation106_spill] sm:$0xff] %v5201_v10 }
  0xef   : > { %936 = vrot.lane.b32.xlu2 %v4741_v53, %s4434_s11 }
  0xf0   : > { %934 = vrot.lane.b32.xlu1 %v4744_v6, %s4434_s11  ;;  %938 = vrot.lane.b32.xlu0 %v4772_v40, %s4434_s11  ;;  %v5229_v40 = vld [vmem:[%s4515_s9 + $0xf8] sm:$0xff] }
  0xf1   : > { %v5209_v28 = vpop.permute.xlu2 %839 }
  0xf2   : > { %8707 = vst [vmem:[#allocation107_spill] sm:$0xff] %v5209_v28  ;;  %v5211_v48 = vpop.permute.xlu1 %819  ;;  %v5213_v19 = vpop.permute.xlu0 %823  ;;  %v347_v28 = vld [vmem:[%s4515_s9 + $0xf0] sm:$0xff]  ;;  %s4442_s9 = smov 64  }
  0xf3   : > { %8708 = vst [vmem:[#allocation108_spill] sm:$0xff] %v5211_v48  ;;  %v427_v53 = vrot.slane %v347_v28, 7 }
  0xf4   : > { %8709 = vst [vmem:[#allocation109_spill] sm:$0xff] %v5213_v19 }
  0xf5   : > { %v5245_v19 = vsel %vm8452_vm0, 0.0, %v427_v53 }
  0xf6   : > { %8716 = vst [vmem:[#allocation116_spill] sm:$0xff] %v5245_v19 }
  0xf7   : > { %942 = vrot.lane.b32.xlu2 %v4810_v7, %s4434_s11 }
  0xf8   : > { %940 = vrot.lane.b32.xlu1 %v4769_v1, %s4434_s11  ;;  %944 = vrot.lane.b32.xlu0 %v4804_v29, %s4434_s11 }
  0xf9   : > { %v5221_v10 = vpop.permute.xlu2 %845 }
  0xfa   : > { %8710 = vst [vmem:[#allocation110_spill] sm:$0xff] %v5221_v10  ;;  %v5223_v17 = vpop.permute.xlu1 %825  ;;  %v5225_v42 = vpop.permute.xlu0 %829  ;;  %v8418_v10 = vrot.slane %v5229_v40, 7 }
  0xfb   : > { %8711 = vst [vmem:[#allocation111_spill] sm:$0xff] %v5223_v17 }
  0xfc   : > { %8712 = vst [vmem:[#allocation112_spill] sm:$0xff] %v5225_v42  ;;  %v5250_v41 = vsel %vm8452_vm0, %v427_v53, %v8418_v10 }
  0xfd   : > { %8717 = vst [vmem:[#allocation117_spill] sm:$0xff] %v5250_v41 }
  0xff   : > { %948 = vrot.lane.b32.xlu2 %v4813_v9, %s4434_s11 }
 0x100   : > { %946 = vrot.lane.b32.xlu1 %v4816_v8, %s4434_s11  ;;  %950 = vrot.lane.b32.xlu0 %v4844_v62, %s4434_s11  ;;  %v8732_v62 = vld [vmem:[#allocation10_spill] sm:$0xff] }
 0x101   : > { %v5237_v6 = vpop.permute.xlu2 %851 }
 0x102   : > { %8713 = vst [vmem:[#allocation113_spill] sm:$0xff] %v5237_v6  ;;  %v5240_v17 = vpop.permute.xlu1 %831  ;;  %v5242_v42 = vpop.permute.xlu0 %835 }
 0x103   : > { %8714 = vst [vmem:[#allocation114_spill] sm:$0xff] %v5240_v17 }
 0x104   : > { %8715 = vst [vmem:[#allocation115_spill] sm:$0xff] %v5242_v42 }
 0x107   : > { %954 = vrot.lane.b32.xlu2 %v5245_v19, %s4434_s11 }
 0x108   : > { %952 = vrot.lane.b32.xlu1 %v4841_v22, %s4434_s11  ;;  %956 = vrot.lane.b32.xlu0 %v5250_v41, %s4434_s11  ;;  %s4443_s11 = smov 56  }
 0x109   : > { %v5258_v28 = vpop.permute.xlu2 %857 }
 0x10a   : > { %8718 = vst [vmem:[#allocation118_spill] sm:$0xff] %v5258_v28  ;;  %v5260_v42 = vpop.permute.xlu1 %837  ;;  %v5262_v6 = vpop.permute.xlu0 %841 }
 0x10b   : > { %8719 = vst [vmem:[#allocation119_spill] sm:$0xff] %v5260_v42  ;;  %v8727_v42 = vld [vmem:[#allocation8_spill] sm:$0xff] }
 0x10c   : > { %8720 = vst [vmem:[#allocation120_spill] sm:$0xff] %v5262_v6 }
 0x10f   : > { %992 = vrot.lane.b32.xlu2 %v4560_v30, %s4435_s12 }
 0x110   : > { %990 = vrot.lane.b32.xlu1 %v4563_v31, %s4435_s12  ;;  %994 = vrot.lane.b32.xlu0 %v4582_v44, %s4435_s12 }
 0x111   : > { %v5270_v53 = vpop.permute.xlu2 %894 }
 0x112   : > { %8721 = vst [vmem:[#allocation121_spill] sm:$0xff] %v5270_v53  ;;  %v5272_v10 = vpop.permute.xlu1 %843  ;;  %v5274_v17 = vpop.permute.xlu0 %847 }
 0x113   : > { %8722 = vst [vmem:[#allocation122_spill] sm:$0xff] %v5272_v10 }
 0x114   : > { %8723 = vst [vmem:[#allocation123_spill] sm:$0xff] %v5274_v17  ;;  %v8728_v17 = vld [vmem:[#allocation9_spill] sm:$0xff] }
 0x117   : > { %998 = vrot.lane.b32.xlu2 %v4579_v43, %s4435_s12 }
 0x118   : > { %996 = vrot.lane.b32.xlu1 %v4547_v25, %s4435_s12  ;;  %1000 = vrot.lane.b32.xlu0 %v4585_v45, %s4435_s12 }
 0x119   : > { %v5282_v30 = vpop.permute.xlu2 %900 }
 0x11a   : > { %8724 = vst [vmem:[#allocation124_spill] sm:$0xff] %v5282_v30  ;;  %v5284_v31 = vpop.permute.xlu1 %849  ;;  %v5286_v28 = vpop.permute.xlu0 %853 }
 0x11b   : > { %8725 = vst [vmem:[#allocation125_spill] sm:$0xff] %v5284_v31  ;;  %v8734_v31 = vld [vmem:[#allocation12_spill] sm:$0xff] }
 0x11c   : > { %8726 = vst [vmem:[#allocation126_spill] sm:$0xff] %v5286_v28  ;;  %v8733_v28 = vld [vmem:[#allocation11_spill] sm:$0xff] }
 0x11f   : > { %1004 = vrot.lane.b32.xlu2 %v4616_v60, %s4435_s12 }
 0x120   : > { %1002 = vrot.lane.b32.xlu1 %v8727_v42, %s4435_s12  ;;  %1006 = vrot.lane.b32.xlu0 %v8728_v17, %s4435_s12 }
 0x121   : > { %v5294_v10 = vpop.permute.xlu2 %906 }
 0x122   : > { %8729 = vst [vmem:[#allocation8_spill] sm:$0xff] %v5294_v10  ;;  %v5296_v22 = vpop.permute.xlu1 %855  ;;  %v5298_v6 = vpop.permute.xlu0 %859  ;;  %v8738_v10 = vld [vmem:[#allocation14_spill] sm:$0xff] }
 0x123   : > { %8730 = vst [vmem:[#allocation9_spill] sm:$0xff] %v5296_v22  ;;  %v8740_v22 = vld [vmem:[#allocation16_spill] sm:$0xff] }
 0x124   : > { %8731 = vst [vmem:[#allocation127_spill] sm:$0xff] %v5298_v6  ;;  %v8739_v6 = vld [vmem:[#allocation15_spill] sm:$0xff] }
 0x127   : > { %1010 = vrot.lane.b32.xlu2 %v8732_v62, %s4435_s12 }
 0x128   : > { %1008 = vrot.lane.b32.xlu1 %v8733_v28, %s4435_s12  ;;  %1012 = vrot.lane.b32.xlu0 %v8734_v31, %s4435_s12 }
 0x129   : > { %v5306_v30 = vpop.permute.xlu2 %912 }
 0x12a   : > { %8735 = vst [vmem:[#allocation128_spill] sm:$0xff] %v5306_v30  ;;  %v5308_v3 = vpop.permute.xlu1 %861  ;;  %v5310_v16 = vpop.permute.xlu0 %896  ;;  %v8744_v30 = vld [vmem:[#allocation19_spill] sm:$0xff] }
 0x12b   : > { %8736 = vst [vmem:[#allocation129_spill] sm:$0xff] %v5308_v3  ;;  %v8745_v3 = vld [vmem:[#allocation20_spill] sm:$0xff] }
 0x12c   : > { %8737 = vst [vmem:[#allocation130_spill] sm:$0xff] %v5310_v16  ;;  %v8746_v16 = vld [vmem:[#allocation21_spill] sm:$0xff] }
 0x12f   : > { %1016 = vrot.lane.b32.xlu2 %v8738_v10, %s4435_s12 }
 0x130   : > { %1014 = vrot.lane.b32.xlu1 %v8739_v6, %s4435_s12  ;;  %1018 = vrot.lane.b32.xlu0 %v8740_v22, %s4435_s12 }
 0x131   : > { %v5318_v62 = vpop.permute.xlu2 %918 }
 0x132   : > { %8741 = vst [vmem:[#allocation14_spill] sm:$0xff] %v5318_v62  ;;  %v5320_v32 = vpop.permute.xlu1 %898  ;;  %v5322_v31 = vpop.permute.xlu0 %902  ;;  %v8750_v62 = vld [vmem:[#allocation26_spill] sm:$0xff] }
 0x133   : > { %8742 = vst [vmem:[#allocation15_spill] sm:$0xff] %v5320_v32  ;;  %v8752_v32 = vld [vmem:[#allocation28_spill] sm:$0xff] }
 0x134   : > { %8743 = vst [vmem:[#allocation16_spill] sm:$0xff] %v5322_v31  ;;  %v8751_v31 = vld [vmem:[#allocation27_spill] sm:$0xff] }
 0x137   : > { %1022 = vrot.lane.b32.xlu2 %v8744_v30, %s4435_s12 }
 0x138   : > { %1020 = vrot.lane.b32.xlu1 %v8745_v3, %s4435_s12  ;;  %1024 = vrot.lane.b32.xlu0 %v8746_v16, %s4435_s12 }
 0x139   : > { %v5330_v48 = vpop.permute.xlu2 %924 }
 0x13a   : > { %8747 = vst [vmem:[#allocation19_spill] sm:$0xff] %v5330_v48  ;;  %v5332_v9 = vpop.permute.xlu1 %904  ;;  %v5334_v28 = vpop.permute.xlu0 %908  ;;  %v8756_v48 = vld [vmem:[#allocation31_spill] sm:$0xff] }
 0x13b   : > { %8748 = vst [vmem:[#allocation20_spill] sm:$0xff] %v5332_v9  ;;  %v8758_v9 = vld [vmem:[#allocation33_spill] sm:$0xff] }
 0x13c   : > { %8749 = vst [vmem:[#allocation131_spill] sm:$0xff] %v5334_v28  ;;  %v8757_v28 = vld [vmem:[#allocation32_spill] sm:$0xff] }
 0x13f   : > { %1028 = vrot.lane.b32.xlu2 %v8750_v62, %s4435_s12 }
 0x140   : > { %1026 = vrot.lane.b32.xlu1 %v8751_v31, %s4435_s12  ;;  %1030 = vrot.lane.b32.xlu0 %v8752_v32, %s4435_s12 }
 0x141   : > { %v5342_v53 = vpop.permute.xlu2 %930 }
 0x142   : > { %8753 = vst [vmem:[#allocation132_spill] sm:$0xff] %v5342_v53  ;;  %v5344_v12 = vpop.permute.xlu1 %910  ;;  %v5346_v52 = vpop.permute.xlu0 %914 }
 0x143   : > { %8754 = vst [vmem:[#allocation133_spill] sm:$0xff] %v5344_v12 }
 0x144   : > { %8755 = vst [vmem:[#allocation134_spill] sm:$0xff] %v5346_v52 }
 0x147   : > { %1034 = vrot.lane.b32.xlu2 %v8756_v48, %s4435_s12 }
 0x148   : > { %1032 = vrot.lane.b32.xlu1 %v8757_v28, %s4435_s12  ;;  %1036 = vrot.lane.b32.xlu0 %v8758_v9, %s4435_s12  ;;  %v8765_v28 = vrot.slane %v5229_v40, 7  ;;  %v698_v40 = vrot.slane %v5245_v19, 1 }
 0x149   : > { %v5354_v62 = vpop.permute.xlu2 %936 }
 0x14a   : > { %8759 = vst [vmem:[#allocation33_spill] sm:$0xff] %v5354_v62  ;;  %v5356_v31 = vpop.permute.xlu1 %916  ;;  %v5358_v32 = vpop.permute.xlu0 %920  ;;  %v5375_v62 = vsel %vm8452_vm0, %v8765_v28, 0.0 }
 0x14b   : > { %8760 = vst [vmem:[#allocation135_spill] sm:$0xff] %v5356_v31  ;;  %v8767_v31 = vld [vmem:[#allocation43_spill] sm:$0xff] }
 0x14c   : > { %8761 = vst [vmem:[#allocation136_spill] sm:$0xff] %v5358_v32  ;;  %v8766_v32 = vld [vmem:[#allocation41_spill] sm:$0xff] }
 0x14f   : > { %1040 = vrot.lane.b32.xlu2 %v4832_v54, %s4435_s12 }
 0x150   : > { %1038 = vrot.lane.b32.xlu1 %v4835_v21, %s4435_s12  ;;  %1042 = vrot.lane.b32.xlu0 %v4838_v0, %s4435_s12 }
 0x151   : > { %v5366_v53 = vpop.permute.xlu2 %942 }
 0x152   : > { %8762 = vst [vmem:[#allocation137_spill] sm:$0xff] %v5366_v53  ;;  %v5368_v12 = vpop.permute.xlu1 %922  ;;  %v5370_v48 = vpop.permute.xlu0 %926  ;;  %v699_v53 = vrot.slane %v5250_v41, 1 }
 0x153   : > { %8763 = vst [vmem:[#allocation138_spill] sm:$0xff] %v5368_v12  ;;  %v701_v12 = vrot.slane %v5375_v62, 1 }
 0x154   : > { %8764 = vst [vmem:[#allocation139_spill] sm:$0xff] %v5370_v48 }
 0x157   : > { %1046 = vrot.lane.b32.xlu2 %v8766_v32, %s4435_s12  ;;  %v5393_v32 = vsel %vm8453_vm1, %v699_v53, %v701_v12  ;;  %v8777_v12 = vld [vmem:[#allocation48_spill] sm:$0xff] }
 0x158   : > { %1044 = vrot.lane.b32.xlu1 %v4866_v57, %s4435_s12  ;;  %1048 = vrot.lane.b32.xlu0 %v8767_v31, %s4435_s12  ;;  %8771 = vst [vmem:[#allocation143_spill] sm:$0xff] %v5393_v32  ;;  %v5396_v57 = vsel %vm8453_vm1, %v698_v40, %v699_v53  ;;  %v8778_v53 = vld [vmem:[#allocation46_spill] sm:$0xff]  ;;  %v8779_v40 = vld [vmem:[#allocation47_spill] sm:$0xff] }
 0x159   : > { %v5385_v52 = vpop.permute.xlu2 %948  ;;  %8772 = vst [vmem:[#allocation144_spill] sm:$0xff] %v5396_v57 }
 0x15a   : > { %8768 = vst [vmem:[#allocation140_spill] sm:$0xff] %v5385_v52  ;;  %v5388_v48 = vpop.permute.xlu1 %928  ;;  %v5390_v28 = vpop.permute.xlu0 %932  ;;  %v8773_v52 = vld [vmem:[#allocation44_spill] sm:$0xff] }
 0x15b   : > { %8769 = vst [vmem:[#allocation141_spill] sm:$0xff] %v5388_v48 }
 0x15c   : > { %8770 = vst [vmem:[#allocation142_spill] sm:$0xff] %v5390_v28 }
 0x15f   : > { %1052 = vrot.lane.b32.xlu2 %v5393_v32, %s4435_s12 }
 0x160   : > { %1050 = vrot.lane.b32.xlu1 %v5396_v57, %s4435_s12  ;;  %1086 = vrot.lane.b32.xlu0 %v8773_v52, %s4436_s13 }
 0x161   : > { %v5404_v31 = vpop.permute.xlu2 %954 }
 0x162   : > { %8774 = vst [vmem:[#allocation44_spill] sm:$0xff] %v5404_v31  ;;  %v5406_v48 = vpop.permute.xlu1 %934  ;;  %v5408_v28 = vpop.permute.xlu0 %938 }
 0x163   : > { %8775 = vst [vmem:[#allocation145_spill] sm:$0xff] %v5406_v48 }
 0x164   : > { %8776 = vst [vmem:[#allocation146_spill] sm:$0xff] %v5408_v28  ;;  %v8786_v28 = vld [vmem:[#allocation53_spill] sm:$0xff] }
 0x167   : > { %1090 = vrot.lane.b32.xlu2 %v8777_v12, %s4436_s13 }
 0x168   : > { %1088 = vrot.lane.b32.xlu1 %v8778_v53, %s4436_s13  ;;  %1092 = vrot.lane.b32.xlu0 %v8779_v40, %s4436_s13 }
 0x169   : > { %v5416_v32 = vpop.permute.xlu2 %992 }
 0x16a   : > { %8780 = vst [vmem:[#allocation48_spill] sm:$0xff] %v5416_v32  ;;  %v5418_v57 = vpop.permute.xlu1 %940  ;;  %v5420_v52 = vpop.permute.xlu0 %944 }
 0x16b   : > { %8781 = vst [vmem:[#allocation46_spill] sm:$0xff] %v5418_v57  ;;  %v8788_v57 = vld [vmem:[#allocation52_spill] sm:$0xff] }
 0x16c   : > { %8782 = vst [vmem:[#allocation47_spill] sm:$0xff] %v5420_v52  ;;  %v8787_v52 = vld [vmem:[#allocation50_spill] sm:$0xff] }
 0x16f   : > { %1096 = vrot.lane.b32.xlu2 %v4925_v37, %s4436_s13 }
 0x170   : > { %1094 = vrot.lane.b32.xlu1 %v4907_v56, %s4436_s13  ;;  %1098 = vrot.lane.b32.xlu0 %v4922_v20, %s4436_s13 }
 0x171   : > { %v5428_v31 = vpop.permute.xlu2 %998 }
 0x172   : > { %8783 = vst [vmem:[#allocation147_spill] sm:$0xff] %v5428_v31  ;;  %v5430_v53 = vpop.permute.xlu1 %946  ;;  %v5432_v48 = vpop.permute.xlu0 %950 }
 0x173   : > { %8784 = vst [vmem:[#allocation148_spill] sm:$0xff] %v5430_v53 }
 0x174   : > { %8785 = vst [vmem:[#allocation149_spill] sm:$0xff] %v5432_v48  ;;  %v8792_v48 = vld [vmem:[#allocation54_spill] sm:$0xff] }
 0x177   : > { %1102 = vrot.lane.b32.xlu2 %v8786_v28, %s4436_s13 }
 0x178   : > { %1100 = vrot.lane.b32.xlu1 %v8787_v52, %s4436_s13  ;;  %1104 = vrot.lane.b32.xlu0 %v8788_v57, %s4436_s13 }
 0x179   : > { %v5440_v32 = vpop.permute.xlu2 %1004 }
 0x17a   : > { %8789 = vst [vmem:[#allocation50_spill] sm:$0xff] %v5440_v32  ;;  %v5442_v0 = vpop.permute.xlu1 %952  ;;  %v5444_v8 = vpop.permute.xlu0 %956  ;;  %v8796_v32 = vld [vmem:[#allocation63_spill] sm:$0xff] }
 0x17b   : > { %8790 = vst [vmem:[#allocation150_spill] sm:$0xff] %v5442_v0  ;;  %v8798_v0 = vld [vmem:[#allocation62_spill] sm:$0xff] }
 0x17c   : > { %8791 = vst [vmem:[#allocation151_spill] sm:$0xff] %v5444_v8  ;;  %v8797_v8 = vld [vmem:[#allocation58_spill] sm:$0xff] }
 0x17f   : > { %1108 = vrot.lane.b32.xlu2 %v4970_v11, %s4436_s13 }
 0x180   : > { %1106 = vrot.lane.b32.xlu1 %v8792_v48, %s4436_s13  ;;  %1110 = vrot.lane.b32.xlu0 %v4967_v13, %s4436_s13 }
 0x181   : > { %v5452_v53 = vpop.permute.xlu2 %1010 }
 0x182   : > { %8793 = vst [vmem:[#allocation152_spill] sm:$0xff] %v5452_v53  ;;  %v5454_v31 = vpop.permute.xlu1 %990  ;;  %v5456_v57 = vpop.permute.xlu0 %994 }
 0x183   : > { %8794 = vst [vmem:[#allocation153_spill] sm:$0xff] %v5454_v31 }
 0x184   : > { %8795 = vst [vmem:[#allocation154_spill] sm:$0xff] %v5456_v57  ;;  %v8802_v57 = vld [vmem:[#allocation64_spill] sm:$0xff] }
 0x187   : > { %1114 = vrot.lane.b32.xlu2 %v8796_v32, %s4436_s13 }
 0x188   : > { %1112 = vrot.lane.b32.xlu1 %v8797_v8, %s4436_s13  ;;  %1116 = vrot.lane.b32.xlu0 %v8798_v0, %s4436_s13 }
 0x189   : > { %v5464_v11 = vpop.permute.xlu2 %1016 }
 0x18a   : > { %8799 = vst [vmem:[#allocation63_spill] sm:$0xff] %v5464_v11  ;;  %v5466_v48 = vpop.permute.xlu1 %996  ;;  %v5468_v28 = vpop.permute.xlu0 %1000  ;;  %v8807_v11 = vld [vmem:[#allocation74_spill] sm:$0xff] }
 0x18b   : > { %8800 = vst [vmem:[#allocation58_spill] sm:$0xff] %v5466_v48 }
 0x18c   : > { %8801 = vst [vmem:[#allocation62_spill] sm:$0xff] %v5468_v28  ;;  %v8806_v28 = vld [vmem:[#allocation70_spill] sm:$0xff] }
 0x18f   : > { %1120 = vrot.lane.b32.xlu2 %v5021_v18, %s4436_s13 }
 0x190   : > { %1118 = vrot.lane.b32.xlu1 %v8802_v57, %s4436_s13  ;;  %1122 = vrot.lane.b32.xlu0 %v5018_v4, %s4436_s13 }
 0x191   : > { %v5476_v53 = vpop.permute.xlu2 %1022 }
 0x192   : > { %8803 = vst [vmem:[#allocation64_spill] sm:$0xff] %v5476_v53  ;;  %v5478_v31 = vpop.permute.xlu1 %1002  ;;  %v5480_v16 = vpop.permute.xlu0 %1006 }
 0x193   : > { %8804 = vst [vmem:[#allocation155_spill] sm:$0xff] %v5478_v31 }
 0x194   : > { %8805 = vst [vmem:[#allocation156_spill] sm:$0xff] %v5480_v16  ;;  %v8810_v16 = vld [vmem:[#allocation76_spill] sm:$0xff] }
 0x197   : > { %1126 = vrot.lane.b32.xlu2 %v5047_v15, %s4436_s13 }
 0x198   : > { %1124 = vrot.lane.b32.xlu1 %v8806_v28, %s4436_s13  ;;  %1128 = vrot.lane.b32.xlu0 %v8807_v11, %s4436_s13 }
 0x199   : > { %v5488_v48 = vpop.permute.xlu2 %1028 }
 0x19a   : > { %8808 = vst [vmem:[#allocation70_spill] sm:$0xff] %v5488_v48  ;;  %v5490_v18 = vpop.permute.xlu1 %1008  ;;  %v5492_v4 = vpop.permute.xlu0 %1012  ;;  %v703_v48 = vrot.slane %v5245_v19, 2 }
 0x19b   : > { %8809 = vst [vmem:[#allocation157_spill] sm:$0xff] %v5490_v18  ;;  %v704_v18 = vrot.slane %v5250_v41, 2 }
 0x19f   : > { %1132 = vrot.lane.b32.xlu2 %v5072_v55, %s4436_s13 }
 0x1a0   : > { %1130 = vrot.lane.b32.xlu1 %v8810_v16, %s4436_s13  ;;  %1134 = vrot.lane.b32.xlu0 %v5069_v47, %s4436_s13 }
 0x1a1   : > { %v5500_v53 = vpop.permute.xlu2 %1034 }
 0x1a2   : > { %8811 = vst [vmem:[#allocation158_spill] sm:$0xff] %v5500_v53  ;;  %v5502_v31 = vpop.permute.xlu1 %1014  ;;  %v5504_v11 = vpop.permute.xlu0 %1018 }
 0x1a3   : > { %8812 = vst [vmem:[#allocation159_spill] sm:$0xff] %v5504_v11  ;;  %v5521_v11 = vsel %vm8454_vm2, %v703_v48, %v704_v18 }
 0x1a7   : > { %1138 = vrot.lane.b32.xlu2 %v5098_v34, %s4436_s13 }
 0x1a8   : > { %1136 = vrot.lane.b32.xlu1 %v5075_v39, %s4436_s13  ;;  %1140 = vrot.lane.b32.xlu0 %v5095_v38, %s4436_s13 }
 0x1a9   : > { %v5514_v16 = vpop.permute.xlu2 %1040 }
 0x1aa   : > { %8813 = vst [vmem:[#allocation160_spill] sm:$0xff] %v5514_v16  ;;  %v5516_v53 = vpop.permute.xlu1 %1020  ;;  %v5518_v15 = vpop.permute.xlu0 %1024  ;;  %v706_v16 = vrot.slane %v5375_v62, 2 }
 0x1ab   : > { %8814 = vst [vmem:[#allocation161_spill] sm:$0xff] %v5516_v53 }
 0x1ac   : > { %8815 = vst [vmem:[#allocation162_spill] sm:$0xff] %v5518_v15  ;;  %v5537_v48 = vsel %vm8454_vm2, %v704_v18, %v706_v16 }
 0x1af   : > { %1144 = vrot.lane.b32.xlu2 %v5117_v5, %s4436_s13 }
 0x1b0   : > { %1142 = vrot.lane.b32.xlu1 %v5101_v61, %s4436_s13  ;;  %1146 = vrot.lane.b32.xlu0 %v5521_v11, %s4436_s13 }
 0x1b1   : > { %v5529_v19 = vpop.permute.xlu2 %1046 }
 0x1b2   : > { %8816 = vst [vmem:[#allocation163_spill] sm:$0xff] %v5529_v19  ;;  %v5532_v41 = vpop.permute.xlu1 %1026  ;;  %v5534_v53 = vpop.permute.xlu0 %1030 }
 0x1b3   : > { %8817 = vst [vmem:[#allocation164_spill] sm:$0xff] %v5532_v41 }
 0x1b4   : > { %8818 = vst [vmem:[#allocation165_spill] sm:$0xff] %v5534_v53 }
 0x1b7   : > { %1182 = vrot.lane.b32.xlu2 %v4553_v27, %s4437_s14 }
 0x1b8   : > { %1148 = vrot.lane.b32.xlu1 %v5537_v48, %s4436_s13  ;;  %1184 = vrot.lane.b32.xlu0 %v4524_v14, %s4437_s14  ;;  %s312_s13 = scalar_lea.vmem %s8335_s7, %s4381_s26 }
 0x1b9   : > { %v5545_v19 = vpop.permute.xlu2 %1052 }
 0x1ba   : > { %8819 = vst [vmem:[#allocation166_spill] sm:$0xff] %v5545_v19  ;;  %v5547_v62 = vpop.permute.xlu1 %1032  ;;  %v5549_v41 = vpop.permute.xlu0 %1036 }
 0x1bf   : > { %1188 = vrot.lane.b32.xlu2 %v4544_v24, %s4437_s14 }
 0x1c0   : > { %1186 = vrot.lane.b32.xlu1 %v4550_v26, %s4437_s14  ;;  %1190 = vrot.lane.b32.xlu0 %v4595_v49, %s4437_s14 }
 0x1c1   : > { %v5557_v16 = vpop.permute.xlu2 %1090 }
 0x1c2   : > { %v5559_v18 = vpop.permute.xlu1 %1038  ;;  %v5561_v53 = vpop.permute.xlu0 %1042 }
 0x1c3   : > { %8820 = vst [vmem:[#allocation167_spill] sm:$0xff] %v5559_v18 }
 0x1c4   : > { %8821 = vst [vmem:[#allocation168_spill] sm:$0xff] %v5561_v53 }
 0x1c7   : > { %1194 = vrot.lane.b32.xlu2 %v4601_v51, %s4437_s14 }
 0x1c8   : > { %1192 = vrot.lane.b32.xlu1 %v4588_v46, %s4437_s14  ;;  %1196 = vrot.lane.b32.xlu0 %v4598_v50, %s4437_s14 }
 0x1c9   : > { %v5569_v19 = vpop.permute.xlu2 %1096 }
 0x1ca   : > { %v5571_v15 = vpop.permute.xlu1 %1044  ;;  %v5573_v49 = vpop.permute.xlu0 %1048 }
 0x1cb   : > { %8822 = vst [vmem:[#allocation169_spill] sm:$0xff] %v5571_v15 }
 0x1cc   : > { %8823 = vst [vmem:[#allocation170_spill] sm:$0xff] %v5573_v49 }
 0x1cf   : > { %1200 = vrot.lane.b32.xlu2 %v4625_v63, %s4437_s14 }
 0x1d0   : > { %1198 = vrot.lane.b32.xlu1 %v4628_v2, %s4437_s14  ;;  %1202 = vrot.lane.b32.xlu0 %v4654_v23, %s4437_s14 }
 0x1d1   : > { %v5581_v53 = vpop.permute.xlu2 %1102 }
 0x1d2   : > { %8824 = vst [vmem:[#allocation171_spill] sm:$0xff] %v5581_v53  ;;  %v5583_v46 = vpop.permute.xlu1 %1050  ;;  %v5585_v24 = vpop.permute.xlu0 %1086 }
 0x1d3   : > { %8825 = vst [vmem:[#allocation172_spill] sm:$0xff] %v5583_v46 }
 0x1d7   : > { %1206 = vrot.lane.b32.xlu2 %v4672_v36, %s4437_s14 }
 0x1d8   : > { %1204 = vrot.lane.b32.xlu1 %v4663_v33, %s4437_s14  ;;  %1275 = vrot.lane.b32.xlu0 %v4582_v44, %s4438_s15 }
 0x1d9   : > { %v5593_v49 = vpop.permute.xlu2 %1108 }
 0x1da   : > { %v5595_v15 = vpop.permute.xlu1 %1088  ;;  %v5597_v18 = vpop.permute.xlu0 %1092 }
 0x1df   : > { %1295 = vrot.lane.b32.xlu2 %v8739_v6, %s4438_s15 }
 0x1e0   : > { %1368 = vrot.lane.b32.xlu1 %v8777_v12, %s4439_s16  ;;  %1277 = vrot.lane.b32.xlu0 %v4547_v25, %s4438_s15 }
 0x1e1   : > { %v5605_v46 = vpop.permute.xlu2 %1114 }
 0x1e2   : > { %v5607_v53 = vpop.permute.xlu1 %1094  ;;  %v5609_v44 = vpop.permute.xlu0 %1098 }
 0x1e7   : > { %1370 = vrot.lane.b32.xlu2 %v8779_v40, %s4439_s16 }
 0x1e8   : > { %1388 = vrot.lane.b32.xlu1 %v4967_v13, %s4439_s16  ;;  %1297 = vrot.lane.b32.xlu0 %v8738_v10, %s4438_s15 }
 0x1e9   : > { %v5617_v6 = vpop.permute.xlu2 %1120 }
 0x1ea   : > { %8826 = vst [vmem:[#allocation173_spill] sm:$0xff] %v5617_v6  ;;  %v5619_v12 = vpop.permute.xlu1 %1100  ;;  %v5621_v25 = vpop.permute.xlu0 %1104 }
 0x1eb   : > { %8827 = vst [vmem:[#allocation174_spill] sm:$0xff] %v5619_v12 }
 0x1ec   : > { %8828 = vst [vmem:[#allocation175_spill] sm:$0xff] %v5621_v25 }
 0x1ef   : > { %1390 = vrot.lane.b32.xlu2 %v8797_v8, %s4439_s16 }
 0x1f0   : > { %1279 = vrot.lane.b32.xlu1 %v4579_v43, %s4438_s15  ;;  %1372 = vrot.lane.b32.xlu0 %v4907_v56, %s4439_s16 }
 0x1f1   : > { %v5629_v40 = vpop.permute.xlu2 %1126 }
 0x1f2   : > { %8829 = vst [vmem:[#allocation176_spill] sm:$0xff] %v5629_v40  ;;  %v5631_v13 = vpop.permute.xlu1 %1106  ;;  %v5633_v10 = vpop.permute.xlu0 %1110 }
 0x1f7   : > { %1281 = vrot.lane.b32.xlu2 %v4585_v45, %s4438_s15 }
 0x1f8   : > { %1299 = vrot.lane.b32.xlu1 %v8740_v22, %s4438_s15  ;;  %1392 = vrot.lane.b32.xlu0 %v8796_v32, %s4439_s16 }
 0x1f9   : > { %v5641_v8 = vpop.permute.xlu2 %1132 }
 0x1fa   : > { %v5643_v43 = vpop.permute.xlu1 %1112  ;;  %v5645_v56 = vpop.permute.xlu0 %1116 }
 0x1ff   : > { %1374 = vrot.lane.b32.xlu2 %v4925_v37, %s4439_s16 }
 0x200   : > { %1224 = vrot.lane.b32.xlu1 %v4769_v1, %s4437_s14  ;;  %1317 = vrot.lane.b32.xlu0 %v8758_v9, %s4438_s15  ;;  %v8860_v1 = vld [vmem:[#allocation130_spill] sm:$0xff] }
 0x201   : > { %v5653_v45 = vpop.permute.xlu2 %1138 }
 0x202   : > { %8830 = vst [vmem:[#allocation177_spill] sm:$0xff] %v5653_v45  ;;  %v5655_v22 = vpop.permute.xlu1 %1118  ;;  %v5657_v32 = vpop.permute.xlu0 %1122 }
 0x203   : > { %8831 = vst [vmem:[#allocation178_spill] sm:$0xff] %v5655_v22 }
 0x204   : > { %8832 = vst [vmem:[#allocation179_spill] sm:$0xff] %v5657_v32 }
 0x207   : > { %1208 = vrot.lane.b32.xlu2 %v4669_v35, %s4437_s14 }
 0x208   : > { %1410 = vrot.lane.b32.xlu1 %v5072_v55, %s4439_s16  ;;  %1301 = vrot.lane.b32.xlu0 %v8745_v3, %s4438_s15 }
 0x209   : > { %v5665_v37 = vpop.permute.xlu2 %1144 }
 0x20a   : > { %8833 = vst [vmem:[#allocation180_spill] sm:$0xff] %v5665_v37  ;;  %v5667_v40 = vpop.permute.xlu1 %1124  ;;  %v5669_v9 = vpop.permute.xlu0 %1128 }
 0x20b   : > { %8834 = vst [vmem:[#allocation181_spill] sm:$0xff] %v5667_v40 }
 0x20f   : > { %1394 = vrot.lane.b32.xlu2 %v8798_v0, %s4439_s16 }
 0x210   : > { %1283 = vrot.lane.b32.xlu1 %v8727_v42, %s4438_s15  ;;  %1226 = vrot.lane.b32.xlu0 %v4810_v7, %s4437_s14 }
 0x211   : > { %v5677_v32 = vpop.permute.xlu2 %1182 }
 0x212   : > { %v5679_v55 = vpop.permute.xlu1 %1130  ;;  %v5681_v3 = vpop.permute.xlu0 %1134 }
 0x213   : > { %8835 = vst [vmem:[#allocation182_spill] sm:$0xff] %v5681_v3  ;;  %v8862_v3 = vld [vmem:[#allocation48_spill] sm:$0xff] }
 0x217   : > { %1319 = vrot.lane.b32.xlu2 %v4835_v21, %s4438_s15 }
 0x218   : > { %1376 = vrot.lane.b32.xlu1 %v4922_v20, %s4439_s16  ;;  %1412 = vrot.lane.b32.xlu0 %v5069_v47, %s4439_s16 }
 0x219   : > { %v5689_v0 = vpop.permute.xlu2 %1188 }
 0x21a   : > { %v5691_v42 = vpop.permute.xlu1 %1136  ;;  %v5693_v37 = vpop.permute.xlu0 %1140 }
 0x21b   : > { %8836 = vst [vmem:[#allocation183_spill] sm:$0xff] %v5691_v42 }
 0x21c   : > { %8837 = vst [vmem:[#allocation184_spill] sm:$0xff] %v5693_v37 }
 0x21f   : > { %1303 = vrot.lane.b32.xlu2 %v8744_v30, %s4438_s15 }
 0x220   : > { %1210 = vrot.lane.b32.xlu1 %v4703_v59, %s4437_s14  ;;  %1285 = vrot.lane.b32.xlu0 %v4616_v60, %s4438_s15 }
 0x221   : > { %v5701_v21 = vpop.permute.xlu2 %1194 }
 0x222   : > { %v5703_v20 = vpop.permute.xlu1 %1142  ;;  %v5705_v47 = vpop.permute.xlu0 %1146 }
 0x223   : > { %8838 = vst [vmem:[#allocation185_spill] sm:$0xff] %v5703_v20  ;;  %v1727_v20 = vld [vmem:[%s8329_s1 + $0x20] sm:$0xf] }
 0x224   : > { %8839 = vst [vmem:[#allocation186_spill] sm:$0xff] %v5705_v47  ;;  %4209 = vmatpush.msk.msra.mxu0 %vm1829_vm3, %v1727_v20  ;;  %v1726_v47 = vld [vmem:[%s8329_s1 + $0x18] sm:$0xff]  ;;  %4382 = vmatpush.msk.msra.mxu2 %vm1829_vm3, %v1727_v20 }
 0x225   : > { %4383 = vmatpush.msk.msra.mxu3 %vm1829_vm3, %v1727_v20  ;;  %vm8576_vm3 = vcmask 1045509  }
 0x226   : > { %1845 = vmatpush.msra.mxu0 %v1726_v47  ;;  %4384 = vmatpush.msra.mxu2 %v1726_v47 }
 0x227   : > { %1228 = vrot.lane.b32.xlu2 %v4804_v29, %s4437_s14  ;;  %4385 = vmatpush.msra.mxu3 %v1726_v47  ;;  %v8850_v29 = vld [vmem:[#allocation27_spill] sm:$0xff] }
 0x228   : > { %1396 = vrot.lane.b32.xlu1 %v8802_v57, %s4439_s16  ;;  %1378 = vrot.lane.b32.xlu0 %v8787_v52, %s4439_s16  ;;  %v1725_v57 = vld [vmem:[%s8329_s1 + $0x10] sm:$0xff]  ;;  %v1724_v52 = vld [vmem:[%s8329_s1 + $0x8] sm:$0xff] }
 0x229   : > { %v5713_v30 = vpop.permute.xlu2 %1200  ;;  %1846 = vmatpush.msra.mxu0 %v1725_v57  ;;  %4386 = vmatpush.msra.mxu2 %v1725_v57 }
 0x22a   : > { %8840 = vst [vmem:[#allocation187_spill] sm:$0xff] %v5713_v30  ;;  %v5715_v40 = vpop.permute.xlu1 %1148  ;;  %v5717_v60 = vpop.permute.xlu0 %1184  ;;  %4387 = vmatpush.msra.mxu3 %v1725_v57  ;;  %v8845_v57 = vld [vmem:[#allocation53_spill] sm:$0xff] }
 0x22b   : > { %8841 = vst [vmem:[#allocation188_spill] sm:$0xff] %v5715_v40  ;;  %1847 = vmatpush.msra.mxu0 %v1724_v52  ;;  %4388 = vmatpush.msra.mxu2 %v1724_v52 }
 0x22c   : > { %4389 = vmatpush.msra.mxu3 %v1724_v52  ;;  %v8846_v52 = vld [vmem:[#allocation37_spill] sm:$0xff] }
 0x22f   : > { %1414 = vrot.lane.b32.xlu2 %v5075_v39, %s4439_s16  ;;  %v1723_v39 = vld [vmem:[%s8329_s1] sm:$0xff] }
 0x230   : > { %1321 = vrot.lane.b32.xlu1 %v4832_v54, %s4438_s15  ;;  %1212 = vrot.lane.b32.xlu0 %v4700_v58, %s4437_s14  ;;  %v8842_v54 = vld [vmem:[#allocation21_spill] sm:$0xff] }
 0x231   : > { %v5737_v40 = vpop.permute.xlu2 %1206  ;;  %1848 = vmatpush.msra.mxu0 %v1723_v39  ;;  %4390 = vmatpush.msra.mxu2 %v1723_v39  ;;  %v8843_v58 = vld [vmem:[#allocation69_spill] sm:$0xff] }
 0x232   : > { %v5739_v20 = vpop.permute.xlu1 %1186  ;;  %v5741_v47 = vpop.permute.xlu0 %1190  ;;  %4391 = vmatpush.msra.mxu3 %v1723_v39  ;;  %v8847_v39 = vld [vmem:[#allocation38_spill] sm:$0xff] }
 0x237   : > { %1287 = vrot.lane.b32.xlu2 %v8728_v17, %s4438_s15 }
 0x238   : > { %1305 = vrot.lane.b32.xlu1 %v8842_v54, %s4438_s15  ;;  %1398 = vrot.lane.b32.xlu0 %v8843_v58, %s4439_s16  ;;  %v8849_v58 = vld [vmem:[#allocation23_spill] sm:$0xff] }
 0x239   : > { %v1296_v37 = vpop.permute.xlu2 %1295 }
 0x23a   : > { %v5752_v30 = vpop.permute.xlu1 %1192  ;;  %v5754_v45 = vpop.permute.xlu0 %1196 }
 0x23b   : > { %8844 = vst [vmem:[#allocation21_spill] sm:$0xff] %v5754_v45  ;;  %v8855_v45 = vld [vmem:[#allocation68_spill] sm:$0xff] }
 0x23f   : > { %1380 = vrot.lane.b32.xlu2 %v8845_v57, %s4439_s16 }
 0x240   : > { %1230 = vrot.lane.b32.xlu1 %v8846_v52, %s4437_s14  ;;  %1323 = vrot.lane.b32.xlu0 %v8847_v39, %s4438_s15  ;;  %v8851_v39 = vld [vmem:[#allocation55_spill] sm:$0xff] }
 0x241   : > { %v1371_v17 = vpop.permute.xlu2 %1370  ;;  %v1462_v7 = vsel %vm1461_vm4, 0.0, %v8851_v39  ;;  %v8856_v39 = vld [vmem:[#allocation11_spill] sm:$0xff] }
 0x242   : > { %v5762_v25 = vpop.permute.xlu1 %1198  ;;  %v1203_v54 = vpop.permute.xlu0 %1202 }
 0x243   : > { %8848 = vst [vmem:[#allocation69_spill] sm:$0xff] %v5762_v25  ;;  %v8852_v25 = vld [vmem:[#allocation99_spill] sm:$0xff] }
 0x244   : > { %v1494_v6 = vsel %vm1493_vm6, %v1462_v7, %v8852_v25  ;;  %v8857_v7 = vld [vmem:[#allocation36_spill] sm:$0xff] }
 0x247   : > { %1214 = vrot.lane.b32.xlu2 %v8849_v58, %s4437_s14  ;;  %v8853_v58 = vld [vmem:[#allocation121_spill] sm:$0xff] }
 0x248   : > { %1416 = vrot.lane.b32.xlu1 %v5098_v34, %s4439_s16  ;;  %1307 = vrot.lane.b32.xlu0 %v8850_v29, %s4438_s15  ;;  %v1526_v35 = vsel %vm1525_vm5, %v1494_v6, %v8853_v58  ;;  %v8854_v34 = vld [vmem:[#allocation153_spill] sm:$0xff] }
 0x249   : > { %v5770_v57 = vpop.permute.xlu2 %1390  ;;  %v1559_v29 = vsel %vm1558_vm7, %v1526_v35, %v8854_v34  ;;  %v8858_v35 = vld [vmem:[#allocation73_spill] sm:$0xff] }
 0x24a   : > { %v1205_v59 = vpop.permute.xlu1 %1204  ;;  %v1276_v52 = vpop.permute.xlu0 %1275  ;;  %v1592_v12 = vsel %vm8450_vm9, %v1559_v29, %v5585_v24 }
 0x24b   : > { %v1625_v25 = vsel %vm1624_vm8, %v1592_v12, %v5677_v32  ;;  %v1527_v12 = vsel %vm1525_vm5, %v1494_v6, %v8860_v1  ;;  %v8861_v32 = vld [vmem:[#allocation134_spill] sm:$0xff] }
 0x24c   : > { %v1658_v24 = vsel %vm1657_vm11, %v1625_v25, %v1276_v52 }
 0x24f   : > { %1400 = vrot.lane.b32.xlu2 %v8855_v45, %s4439_s16  ;;  %v1471_v45 = vsel %vm1461_vm4, %v4601_v51, %v8858_v35  ;;  %v1560_v51 = vsel %vm1558_vm7, %v1527_v12, %v8862_v3  ;;  %v8863_v35 = vld [vmem:[#allocation152_spill] sm:$0xff] }
 0x250   : > { %1289 = vrot.lane.b32.xlu1 %v8856_v39, %s4438_s15  ;;  %1232 = vrot.lane.b32.xlu0 %v8857_v7, %s4437_s14  ;;  %v8859_v39 = vld [vmem:[#allocation108_spill] sm:$0xff]  ;;  %v1593_v25 = vsel %vm8450_vm9, %v1560_v51, %v5595_v15 }
 0x251   : > { %v5790_v58 = vpop.permute.xlu2 %1281  ;;  %v1503_v42 = vsel %vm1493_vm6, %v1471_v45, %v8859_v39  ;;  %v1626_v1 = vsel %vm1624_vm8, %v1593_v25, %v5717_v60  ;;  %v8865_v3 = vld [vmem:[#allocation52_spill] sm:$0xff] }
 0x252   : > { %v1369_v34 = vpop.permute.xlu1 %1368  ;;  %v1278_v29 = vpop.permute.xlu0 %1277  ;;  %v1536_v22 = vsel %vm1525_vm5, %v1503_v42, %v8861_v32  ;;  %v8864_v42 = vld [vmem:[#allocation42_spill] sm:$0xff]  ;;  %v8868_v32 = vld [vmem:[#allocation135_spill] sm:$0xff] }
 0x253   : > { %v1691_v7 = vsel %vm1690_vm10, %v1658_v24, %v1369_v34  ;;  %v1569_v52 = vsel %vm1558_vm7, %v1536_v22, %v8863_v35  ;;  %v8866_v22 = vld [vmem:[#allocation78_spill] sm:$0xff] }
 0x254   : > { %4210 = vmatmul.msk.f32.vlgmr.msra.gmra.mxu0 %vm1732_vm12, %v1691_v7  ;;  %v1602_v45 = vsel %vm8450_vm9, %v1569_v52, %v5631_v13  ;;  %v1659_v7 = vsel %vm1657_vm11, %v1626_v1, %v1278_v29  ;;  %v1472_v13 = vsel %vm1461_vm4, %v4598_v50, %v8866_v22  ;;  %v8867_v34 = vld [vmem:[#allocation98_spill] sm:$0xff]  ;;  %v8870_v50 = vld [vmem:[#allocation3_spill] sm:$0xff]  ;;  %v8871_v52 = vld [vmem:[#allocation89_spill] sm:$0xff] }
 0x255   : > { %v1635_v6 = vsel %vm1624_vm8, %v1602_v45, %v1203_v54  ;;  %v1504_v39 = vsel %vm1493_vm6, %v1472_v13, %v8867_v34  ;;  %v1692_v29 = vsel %vm1690_vm10, %v1659_v7, %v1371_v17  ;;  %v8872_v45 = vld [vmem:[#allocation15_spill] sm:$0xff]  ;;  %v8874_v7 = vld [vmem:[#allocation154_spill] sm:$0xff] }
 0x256   : > { %v1668_v54 = vsel %vm1657_vm11, %v1635_v6, %v1296_v37  ;;  %v1537_v51 = vsel %vm1525_vm5, %v1504_v39, %v8868_v32  ;;  %v8876_v13 = vld [vmem:[#allocation10_spill] sm:$0xff] }
 0x257   : > { %1325 = vrot.lane.b32.xlu2 %v8864_v42, %s4438_s15  ;;  %v1570_v37 = vsel %vm1558_vm7, %v1537_v51, %v5492_v4  ;;  %v8873_v42 = vld [vmem:[#allocation26_spill] sm:$0xff]  ;;  %v8879_v51 = vld [vmem:[#allocation4_spill] sm:$0xff] }
 0x258   : > { %1382 = vrot.lane.b32.xlu1 %v8865_v3, %s4439_s16  ;;  %1418 = vrot.lane.b32.xlu0 %v5095_v38, %s4439_s16  ;;  %v8869_v38 = vld [vmem:[#allocation61_spill] sm:$0xff]  ;;  %v1603_v17 = vsel %vm8450_vm9, %v1570_v37, %v5593_v49  ;;  %v8875_v4 = vld [vmem:[#allocation22_spill] sm:$0xff]  ;;  %v8882_v37 = vld [vmem:[#allocation124_spill] sm:$0xff] }
 0x259   : > { %v1375_v15 = vpop.permute.xlu2 %1374  ;;  %v1463_v35 = vsel %vm1461_vm4, %v8870_v50, %v8869_v38  ;;  %v1636_v6 = vsel %vm1624_vm8, %v1603_v17, %v1205_v59 }
 0x25a   : > { %v1389_v24 = vpop.permute.xlu1 %1388  ;;  %v1298_v60 = vpop.permute.xlu0 %1297  ;;  %v1495_v25 = vsel %vm1493_vm6, %v1463_v35, %v8871_v52  ;;  %v8881_v35 = vld [vmem:[#allocation109_spill] sm:$0xff] }
 0x25b   : > { %v1701_v12 = vsel %vm1690_vm10, %v1668_v54, %v1389_v24  ;;  %v1528_v1 = vsel %vm1525_vm5, %v1495_v25, %v8872_v45  ;;  %v1669_v22 = vsel %vm1657_vm11, %v1636_v6, %v1298_v60  ;;  %v8883_v25 = vld [vmem:[#allocation14_spill] sm:$0xff] }
 0x25c   : > { %4211 = vmatmul.msk.f32.gmra.mxu0 %vm1732_vm12, %v1692_v29  ;;  %4220 = vmatmul.msk.f32.vlgmr.msra.gmra.mxu2 %vm1732_vm12, %v1701_v12  ;;  %v1561_v3 = vsel %vm1558_vm7, %v1528_v1, %v8874_v7  ;;  %v1702_v60 = vsel %vm1690_vm10, %v1669_v22, %v5770_v57  ;;  %v8877_v12 = vld [vmem:[#allocation59_spill] sm:$0xff]  ;;  %v8885_v45 = vld [vmem:[#allocation58_spill] sm:$0xff] }
 0x25d   : > { %v1594_v49 = vsel %vm8450_vm9, %v1561_v3, %v5557_v16  ;;  %v1473_v32 = vsel %vm1461_vm4, %v4628_v2, %v8877_v12  ;;  %v8878_v16 = vld [vmem:[#allocation60_spill] sm:$0xff] }
 0x25e   : > { %v1627_v59 = vsel %vm1624_vm8, %v1594_v49, %v5739_v20  ;;  %v1464_v38 = vsel %vm1461_vm4, %v8879_v51, %v8878_v16  ;;  %v8880_v20 = vld [vmem:[#allocation100_spill] sm:$0xff]  ;;  %v1505_v57 = vsel %vm1493_vm6, %v1473_v32, %v8881_v35  ;;  %v8891_v32 = vld [vmem:[#allocation33_spill] sm:$0xff] }
 0x25f   : > { %1309 = vrot.lane.b32.xlu2 %v8873_v42, %s4438_s15  ;;  %v1496_v50 = vsel %vm1493_vm6, %v1464_v38, %v8880_v20  ;;  %v1538_v17 = vsel %vm1525_vm5, %v1505_v57, %v8883_v25  ;;  %v8884_v2 = vld [vmem:[#allocation40_spill] sm:$0xff]  ;;  %v8886_v42 = vld [vmem:[#allocation54_spill] sm:$0xff]  ;;  %v8893_v20 = vld [vmem:[#allocation111_spill] sm:$0xff] }
 0x260   : > { %1216 = vrot.lane.b32.xlu1 %v8875_v4, %s4437_s14  ;;  %1291 = vrot.lane.b32.xlu0 %v8876_v13, %s4438_s15  ;;  %v1529_v52 = vsel %vm1525_vm5, %v1496_v50, %v8882_v37  ;;  %v1571_v6 = vsel %vm1558_vm7, %v1538_v17, %v5502_v31  ;;  %v8894_v35 = vld [vmem:[#allocation136_spill] sm:$0xff]  ;;  %v8896_v25 = vld [vmem:[#allocation63_spill] sm:$0xff] }
 0x261   : > { %v1209_v24 = vpop.permute.xlu2 %1208  ;;  %v1562_v1 = vsel %vm1558_vm7, %v1529_v52, %v8885_v45  ;;  %v1604_v3 = vsel %vm8450_vm9, %v1571_v6, %v5633_v10  ;;  %v8888_v10 = vld [vmem:[#allocation25_spill] sm:$0xff]  ;;  %v8895_v52 = vld [vmem:[#allocation12_spill] sm:$0xff] }
 0x262   : > { %v1280_v54 = vpop.permute.xlu1 %1279  ;;  %v1373_v34 = vpop.permute.xlu0 %1372  ;;  %v1595_v7 = vsel %vm8450_vm9, %v1562_v1, %v5597_v18  ;;  %v1637_v49 = vsel %vm1624_vm8, %v1604_v3, %v5737_v40  ;;  %v8887_v40 = vld [vmem:[#allocation41_spill] sm:$0xff]  ;;  %v8897_v17 = vld [vmem:[#allocation28_spill] sm:$0xff] }
 0x263   : > { %v1660_v39 = vsel %vm1657_vm11, %v1627_v59, %v1280_v54  ;;  %v1628_v13 = vsel %vm1624_vm8, %v1595_v7, %v5689_v0 }
 0x264   : > { %4221 = vmatmul.msk.f32.gmra.mxu2 %vm1732_vm12, %v1702_v60  ;;  %v1693_v29 = vsel %vm1690_vm10, %v1660_v39, %v1373_v34 }
 0x265   : > { %4212 = vmatmul.msk.f32.gmra.mxu0 %vm1732_vm12, %v1693_v29  ;;  %v8890_v29 = vld [vmem:[#allocation120_spill] sm:$0xff] }
 0x267   : > { %1234 = vrot.lane.b32.xlu2 %v8884_v2, %s4437_s14 }
 0x268   : > { %1402 = vrot.lane.b32.xlu1 %v8806_v28, %s4439_s16  ;;  %1384 = vrot.lane.b32.xlu0 %v8886_v42, %s4439_s16  ;;  %v1661_v28 = vsel %vm1657_vm11, %v1628_v13, %v5790_v58  ;;  %v8889_v58 = vld [vmem:[#allocation77_spill] sm:$0xff] }
 0x269   : > { %v1395_v22 = vpop.permute.xlu2 %1394  ;;  %v1694_v34 = vsel %vm1690_vm10, %v1661_v28, %v1375_v15  ;;  %v1482_v15 = vsel %vm1461_vm4, %v8875_v4, %v8889_v58  ;;  %v8902_v28 = vld [vmem:[#allocation88_spill] sm:$0xff]  ;;  %v8904_v58 = vld [vmem:[#allocation66_spill] sm:$0xff] }
 0x26a   : > { %v1300_v31 = vpop.permute.xlu1 %1299  ;;  %v1393_v59 = vpop.permute.xlu0 %1392  ;;  %v1514_v12 = vsel %vm1493_vm6, %v1482_v15, %v8890_v29  ;;  %v1465_v15 = vsel %vm1461_vm4, %v4553_v27, %v8904_v58  ;;  %v8906_v29 = vld [vmem:[#allocation102_spill] sm:$0xff] }
 0x26b   : > { %v1670_v54 = vsel %vm1657_vm11, %v1637_v49, %v1300_v31  ;;  %v1547_v16 = vsel %vm1525_vm5, %v1514_v12, %v8891_v32  ;;  %v8900_v31 = vld [vmem:[#allocation39_spill] sm:$0xff]  ;;  %v1497_v12 = vsel %vm1493_vm6, %v1465_v15, %v8906_v29  ;;  %v8907_v32 = vld [vmem:[#allocation158_spill] sm:$0xff] }
 0x26c   : > { %v1703_v18 = vsel %vm1690_vm10, %v1670_v54, %v1393_v59  ;;  %v1580_v38 = vsel %vm1558_vm7, %v1547_v16, %v5547_v62  ;;  %v8898_v62 = vld [vmem:[#allocation75_spill] sm:$0xff]  ;;  %v1483_v54 = vsel %vm1461_vm4, %v8888_v10, %v8902_v28  ;;  %v8919_v28 = vld [vmem:[#allocation92_spill] sm:$0xff]  ;;  %v8922_v58 = vld [vmem:[#allocation62_spill] sm:$0xff] }
 0x26d   : > { %4213 = vmatmul.msk.f32.gmra.mxu0 %vm1732_vm12, %v1694_v34  ;;  %4222 = vmatmul.msk.f32.gmra.mxu2 %vm1732_vm12, %v1703_v18  ;;  %v1613_v4 = vsel %vm8450_vm9, %v1580_v38, %v5669_v9  ;;  %v8909_v38 = vld [vmem:[#allocation147_spill] sm:$0xff] }
 0x26e   : > { %v8924_v29 = vld [vmem:[#allocation31_spill] sm:$0xff] }
 0x26f   : > { %1420 = vrot.lane.b32.xlu2 %v5101_v61, %s4439_s16  ;;  %v8892_v61 = vld [vmem:[#allocation79_spill] sm:$0xff] }
 0x270   : > { %1327 = vrot.lane.b32.xlu1 %v8887_v40, %s4438_s15  ;;  %1218 = vrot.lane.b32.xlu0 %v8888_v10, %s4437_s14  ;;  %v1474_v51 = vsel %vm1461_vm4, %v4625_v63, %v8892_v61  ;;  %v8908_v61 = vld [vmem:[#allocation16_spill] sm:$0xff] }
 0x271   : > { %v1320_v0 = vpop.permute.xlu2 %1319  ;;  %v1506_v50 = vsel %vm1493_vm6, %v1474_v51, %v8893_v20  ;;  %v1530_v10 = vsel %vm1525_vm5, %v1497_v12, %v8908_v61 }
 0x272   : > { %v1225_v39 = vpop.permute.xlu1 %1224  ;;  %v1318_v60 = vpop.permute.xlu0 %1317  ;;  %v1539_v57 = vsel %vm1525_vm5, %v1506_v50, %v8894_v35  ;;  %v1563_v20 = vsel %vm1558_vm7, %v1530_v10, %v8909_v38  ;;  %v8910_v50 = vld [vmem:[#allocation24_spill] sm:$0xff]  ;;  %v8925_v38 = vld [vmem:[#allocation51_spill] sm:$0xff] }
 0x273   : > { %v1646_v37 = vsel %vm1624_vm8, %v1613_v4, %v1225_v39  ;;  %v1572_v63 = vsel %vm1558_vm7, %v1539_v57, %v8896_v25  ;;  %v8905_v39 = vld [vmem:[#allocation146_spill] sm:$0xff]  ;;  %v1596_v4 = vsel %vm8450_vm9, %v1563_v20, %v5607_v53  ;;  %v8911_v35 = vld [vmem:[#allocation32_spill] sm:$0xff] }
 0x274   : > { %v1605_v9 = vsel %vm8450_vm9, %v1572_v63, %v5643_v43  ;;  %v1679_v6 = vsel %vm1657_vm11, %v1646_v37, %v1318_v60  ;;  %v8899_v43 = vld [vmem:[#allocation57_spill] sm:$0xff] }
 0x275   : > { %v1638_v1 = vsel %vm1624_vm8, %v1605_v9, %v1209_v24  ;;  %v8901_v24 = vld [vmem:[#allocation43_spill] sm:$0xff] }
 0x277   : > { %1293 = vrot.lane.b32.xlu2 %v8895_v52, %s4438_s15 }
 0x278   : > { %1311 = vrot.lane.b32.xlu1 %v8897_v17, %s4438_s15  ;;  %1404 = vrot.lane.b32.xlu0 %v8898_v62, %s4439_s16  ;;  %v8914_v62 = vld [vmem:[#allocation144_spill] sm:$0xff] }
 0x279   : > { %v5939_v45 = vpop.permute.xlu2 %1303 }
 0x27a   : > { %v1411_v42 = vpop.permute.xlu1 %1410  ;;  %v1302_v7 = vpop.permute.xlu0 %1301 }
 0x27b   : > { %v1671_v3 = vsel %vm1657_vm11, %v1638_v1, %v1302_v7  ;;  %v1712_v13 = vsel %vm1690_vm10, %v1679_v6, %v1411_v42  ;;  %v8915_v1 = vld [vmem:[#allocation81_spill] sm:$0xff] }
 0x27c   : > { %4231 = vmatmul.msk.f32.vlgmr.msra.gmra.mxu3 %vm1732_vm12, %v1712_v13  ;;  %v1704_v49 = vsel %vm1690_vm10, %v1671_v3, %v1395_v22  ;;  %v8903_v22 = vld [vmem:[#allocation122_spill] sm:$0xff]  ;;  %v8916_v7 = vld [vmem:[#allocation101_spill] sm:$0xff] }
 0x27d   : > { %4223 = vmatmul.msk.f32.gmra.mxu2 %vm1732_vm12, %v1704_v49  ;;  %v1515_v40 = vsel %vm1493_vm6, %v1483_v54, %v8903_v22  ;;  %v8917_v13 = vld [vmem:[#allocation49_spill] sm:$0xff]  ;;  %v8921_v22 = vld [vmem:[#allocation20_spill] sm:$0xff] }
 0x27e   : > { %v1548_v60 = vsel %vm1525_vm5, %v1515_v40, %v8905_v39  ;;  %v1466_v49 = vsel %vm1461_vm4, %v4524_v14, %v8917_v13  ;;  %v8923_v39 = vld [vmem:[#allocation30_spill] sm:$0xff] }
 0x27f   : > { %1386 = vrot.lane.b32.xlu2 %v8899_v43, %s4439_s16  ;;  %v1581_v16 = vsel %vm1558_vm7, %v1548_v60, %v8907_v32  ;;  %v8918_v43 = vld [vmem:[#allocation138_spill] sm:$0xff]  ;;  %v1498_v54 = vsel %vm1493_vm6, %v1466_v49, %v8919_v28  ;;  %v8936_v49 = vld [vmem:[#allocation112_spill] sm:$0xff]  ;;  %v8939_v28 = vld [vmem:[#allocation161_spill] sm:$0xff] }
 0x280   : > { %1236 = vrot.lane.b32.xlu1 %v8900_v31, %s4437_s14  ;;  %1329 = vrot.lane.b32.xlu0 %v8901_v24, %s4438_s15  ;;  %v1614_v51 = vsel %vm8450_vm9, %v1581_v16, %v5679_v55  ;;  %v1629_v55 = vsel %vm1624_vm8, %v1596_v4, %v5741_v47  ;;  %v8913_v47 = vld [vmem:[#allocation74_spill] sm:$0xff] }
 0x281   : > { %v5954_v59 = vpop.permute.xlu2 %1228 }
 0x282   : > { %v1284_v34 = vpop.permute.xlu1 %1283  ;;  %v1227_v18 = vpop.permute.xlu0 %1226 }
 0x283   : > { %v1647_v27 = vsel %vm1624_vm8, %v1614_v51, %v1227_v18  ;;  %v1662_v37 = vsel %vm1657_vm11, %v1629_v55, %v1284_v34  ;;  %v8920_v34 = vld [vmem:[#allocation159_spill] sm:$0xff]  ;;  %v8929_v55 = vld [vmem:[#allocation8_spill] sm:$0xff] }
 0x284   : > { %v1680_v63 = vsel %vm1657_vm11, %v1647_v27, %v1320_v0  ;;  %v1475_v0 = vsel %vm1461_vm4, %v4654_v23, %v8915_v1  ;;  %v1531_v23 = vsel %vm1525_vm5, %v1498_v54, %v8921_v22  ;;  %v8927_v27 = vld [vmem:[#allocation103_spill] sm:$0xff] }
 0x285   : > { %v1507_v3 = vsel %vm1493_vm6, %v1475_v0, %v8916_v7  ;;  %v1564_v15 = vsel %vm1558_vm7, %v1531_v23, %v8922_v58 }
 0x286   : > { %v1540_v24 = vsel %vm1525_vm5, %v1507_v3, %v8918_v43  ;;  %v1597_v60 = vsel %vm8450_vm9, %v1564_v15, %v5569_v19 }
 0x287   : > { %1220 = vrot.lane.b32.xlu2 %v8910_v50, %s4437_s14  ;;  %v1573_v18 = vsel %vm1558_vm7, %v1540_v24, %v8920_v34  ;;  %v8938_v24 = vmov 0.0  }
 0x288   : > { %1422 = vrot.lane.b32.xlu1 %v5117_v5, %s4439_s16  ;;  %1313 = vrot.lane.b32.xlu0 %v8911_v35, %s4438_s15  ;;  %v8912_v5 = vld [vmem:[#allocation116_spill] sm:$0xff]  ;;  %v1606_v40 = vsel %vm8450_vm9, %v1573_v18, %v5605_v46  ;;  %v1630_v46 = vsel %vm1624_vm8, %v1597_v60, %v5752_v30  ;;  %v8926_v30 = vld [vmem:[#allocation90_spill] sm:$0xff] }
 0x289   : > { %v1415_v57 = vpop.permute.xlu2 %1414  ;;  %v1484_v20 = vsel %vm1461_vm4, %v8910_v50, %v8926_v30  ;;  %v8948_v30 = vld [vmem:[#allocation182_spill] sm:$0xff] }
 0x28a   : > { %v1377_v52 = vpop.permute.xlu1 %1376  ;;  %v1413_v25 = vpop.permute.xlu0 %1412 }
 0x28b   : > { %v1695_v17 = vsel %vm1690_vm10, %v1662_v37, %v1377_v52  ;;  %v1713_v53 = vsel %vm1690_vm10, %v1680_v63, %v1413_v25  ;;  %v8930_v52 = vld [vmem:[#allocation46_spill] sm:$0xff]  ;;  %v8931_v25 = vld [vmem:[#allocation155_spill] sm:$0xff] }
 0x28c   : > { %4214 = vmatmul.msk.f32.gmra.mxu0 %vm1732_vm12, %v1695_v17  ;;  %4232 = vmatmul.msk.f32.gmra.mxu3 %vm1732_vm12, %v1713_v53  ;;  %v8932_v17 = vld [vmem:[#allocation117_spill] sm:$0xff] }
 0x28f   : > { %1238 = vrot.lane.b32.xlu2 %v8912_v5, %s4437_s14  ;;  %v8933_v5 = vld [vmem:[#allocation76_spill] sm:$0xff] }
 0x290   : > { %1406 = vrot.lane.b32.xlu1 %v8913_v47, %s4439_s16  ;;  %1331 = vrot.lane.b32.xlu0 %v8914_v62, %s4438_s15  ;;  %v8934_v47 = vld [vmem:[#allocation143_spill] sm:$0xff] }
 0x291   : > { %v1288_v9 = vpop.permute.xlu2 %1287 }
 0x292   : > { %v1211_v6 = vpop.permute.xlu1 %1210  ;;  %v1286_v42 = vpop.permute.xlu0 %1285 }
 0x293   : > { %v1639_v14 = vsel %vm1624_vm8, %v1606_v40, %v1211_v6  ;;  %v1663_v32 = vsel %vm1657_vm11, %v1630_v46, %v1286_v42  ;;  %v8943_v46 = vld [vmem:[#allocation123_spill] sm:$0xff] }
 0x294   : > { %v1672_v10 = vsel %vm1657_vm11, %v1639_v14, %v5939_v45  ;;  %v8928_v45 = vld [vmem:[#allocation110_spill] sm:$0xff]  ;;  %v8942_v14 = vld [vmem:[#allocation80_spill] sm:$0xff] }
 0x295   : > { %v1516_v35 = vsel %vm1493_vm6, %v1484_v20, %v8928_v45  ;;  %v8949_v20 = vld [vmem:[#allocation139_spill] sm:$0xff]  ;;  %v8950_v45 = vld [vmem:[#allocation64_spill] sm:$0xff] }
 0x297   : > { %1222 = vrot.lane.b32.xlu2 %v8923_v39, %s4437_s14 }
 0x298   : > { %1424 = vrot.lane.b32.xlu1 %v5521_v11, %s4439_s16  ;;  %1315 = vrot.lane.b32.xlu0 %v8924_v29, %s4438_s15  ;;  %v1467_v11 = vsel %vm1461_vm4, %v4550_v26, %v8925_v38  ;;  %v1549_v26 = vsel %vm1525_vm5, %v1516_v35, %v8930_v52  ;;  %v8947_v38 = vld [vmem:[#allocation114_spill] sm:$0xff] }
 0x299   : > { %v1381_v12 = vpop.permute.xlu2 %1380  ;;  %v1499_v4 = vsel %vm1493_vm6, %v1467_v11, %v8927_v27  ;;  %v1582_v50 = vsel %vm1558_vm7, %v1549_v26, %v5549_v41 }
 0x29a   : > { %v1397_v16 = vpop.permute.xlu1 %1396  ;;  %v1379_v61 = vpop.permute.xlu0 %1378  ;;  %v1532_v37 = vsel %vm1525_vm5, %v1499_v4, %v8929_v55  ;;  %v1615_v62 = vsel %vm8450_vm9, %v1582_v50, %v5641_v8  ;;  %v8935_v8 = vld [vmem:[#allocation65_spill] sm:$0xff] }
 0x29b   : > { %v1696_v51 = vsel %vm1690_vm10, %v1663_v32, %v1379_v61  ;;  %v1705_v19 = vsel %vm1690_vm10, %v1672_v10, %v1397_v16  ;;  %v1565_v63 = vsel %vm1558_vm7, %v1532_v37, %v8931_v25  ;;  %v1648_v6 = vsel %vm1624_vm8, %v1615_v62, %v5954_v59  ;;  %v8944_v32 = vld [vmem:[#allocation137_spill] sm:$0xff]  ;;  %v8945_v61 = vld [vmem:[#allocation82_spill] sm:$0xff] }
 0x29c   : > { %4215 = vmatmul.msk.f32.gmra.mxu0 %vm1732_vm12, %v1696_v51  ;;  %4224 = vmatmul.msk.f32.gmra.mxu2 %vm1732_vm12, %v1705_v19  ;;  %v1598_v53 = vsel %vm8450_vm9, %v1565_v63, %v5609_v44  ;;  %v1477_v10 = vsel %vm1461_vm4, %v4672_v36, %v8945_v61  ;;  %v8946_v51 = vld [vmem:[#allocation167_spill] sm:$0xff]  ;;  %v8951_v36 = vld [vmem:[#allocation178_spill] sm:$0xff]  ;;  %v8953_v62 = vld [vmem:[#allocation29_spill] sm:$0xff] }
 0x29d   : > { %v1631_v1 = vsel %vm1624_vm8, %v1598_v53, %v5701_v21  ;;  %v1476_v21 = vsel %vm1461_vm4, %v4663_v33, %v8935_v8  ;;  %v1509_v11 = vsel %vm1493_vm6, %v1477_v10, %v8947_v38  ;;  %v8965_v10 = vld [vmem:[#allocation84_spill] sm:$0xff] }
 0x29e   : > { %v1664_v41 = vsel %vm1657_vm11, %v1631_v1, %v1288_v9  ;;  %v1508_v59 = vsel %vm1493_vm6, %v1476_v21, %v8936_v49  ;;  %v8937_v9 = vld [vmem:[#allocation19_spill] sm:$0xff]  ;;  %v1542_v27 = vsel %vm1525_vm5, %v1509_v11, %v8949_v20  ;;  %v8958_v21 = vld [vmem:[#allocation105_spill] sm:$0xff] }
 0x29f   : > { %1240 = vrot.lane.b32.xlu2 %v8932_v17, %s4437_s14  ;;  %v1697_v3 = vsel %vm1690_vm10, %v1664_v41, %v1381_v12  ;;  %v1541_v43 = vsel %vm1525_vm5, %v1508_v59, %v8937_v9  ;;  %v1575_v35 = vsel %vm1558_vm7, %v1542_v27, %v8950_v45  ;;  %v8954_v41 = vld [vmem:[#allocation125_spill] sm:$0xff]  ;;  %v8959_v59 = vld [vmem:[#allocation160_spill] sm:$0xff]  ;;  %v8969_v20 = vld [vmem:[#allocation7_spill] sm:$0xff] }
 0x2a0   : > { %1408 = vrot.lane.b32.xlu1 %v8933_v5, %s4439_s16  ;;  %1333 = vrot.lane.b32.xlu0 %v8934_v47, %s4438_s15  ;;  %v1574_v54 = vsel %vm1558_vm7, %v1541_v43, %v8939_v28  ;;  %v1608_v55 = vsel %vm8450_vm9, %v1575_v35, %v8951_v36  ;;  %v8952_v47 = vld [vmem:[#allocation91_spill] sm:$0xff]  ;;  %v6180_v35 = vld [vmem:[%s8330_s2] ss:$0 sm:$0xff] }
 0x2a1   : > { %v1215_v0 = vpop.permute.xlu2 %1214  ;;  %v1607_v33 = vsel %vm8450_vm9, %v1574_v54, %v5645_v56  ;;  %v1485_v56 = vsel %vm1461_vm4, %v8923_v39, %v8942_v14  ;;  %v1486_v1 = vsel %vm1461_vm4, %v8953_v62, %v8952_v47  ;;  %v8960_v43 = vld [vmem:[#allocation131_spill] sm:$0xff]  ;;  %v8975_v47 = vld [vmem:[#allocation156_spill] sm:$0xff] }
 0x2a2   : > { %v1322_v42 = vpop.permute.xlu1 %1321  ;;  %v1213_v44 = vpop.permute.xlu0 %1212  ;;  %v1517_v12 = vsel %vm1493_vm6, %v1485_v56, %v8943_v46  ;;  %v1641_v52 = vsel %vm1624_vm8, %v1608_v55, %v1215_v0  ;;  %v8961_v54 = vld [vmem:[#allocation183_spill] sm:$0xff] }
 0x2a3   : > { %v1681_v7 = vsel %vm1657_vm11, %v1648_v6, %v1322_v42  ;;  %v1640_v18 = vsel %vm1624_vm8, %v1607_v33, %v1213_v44  ;;  %v1550_v16 = vsel %vm1525_vm5, %v1517_v12, %v8944_v32  ;;  %v1518_v42 = vsel %vm1493_vm6, %v1486_v1, %v8954_v41  ;;  %v8955_v44 = vld [vmem:[#allocation67_spill] sm:$0xff] }
 0x2a4   : > { %4216 = vmatmul.msk.f32.gmra.mxu0 %vm1732_vm12, %v1697_v3  ;;  %v1714_v13 = vsel %vm1690_vm10, %v1681_v7, %v1415_v57  ;;  %v8940_v57 = vld [vmem:[#allocation2_spill] sm:$0xff]  ;;  %v1583_v19 = vsel %vm1558_vm7, %v1550_v16, %v8946_v51  ;;  %v8956_v7 = vld [vmem:[#allocation5_spill] sm:$0xff]  ;;  %v8971_v36 = vld [vmem:[#allocation95_spill] sm:$0xff] }
 0x2a5   : > { %4233 = vmatmul.msk.f32.gmra.mxu3 %vm1732_vm12, %v1714_v13  ;;  %v1616_v39 = vsel %vm8450_vm9, %v1583_v19, %v8948_v30  ;;  %v1468_v3 = vsel %vm1461_vm4, %v8956_v7, %v8955_v44  ;;  %v8957_v13 = vld [vmem:[#allocation47_spill] sm:$0xff]  ;;  %v8966_v51 = vld [vmem:[#allocation13_spill] sm:$0xff]  ;;  %v8967_v30 = vld [vmem:[#allocation104_spill] sm:$0xff] }
 0x2a6   : > { %v1551_v8 = vsel %vm1525_vm5, %v1518_v42, %v8957_v13  ;;  %v1500_v49 = vsel %vm1493_vm6, %v1468_v3, %v8958_v21  ;;  %v1478_v19 = vsel %vm1461_vm4, %v8966_v51, %v8965_v10  ;;  %v8977_v42 = vld [vmem:[#allocation69_spill] sm:$0xff]  ;;  %v8991_v51 = vld [vmem:[#allocation148_spill] sm:$0xff] }
 0x2a7   : > { %1242 = vrot.lane.b32.xlu2 %v8938_v24, %s4437_s14  ;;  %v1584_v9 = vsel %vm1558_vm7, %v1551_v8, %v8959_v59  ;;  %v1533_v28 = vsel %vm1525_vm5, %v1500_v49, %v8960_v43  ;;  %v8979_v43 = vld [vmem:[#allocation6_spill] sm:$0xff] }
 0x2a8   : > { %1426 = vrot.lane.b32.xlu1 %v5537_v48, %s4439_s16  ;;  %1335 = vrot.lane.b32.xlu0 %v8940_v57, %s4438_s15  ;;  %v8941_v48 = vld [vmem:[#allocation45_spill] sm:$0xff]  ;;  %v1617_v33 = vsel %vm8450_vm9, %v1584_v9, %v8961_v54  ;;  %v8978_v9 = vld [vmem:[#allocation56_spill] sm:$0xff] }
 0x2a9   : > { %v1401_v34 = vpop.permute.xlu2 %1400 }
 0x2aa   : > { %v1306_v22 = vpop.permute.xlu1 %1305  ;;  %v1399_v23 = vpop.permute.xlu0 %1398 }
 0x2ab   : > { %v1673_v40 = vsel %vm1657_vm11, %v1640_v18, %v1306_v22 }
 0x2ac   : > { %v1706_v58 = vsel %vm1690_vm10, %v1673_v40, %v1399_v23  ;;  %v8963_v23 = vld [vmem:[#allocation174_spill] sm:$0xff] }
 0x2ad   : > { %4225 = vmatmul.msk.f32.gmra.mxu2 %vm1732_vm12, %v1706_v58  ;;  %v8964_v58 = vld [vmem:[#allocation21_spill] sm:$0xff] }
 0x2af   : > { %3056 = vrot.lane.b32.xlu2 %v8940_v57, %s4433_s10 }
 0x2b0   : > { %1428 = vrot.lane.b32.xlu1 %v8941_v48, %s4439_s16 }
 0x2b1   : > { %v1326_v15 = vpop.permute.xlu2 %1325 }
 0x2b2   : > { %v1231_v60 = vpop.permute.xlu1 %1230  ;;  %v1324_v29 = vpop.permute.xlu0 %1323 }
 0x2b3   : > { %v1649_v4 = vsel %vm1624_vm8, %v1616_v39, %v1231_v60  ;;  %v8968_v39 = vld [vmem:[#allocation72_spill] sm:$0xff] }
 0x2b4   : > { %v1682_v26 = vsel %vm1657_vm11, %v1649_v4, %v1324_v29  ;;  %v1469_v27 = vsel %vm1461_vm4, %v8969_v20, %v8968_v39  ;;  %v8970_v4 = vld [vmem:[#allocation141_spill] sm:$0xff]  ;;  %v8994_v39 = vld [vmem:[#allocation175_spill] sm:$0xff] }
 0x2b5   : > { %v1501_v55 = vsel %vm1493_vm6, %v1469_v27, %v8971_v36  ;;  %v8995_v36 = vld [vmem:[#allocation126_spill] sm:$0xff] }
 0x2b8   : > { %3080 = vrot.lane.b32.xlu1 %v8941_v48, %s4435_s12 }
 0x2b9   : > { %v1310_v37 = vpop.permute.xlu2 %1309 }
 0x2ba   : > { %v1417_v25 = vpop.permute.xlu1 %1416  ;;  %v1308_v63 = vpop.permute.xlu0 %1307 }
 0x2bb   : > { %v1674_v17 = vsel %vm1657_vm11, %v1641_v52, %v1308_v63  ;;  %v1715_v50 = vsel %vm1690_vm10, %v1682_v26, %v1417_v25  ;;  %v8972_v52 = vld [vmem:[#allocation162_spill] sm:$0xff]  ;;  %v8973_v25 = vld [vmem:[#allocation133_spill] sm:$0xff] }
 0x2bc   : > { %4234 = vmatmul.msk.f32.gmra.mxu3 %vm1732_vm12, %v1715_v50  ;;  %v1707_v53 = vsel %vm1690_vm10, %v1674_v17, %v1401_v34  ;;  %v8962_v34 = vld [vmem:[#allocation50_spill] sm:$0xff]  ;;  %v1534_v63 = vsel %vm1525_vm5, %v1501_v55, %v8973_v25  ;;  %v8974_v17 = vld [vmem:[#allocation173_spill] sm:$0xff]  ;;  %v8997_v25 = vld [vmem:[#allocation187_spill] sm:$0xff] }
 0x2bd   : > { %4226 = vmatmul.msk.f32.gmra.mxu2 %vm1732_vm12, %v1707_v53  ;;  %v1566_v18 = vsel %vm1558_vm7, %v1533_v28, %v8962_v34  ;;  %v1567_v62 = vsel %vm1558_vm7, %v1534_v63, %v8975_v47  ;;  %v1470_v28 = vsel %vm1461_vm4, %v8979_v43, %v8978_v9  ;;  %v8982_v34 = vld [vmem:[#allocation35_spill] sm:$0xff]  ;;  %v9001_v43 = vld [vmem:[#allocation169_spill] sm:$0xff] }
 0x2be   : > { %v1599_v40 = vsel %vm8450_vm9, %v1566_v18, %v8963_v23  ;;  %v8984_v23 = vld [vmem:[#allocation71_spill] sm:$0xff] }
 0x2bf   : > { %v1632_v14 = vsel %vm1624_vm8, %v1599_v40, %v8964_v58  ;;  %v8985_v40 = vld [vmem:[#allocation18_spill] sm:$0xff] }
 0x2c0   : > { %v1479_v58 = vsel %vm1461_vm4, %v8985_v40, %v8984_v23 }
 0x2c1   : > { %v6132_v5 = vpop.permute.xlu2 %1234 }
 0x2c2   : > { %v1290_v0 = vpop.permute.xlu1 %1289  ;;  %v1233_v6 = vpop.permute.xlu0 %1232 }
 0x2c3   : > { %v1650_v22 = vsel %vm1624_vm8, %v1617_v33, %v1233_v6  ;;  %v1665_v56 = vsel %vm1657_vm11, %v1632_v14, %v1290_v0  ;;  %v8976_v0 = vld [vmem:[#allocation171_spill] sm:$0xff]  ;;  %v8981_v33 = vld [vmem:[#allocation93_spill] sm:$0xff] }
 0x2c4   : > { %v1683_v46 = vsel %vm1657_vm11, %v1650_v22, %v1326_v15  ;;  %v1510_v15 = vsel %vm1493_vm6, %v1478_v19, %v8967_v30  ;;  %v1600_v6 = vsel %vm8450_vm9, %v1567_v62, %v8976_v0  ;;  %v1487_v18 = vsel %vm1461_vm4, %v8982_v34, %v8981_v33  ;;  %v8983_v22 = vld [vmem:[#allocation106_spill] sm:$0xff]  ;;  %v8986_v14 = vld [vmem:[#allocation113_spill] sm:$0xff]  ;;  %v8993_v30 = vld [vmem:[#allocation168_spill] sm:$0xff] }
 0x2c5   : > { %v1543_v45 = vsel %vm1525_vm5, %v1510_v15, %v8970_v4  ;;  %v1633_v44 = vsel %vm1624_vm8, %v1600_v6, %v8977_v42  ;;  %v8999_v42 = vld [vmem:[#allocation140_spill] sm:$0xff]  ;;  %v9003_v34 = vld [vmem:[#allocation179_spill] sm:$0xff] }
 0x2c6   : > { %v1576_v26 = vsel %vm1558_vm7, %v1543_v45, %v8972_v52  ;;  %v8996_v52 = vld [vmem:[#allocation177_spill] sm:$0xff] }
 0x2c7   : > { %v1609_v50 = vsel %vm8450_vm9, %v1576_v26, %v8974_v17 }
 0x2c9   : > { %v6163_v16 = vpop.permute.xlu2 %1420 }
 0x2ca   : > { %v1383_v60 = vpop.permute.xlu1 %1382  ;;  %v1419_v29 = vpop.permute.xlu0 %1418 }
 0x2cb   : > { %v1698_v12 = vsel %vm1690_vm10, %v1665_v56, %v1383_v60  ;;  %v1716_v32 = vsel %vm1690_vm10, %v1683_v46, %v1419_v29  ;;  %v1519_v56 = vsel %vm1493_vm6, %v1487_v18, %v8986_v14  ;;  %v8987_v60 = vld [vmem:[#allocation128_spill] sm:$0xff]  ;;  %v8988_v46 = vld [vmem:[#allocation83_spill] sm:$0xff] }
 0x2cc   : > { %4217 = vmatmul.msk.f32.gmra.mxu0 %vm1732_vm12, %v1698_v12  ;;  %4235 = vmatmul.msk.f32.gmra.mxu3 %vm1732_vm12, %v1716_v32  ;;  %v8989_v12 = vld [vmem:[#allocation34_spill] sm:$0xff]  ;;  %v1552_v19 = vsel %vm1525_vm5, %v1519_v56, %v8991_v51 }
 0x2cd   : > { %v1488_v32 = vsel %vm1461_vm4, %v8989_v12, %v8988_v46  ;;  %v1585_v15 = vsel %vm1558_vm7, %v1552_v19, %v8993_v30 }
 0x2ce   : > { %v1520_v55 = vsel %vm1493_vm6, %v1488_v32, %v8995_v36  ;;  %v1618_v26 = vsel %vm8450_vm9, %v1585_v15, %v8996_v52 }
 0x2cf   : > { %v1651_v62 = vsel %vm1624_vm8, %v1618_v26, %v6132_v5 }
 0x2d1   : > { %v1850_v61 = vpop.f32.mrf.mxu0  ;;  %v1294_v53 = vpop.permute.xlu2 %1293 }
 0x2d2   : > { %v1217_v38 = vpop.permute.xlu1 %1216  ;;  %v1292_v11 = vpop.permute.xlu0 %1291  ;;  %v1851_v41 = vadd.f32 %v6180_v35, %v1850_v61  ;;  %v8990_v61 = vld [vmem:[#allocation115_spill] sm:$0xff] }
 0x2d3   : > { %v1642_v1 = vsel %vm1624_vm8, %v1609_v50, %v1217_v38  ;;  %v1666_v3 = vsel %vm1657_vm11, %v1633_v44, %v1292_v11  ;;  %v1511_v10 = vsel %vm1493_vm6, %v1479_v58, %v8990_v61  ;;  %v8992_v38 = vld [vmem:[#allocation157_spill] sm:$0xff]  ;;  %v8998_v50 = vld [vmem:[#allocation132_spill] sm:$0xff]  ;;  %v1553_v44 = vsel %vm1525_vm5, %v1520_v55, %v8999_v42 }
 0x2d4   : > { %v1675_v21 = vsel %vm1657_vm11, %v1642_v1, %v1310_v37  ;;  %v6205_v54 = vmax.f32 %v1851_v41, 0.0  ;;  %v1502_v37 = vsel %vm1493_vm6, %v1470_v28, %v8983_v22  ;;  %v1544_v47 = vsel %vm1525_vm5, %v1511_v10, %v8998_v50  ;;  %v9004_v22 = vld [vmem:[#allocation184_spill] sm:$0xff] }
 0x2d5   : > { %v1535_v29 = vsel %vm1525_vm5, %v1502_v37, %v8987_v60  ;;  %v1586_v28 = vsel %vm1558_vm7, %v1553_v44, %v9001_v43 }
 0x2d6   : > { %8980 = vst [vmem:[#allocation53_spill] sm:$0xff] %v6205_v54  ;;  %v1568_v11 = vsel %vm1558_vm7, %v1535_v29, %v8992_v38  ;;  %v6235_v4 = vrot.slane %v6205_v54, 2  ;;  %v8458_v45 = vrot.slane %v6205_v54, 7  ;;  %v6245_v17 = vrot.slane %v6205_v54, 4 }
 0x2d7   : > { %v1601_v20 = vsel %vm8450_vm9, %v1568_v11, %v8994_v39  ;;  %v6279_v37 = vsel %vm8450_vm9, %v1586_v28, %v9004_v22 }
 0x2d8   : > { %v1634_v63 = vsel %vm1624_vm8, %v1601_v20, %v8997_v25 }
 0x2d9   : > { %v1853_v7 = vpop.f32.mrf.mxu0  ;;  %v1387_v27 = vpop.permute.xlu2 %1386  ;;  %v1667_v1 = vsel %vm1657_vm11, %v1634_v63, %v1294_v53  ;;  %v6262_v53 = vrot.slane %v6205_v54, 6 }
 0x2da   : > { %v1403_v13 = vpop.permute.xlu1 %1402  ;;  %v1385_v8 = vpop.permute.xlu0 %1384  ;;  %v1854_v0 = vadd.f32 %v6180_v35, %v1853_v7  ;;  %v2203_v7 = vrot.slane %v8458_v45, 2 }
 0x2db   : > { %v1699_v49 = vsel %vm1690_vm10, %v1666_v3, %v1385_v8  ;;  %v1708_v59 = vsel %vm1690_vm10, %v1675_v21, %v1403_v13  ;;  %v1700_v21 = vsel %vm1690_vm10, %v1667_v1, %v1387_v27  ;;  %v4244_v60 = vrot.slane %v6262_v53, 9 }
 0x2dc   : > { %4218 = vmatmul.msk.f32.gmra.mxu0 %vm1732_vm12, %v1699_v49  ;;  %4227 = vmatmul.msk.f32.gmra.mxu2 %vm1732_vm12, %v1708_v59  ;;  %v4242_v49 = vrot.slane %v6235_v4, 9  ;;  %v9000_v59 = vld [vmem:[#allocation164_spill] sm:$0xff]  ;;  %v6281_v23 = vmax.f32 %v1854_v0, 0.0  ;;  %v2586_v29 = vmax.f32 %v6205_v54, %v2203_v7 }
 0x2dd   : > { %v1577_v9 = vsel %vm1558_vm7, %v1544_v47, %v9000_v59  ;;  %v2589_v47 = vmax.f32 %v6262_v53, %v4244_v60 }
 0x2de   : > { %v1610_v18 = vsel %vm8450_vm9, %v1577_v9, %v9003_v34  ;;  %9005 = vst [vmem:[#allocation27_spill] sm:$0xff] %v6281_v23  ;;  %v2587_v46 = vmax.f32 %v6235_v4, %v4242_v49  ;;  %v6303_v11 = vrot.slane %v6281_v23, 2  ;;  %v8456_v30 = vrot.slane %v6281_v23, 7 }
 0x2df   : > { %v6313_v26 = vrot.slane %v6281_v23, 4  ;;  %v6317_v63 = vrot.slane %v6281_v23, 6  ;;  %vm8451_vm9 = vcmask 1047559  }
 0x2e0   : > { %9007 = vst [vmem:[#allocation99_spill] sm:$0xff] %v6303_v11  ;;  %v2211_v0 = vrot.slane %v8456_v30, 2 }
 0x2e1   : > { %9008 = vst [vmem:[#allocation121_spill] sm:$0xff] %v6313_v26  ;;  %v4247_v49 = vrot.slane %v6317_v63, 9 }
 0x2e2   : > { %v1328_v6 = vpop.permute.xlu1 %1327  ;;  %v1856_v41 = vpop.f32.mrf.mxu0  ;;  %9009 = vst [vmem:[#allocation153_spill] sm:$0xff] %v6317_v63 }
 0x2e3   : > { %v1684_v3 = vsel %vm1657_vm11, %v1651_v62, %v1328_v6  ;;  %v1857_v13 = vadd.f32 %v6180_v35, %v1856_v41  ;;  %v1219_v8 = vpop.permute.xlu0 %1218  ;;  %v4245_v6 = vrot.slane %v6303_v11, 9 }
 0x2e4   : > { %4219 = vmatmul.msk.f32.gmra.mxu0 %vm1732_vm12, %v1700_v21  ;;  %v1717_v5 = vsel %vm1690_vm10, %v1684_v3, %v6163_v16  ;;  %v4243_v16 = vrot.slane %v6245_v17, 9  ;;  %v1643_v51 = vsel %vm1624_vm8, %v1610_v18, %v1219_v8  ;;  %v4246_v21 = vrot.slane %v6313_v26, 9 }
 0x2e5   : > { %v6271_v33 = vmax.f32 %v1857_v13, 0.0  ;;  %4236 = vmatmul.msk.f32.gmra.mxu3 %vm1732_vm12, %v1717_v5 }
 0x2e6   : > { %v2588_v10 = vmax.f32 %v6245_v17, %v4243_v16 }
 0x2e7   : > { %9002 = vst [vmem:[#allocation38_spill] sm:$0xff] %v6271_v33  ;;  %v6284_v40 = vrot.slane %v6271_v33, 2  ;;  %v6287_v58 = vrot.slane %v6271_v33, 4  ;;  %v6290_v14 = vrot.slane %v6271_v33, 6  ;;  %v8455_v56 = vrot.slane %v6271_v33, 7 }
 0x2e9   : > { %9006 = vst [vmem:[#allocation55_spill] sm:$0xff] %v6290_v14  ;;  %v2219_v12 = vrot.slane %v8455_v56, 2  ;;  %v4248_v32 = vrot.slane %v6284_v40, 9  ;;  %v4249_v61 = vrot.slane %v6287_v58, 9  ;;  %v4250_v15 = vrot.slane %v6290_v14, 9 }
 0x2ea   : > { %v1312_v19 = vpop.permute.xlu1 %1311  ;;  %v1859_v38 = vpop.f32.mrf.mxu0  ;;  %v3787_v56 = vrot.slane %v6205_v54, 5 }
 0x2eb   : > { %v1676_v39 = vsel %vm1657_vm11, %v1643_v51, %v1312_v19  ;;  %v1860_v20 = vadd.f32 %v6180_v35, %v1859_v38  ;;  %v1405_v27 = vpop.permute.xlu0 %1404  ;;  %v2594_v36 = vmax.f32 %v6271_v33, %v2219_v12  ;;  %v2595_v55 = vmax.f32 %v6284_v40, %v4248_v32 }
 0x2ec   : > { %v1709_v52 = vsel %vm1690_vm10, %v1676_v39, %v1405_v27  ;;  %v2596_v25 = vmax.f32 %v6287_v58, %v4249_v61  ;;  %v2597_v41 = vmax.f32 %v6290_v14, %v4250_v15  ;;  %v2592_v61 = vmax.f32 %v6313_v26, %v4246_v21 }
 0x2ed   : > { %v6319_v50 = vmax.f32 %v1860_v20, 0.0  ;;  %4228 = vmatmul.msk.f32.gmra.mxu2 %vm1732_vm12, %v1709_v52  ;;  %v2714_v62 = vmax.f32 %v2586_v29, %v2594_v36  ;;  %v2715_v1 = vmax.f32 %v2587_v46, %v2595_v55  ;;  %v2590_v29 = vmax.f32 %v6281_v23, %v2211_v0  ;;  %v1221_v20 = vpop.permute.xlu2 %1220 }
 0x2ee   : > { %v2716_v42 = vmax.f32 %v2588_v10, %v2596_v25  ;;  %v2717_v34 = vmax.f32 %v2589_v47, %v2597_v41  ;;  %v2591_v46 = vmax.f32 %v6303_v11, %v4245_v6  ;;  %v2593_v51 = vmax.f32 %v6317_v63, %v4247_v49  ;;  %v9015_v49 = vld [vmem:[#allocation17_spill] sm:$0xff] }
 0x2ef   : > { %9010 = vst [vmem:[#allocation68_spill] sm:$0xff] %v6319_v50  ;;  %v6328_v44 = vrot.slane %v6319_v50, 2  ;;  %v6331_v3 = vrot.slane %v6319_v50, 4  ;;  %v8461_v13 = vrot.slane %v6319_v50, 7  ;;  %v2842_v8 = vperm.slane %v2714_v62, 0 }
 0x2f0   : > { %v2843_v5 = vperm.slane %v2715_v1, 0  ;;  %v6336_v7 = vrot.slane %v6319_v50, 6  ;;  %v2844_v28 = vperm.slane %v2716_v42, 0  ;;  %v2845_v36 = vperm.slane %v2717_v34, 0 }
 0x2f1   : > { %9011 = vst [vmem:[#allocation11_spill] sm:$0xff] %v6328_v44  ;;  %v2227_v59 = vrot.slane %v8461_v13, 2  ;;  %v4251_v9 = vrot.slane %v6328_v44, 9  ;;  %v4252_v43 = vrot.slane %v6331_v3, 9 }
 0x2f2   : > { %9012 = vst [vmem:[#allocation73_spill] sm:$0xff] %v6331_v3  ;;  %v1237_v16 = vpop.permute.xlu1 %1236  ;;  %v2907_v18 = vsel %vm8449_vm13, %v2843_v5, %v2842_v8  ;;  %v4253_v22 = vrot.slane %v6336_v7, 9  ;;  %vm8575_vm13 = vcmask 1046534   ;;  %v9014_v5 = vld [vmem:[#allocation85_spill] sm:$0xff] }
 0x2f3   : > { %9013 = vst [vmem:[#allocation108_spill] sm:$0xff] %v6336_v7  ;;  %v1330_v60 = vpop.permute.xlu0 %1329  ;;  %v2598_v12 = vmax.f32 %v6319_v50, %v2227_v59  ;;  %v2599_v32 = vmax.f32 %v6328_v44, %v4251_v9  ;;  %v2600_v10 = vmax.f32 %v6331_v3, %v4252_v43  ;;  %v2909_v39 = vsel %vm2908_vm14, %v2844_v28, %v2907_v18  ;;  %v9016_v28 = vld [vmem:[#allocation119_spill] sm:$0xff] }
 0x2f4   : > { %v2601_v19 = vmax.f32 %v6336_v7, %v4253_v22  ;;  %v1652_v52 = vsel %vm1624_vm8, %v6279_v37, %v1237_v16  ;;  %v2911_v62 = vsel %vm2910_vm15, %v2845_v36, %v2909_v39  ;;  %v1480_v37 = vsel %vm1461_vm4, %v9015_v49, %v9014_v5  ;;  %v9027_v49 = vld [vmem:[#allocation185_spill] sm:$0xff] }
 0x2f5   : > { %v2718_v38 = vmax.f32 %v2590_v29, %v2598_v12  ;;  %v2719_v15 = vmax.f32 %v2591_v46, %v2599_v32  ;;  %v2720_v27 = vmax.f32 %v2592_v61, %v2600_v10  ;;  %v1685_v41 = vsel %vm1657_vm11, %v1652_v52, %v1330_v60  ;;  %v9018_v46 = vld [vmem:[#allocation142_spill] sm:$0xff]  ;;  %v1239_v39 = vpop.permute.xlu2 %1238 }
 0x2f6   : > { %v2721_v55 = vmax.f32 %v2593_v51, %v2601_v19  ;;  %v1512_v16 = vsel %vm1493_vm6, %v1480_v37, %v9016_v28  ;;  %v3709_v32 = vrot.slane %v6271_v33, 1  ;;  %v9019_v61 = vld [vmem:[#allocation70_spill] sm:$0xff] }
 0x2f7   : > { %v2846_v25 = vperm.slane %v2718_v38, 0  ;;  %v2847_v47 = vperm.slane %v2719_v15, 0  ;;  %v2848_v0 = vperm.slane %v2720_v27, 0  ;;  %v1545_v12 = vsel %vm1525_vm5, %v1512_v16, %v9018_v46  ;;  %v9020_v38 = vld [vmem:[#allocation181_spill] sm:$0xff] }
 0x2f8   : > { %v2849_v1 = vperm.slane %v2721_v55, 0  ;;  %v1578_v10 = vsel %vm1558_vm7, %v1545_v12, %v9019_v61  ;;  %v9029_v61 = vld [vmem:[#allocation23_spill] sm:$0xff] }
 0x2f9   : > { %v2913_v6 = vsel %vm8576_vm3, %v2846_v25, %v2911_v62  ;;  %v9022_v62 = vld [vmem:[#allocation94_spill] sm:$0xff] }
 0x2fa   : > { %v1423_v42 = vpop.permute.xlu1 %1422  ;;  %v2915_v8 = vsel %vm8575_vm13, %v2847_v47, %v2913_v6  ;;  %v2984_v21 = vsel %vm8452_vm0, %v2849_v1, 0.0  ;;  %v9023_v1 = vld [vmem:[#allocation37_spill] sm:$0xff] }
 0x2fb   : > { %v1314_v59 = vpop.permute.xlu0 %1313  ;;  %v1718_v9 = vsel %vm1690_vm10, %v1685_v41, %v1423_v42  ;;  %v2917_v43 = vsel %vm8451_vm9, %v2848_v0, %v2915_v8  ;;  %v3028_v60 = vrot.slane %v2984_v21, 2  ;;  %v3007_v29 = vrot.slane %v2984_v21, 1  ;;  %v9024_v6 = vld [vmem:[#allocation9_spill] sm:$0xff]  ;;  %v9026_v21 = vld [vmem:[#allocation163_spill] sm:$0xff] }
 0x2fc   : > { %4237 = vmatmul.msk.f32.gmra.mxu3 %vm1732_vm12, %v1718_v9  ;;  %v6370_v34 = vsel %vm8452_vm0, 0.0, %v2917_v43  ;;  %vm3611_vm9 = vcmask 1041409   ;;  %vm9021_vm0 = vcmask 162816   ;;  %v1489_v0 = vsel %vm1461_vm4, %v9023_v1, %v9022_v62  ;;  %v9025_v42 = vld [vmem:[#allocation149_spill] sm:$0xff] }
 0x2fd   : > { %9017 = vst [vmem:[#allocation130_spill] sm:$0xff] %v6370_v34  ;;  %3104 = vrot.lane.b32.xlu2 %v6370_v34, %s4437_s14  ;;  %v3006_v18 = vrot.slane %v6370_v34, 1  ;;  %v3027_v22 = vrot.slane %v6370_v34, 2  ;;  %v1611_v15 = vsel %vm9021_vm0, %v1578_v10, %v9020_v38  ;;  %v6392_v27 = vsel %vm3611_vm9, %v3709_v32, %v6235_v4  ;;  %v1223_v43 = vpop.permute.xlu2 %1222  ;;  %v9028_v32 = vld [vmem:[#allocation87_spill] sm:$0xff] }
 0x2fe   : > { %v1644_v36 = vsel %vm1624_vm8, %v1611_v15, %v1221_v20  ;;  %v1521_v41 = vsel %vm1493_vm6, %v1489_v0, %v9024_v6  ;;  %v3761_v20 = vrot.slane %v6271_v33, 3  ;;  %v3813_v8 = vrot.slane %v6271_v33, 5  ;;  %v9031_v38 = vld [vmem:[#allocation107_spill] sm:$0xff] }
 0x2ff   : > { %v6382_v51 = vsel %vm8454_vm2, %v3027_v22, %v3028_v60  ;;  %v3008_v19 = vsel %vm8453_vm1, %v3006_v18, %v3007_v29  ;;  %v1677_v55 = vsel %vm1657_vm11, %v1644_v36, %v1314_v59  ;;  %v1554_v4 = vsel %vm1525_vm5, %v1521_v41, %v9025_v42  ;;  %v1880_v29 = vpop.f32.mrf.mxu2 }
 0x300   : > { %3152 = vrot.lane.b32.xlu1 %v6382_v51, %s4440_s29  ;;  %3058 = vrot.lane.b32.xlu0 %v3008_v19, %s4433_s10  ;;  %v1587_v5 = vsel %vm1558_vm7, %v1554_v4, %v9026_v21  ;;  %v3762_v22 = vsel %vm3611_vm9, %v3761_v20, %v6245_v17  ;;  %v3814_v60 = vsel %vm3611_vm9, %v3813_v8, %v6262_v53  ;;  %v3683_v36 = vrot.slane %v6205_v54, 1  ;;  %v9036_v20 = vld [vmem:[#allocation96_spill] sm:$0xff] }
 0x301   : > { %v1620_v37 = vsel %vm9021_vm0, %v1587_v5, %v9027_v49  ;;  %v1481_v10 = vsel %vm1461_vm4, %v9029_v61, %v9028_v32  ;;  %vm9035_vm1 = vcmask 1042434   ;;  %v9037_v8 = vld [vmem:[#allocation36_spill] sm:$0xff]  ;;  %v9038_v49 = vld [vmem:[#allocation118_spill] sm:$0xff] }
 0x302   : > { %v1407_v52 = vpop.permute.xlu1 %1406  ;;  %v1653_v59 = vsel %vm1624_vm8, %v1620_v37, %v1239_v39  ;;  %v1513_v15 = vsel %vm1493_vm6, %v1481_v10, %v9031_v38  ;;  %v9032_v39 = vld [vmem:[#allocation145_spill] sm:$0xff]  ;;  %v3684_v62 = vsel %vm3611_vm9, %v6271_v33, %v3683_v36  ;;  %v1490_v21 = vsel %vm1461_vm4, %v9037_v8, %v9036_v20  ;;  %v9042_v32 = vld [vmem:[#allocation180_spill] sm:$0xff]  ;;  %vm9043_vm2 = vmmov %vm9035_vm1 }
 0x303   : > { %v1332_v25 = vpop.permute.xlu0 %1331  ;;  %v1710_v47 = vsel %vm1690_vm10, %v1677_v55, %v1407_v52  ;;  %v1546_v17 = vsel %vm1525_vm5, %v1513_v15, %v9032_v39  ;;  %v9033_v55 = vld [vmem:[#allocation165_spill] sm:$0xff]  ;;  %v1522_v37 = vsel %vm1493_vm6, %v1490_v21, %v9038_v49  ;;  %v9045_v36 = vld [vmem:[#allocation86_spill] sm:$0xff] }
 0x304   : > { %4229 = vmatmul.msk.f32.gmra.mxu2 %vm1732_vm12, %v1710_v47  ;;  %v1686_v28 = vsel %vm1657_vm11, %v1653_v59, %v1332_v25  ;;  %v1579_v52 = vsel %vm1558_vm7, %v1546_v17, %v9033_v55  ;;  %v9034_v25 = vld [vmem:[#allocation176_spill] sm:$0xff]  ;;  %v1491_v55 = vsel %vm1461_vm4, %v8884_v2, %v9045_v36  ;;  %v9049_v8 = vld [vmem:[#allocation186_spill] sm:$0xff] }
 0x305   : > { %v1612_v47 = vsel %vm9021_vm0, %v1579_v52, %v9034_v25  ;;  %v1241_v5 = vpop.permute.xlu2 %1240  ;;  %v9046_v52 = vld [vmem:[#allocation127_spill] sm:$0xff] }
 0x306   : > { %v1645_v1 = vsel %vm1624_vm8, %v1612_v47, %v1223_v43  ;;  %v1523_v25 = vsel %vm1493_vm6, %v1491_v55, %v9046_v52  ;;  %v9047_v47 = vld [vmem:[#allocation44_spill] sm:$0xff] }
 0x307   : > { %v1883_v59 = vpop.f32.mrf.mxu2 }
 0x308   : > { %3128 = vrot.lane.b32.xlu0 %v3008_v19, %s4439_s16  ;;  %v1884_v2 = vadd.f32 %v6180_v35, %v1883_v59  ;;  %v9054_v59 = vld [vmem:[#allocation151_spill] sm:$0xff] }
 0x309   : > { %v1862_v9 = vpop.f32.mrf.mxu0 }
 0x30a   : > { %v1863_v16 = vadd.f32 %v6180_v35, %v1862_v9  ;;  %v1425_v18 = vpop.permute.xlu1 %1424 }
 0x30b   : > { %v1316_v46 = vpop.permute.xlu0 %1315  ;;  %v1719_v12 = vsel %vm1690_vm10, %v1686_v28, %v1425_v18 }
 0x30c   : > { %v6423_v19 = vmax.f32 %v1863_v16, 0.0  ;;  %4238 = vmatmul.msk.f32.gmra.mxu3 %vm1732_vm12, %v1719_v12  ;;  %v1678_v41 = vsel %vm1657_vm11, %v1645_v1, %v1316_v46  ;;  %v9040_v16 = vld [vmem:[#allocation150_spill] sm:$0xff]  ;;  %v9048_v1 = vld [vmem:[#allocation172_spill] sm:$0xff] }
 0x30d   : > { %v1555_v18 = vsel %vm1525_vm5, %v1522_v37, %v9040_v16  ;;  %v9041_v46 = vld [vmem:[#allocation170_spill] sm:$0xff]  ;;  %v9051_v16 = vld [vmem:[#allocation97_spill] sm:$0xff] }
 0x30e   : > { %9030 = vst [vmem:[#allocation134_spill] sm:$0xff] %v6423_v19  ;;  %v8462_v53 = vrot.slane %v6423_v19, 7  ;;  %v6440_v0 = vrot.slane %v6423_v19, 2  ;;  %v6456_v43 = vrot.slane %v6423_v19, 4  ;;  %v1588_v12 = vsel %vm1558_vm7, %v1555_v18, %v9041_v46 }
 0x30f   : > { %v1621_v61 = vsel %vm9021_vm0, %v1588_v12, %v9042_v32  ;;  %v1492_v18 = vsel %vm1461_vm4, %v8900_v31, %v9051_v16  ;;  %v9053_v12 = vld [vmem:[#allocation129_spill] sm:$0xff]  ;;  %v9058_v31 = vld [vmem:[#allocation188_spill] sm:$0xff]  ;;  %vm9059_vm4 = vmmov %vm9021_vm0 }
 0x310   : > { %v6445_v6 = vsel %vm9035_vm1, %v8462_v53, %v3684_v62  ;;  %v6460_v28 = vsel %vm9035_vm1, %v6440_v0, %v3762_v22  ;;  %v1654_v10 = vsel %vm1624_vm8, %v1621_v61, %v1241_v5  ;;  %v6471_v38 = vsel %vm9043_vm2, %v6456_v43, %v3814_v60  ;;  %v1243_v62 = vpop.permute.xlu2 %1242  ;;  %vm9050_vm2 = vmmov %vm9021_vm0 }
 0x311   : > { %9039 = vst [vmem:[#allocation48_spill] sm:$0xff] %v6460_v28  ;;  %v1556_v60 = vsel %vm1525_vm5, %v1523_v25, %v9047_v47  ;;  %v1524_v32 = vsel %vm1493_vm6, %v1492_v18, %v9053_v12  ;;  %v1913_v47 = vpop.f32.mrf.mxu3  ;;  %vm9119_vm0 = vmmov %vm9035_vm1 }
 0x312   : > { %v1409_v42 = vpop.permute.xlu1 %1408  ;;  %9044 = vst [vmem:[#allocation152_spill] sm:$0xff] %v6471_v38  ;;  %v1557_v61 = vsel %vm1525_vm5, %v1524_v32, %v9054_v59  ;;  %vm9073_vm5 = vmmov %vm9035_vm1 }
 0x313   : > { %v1711_v4 = vsel %vm1690_vm10, %v1678_v41, %v1409_v42  ;;  %v1334_v9 = vpop.permute.xlu0 %1333  ;;  %v1589_v41 = vsel %vm1558_vm7, %v1556_v60, %v9048_v1  ;;  %v1881_v42 = vadd.f32 %v6180_v35, %v1880_v29 }
 0x314   : > { %4230 = vmatmul.msk.f32.gmra.mxu2 %vm1732_vm12, %v1711_v4  ;;  %v1687_v15 = vsel %vm1657_vm11, %v1654_v10, %v1334_v9  ;;  %v1886_v4 = vpop.f32.mrf.mxu2  ;;  %v1622_v21 = vsel %vm9050_vm2, %v1589_v41, %v9049_v8  ;;  %v6505_v10 = vmax.f32 %v1884_v2, 0.0  ;;  %vm9122_vm2 = vmmov %vm9119_vm0 }
 0x315   : > { %v1655_v5 = vsel %vm1624_vm8, %v1622_v21, %v1243_v62  ;;  %v1887_v49 = vadd.f32 %v6180_v35, %v1886_v4  ;;  %v6497_v46 = vmax.f32 %v1881_v42, 0.0 }
 0x316   : > { %9055 = vst [vmem:[#allocation52_spill] sm:$0xff] %v6505_v10  ;;  %v6527_v21 = vrot.slane %v6505_v10, 2  ;;  %v6530_v2 = vrot.slane %v6505_v10, 4 }
 0x317   : > { %9052 = vst [vmem:[#allocation42_spill] sm:$0xff] %v6497_v46  ;;  %v6509_v36 = vmax.f32 %v1887_v49, 0.0  ;;  %v6514_v52 = vrot.slane %v6497_v46, 2  ;;  %v8460_v25 = vrot.slane %v6497_v46, 7  ;;  %v6519_v1 = vrot.slane %v6497_v46, 4 }
 0x318   : > { %v6522_v41 = vrot.slane %v6497_v46, 6  ;;  %9063 = vst [vmem:[#allocation3_spill] sm:$0xff] %v6527_v21 }
 0x319   : > { %v6474_v22 = vpop.f32.mrf.mxu0  ;;  %9057 = vst [vmem:[#allocation78_spill] sm:$0xff] %v6509_v36  ;;  %v6538_v16 = vrot.slane %v6509_v36, 2  ;;  %v8459_v18 = vrot.slane %v6509_v36, 7  ;;  %v6545_v12 = vrot.slane %v8460_v25, 2  ;;  %v4272_v32 = vrot.slane %v6514_v52, 9  ;;  %v1916_v53 = vpop.f32.mrf.mxu3 }
 0x31a   : > { %v1427_v39 = vpop.permute.xlu1 %1426  ;;  %9060 = vst [vmem:[#allocation98_spill] sm:$0xff] %v6514_v52  ;;  %v1866_v25 = vadd.f32 %v6180_v35, %v6474_v22  ;;  %v1917_v42 = vadd.f32 %v6180_v35, %v1916_v53 }
 0x31b   : > { %v1720_v17 = vsel %vm1690_vm10, %v1687_v15, %v1427_v39  ;;  %v1336_v20 = vpop.permute.xlu0 %1335  ;;  %v9056_v39 = vld [vmem:[#allocation166_spill] sm:$0xff]  ;;  %9061 = vst [vmem:[#allocation135_spill] sm:$0xff] %v6519_v1 }
 0x31c   : > { %4239 = vmatmul.msk.f32.gmra.mxu3 %vm1732_vm12, %v1720_v17  ;;  %v1688_v37 = vsel %vm1657_vm11, %v1655_v5, %v1336_v20  ;;  %v1590_v17 = vsel %vm1558_vm7, %v1557_v61, %v9056_v39  ;;  %9062 = vst [vmem:[#allocation61_spill] sm:$0xff] %v6522_v41  ;;  %v1889_v4 = vpop.f32.mrf.mxu2  ;;  %v8457_v5 = vrot.slane %v6505_v10, 7  ;;  %v4273_v61 = vrot.slane %v6519_v1, 9 }
 0x31d   : > { %v1623_v55 = vsel %vm9059_vm4, %v1590_v17, %v9058_v31  ;;  %9064 = vst [vmem:[#allocation89_spill] sm:$0xff] %v6530_v2  ;;  %v4274_v39 = vrot.slane %v6522_v41, 9  ;;  %v4275_v17 = vrot.slane %v6527_v21, 9  ;;  %v4276_v31 = vrot.slane %v6530_v2, 9 }
 0x31e   : > { %v1656_v8 = vsel %vm1624_vm8, %v1623_v55, %v1243_v62  ;;  %9066 = vst [vmem:[#allocation26_spill] sm:$0xff] %v6538_v16  ;;  %v1914_v62 = vadd.f32 %v6180_v35, %v1913_v47  ;;  %v6565_v47 = vrot.slane %v6509_v36, 6  ;;  %v6584_v45 = vmax.f32 %v6519_v1, %v4273_v61 }
 0x31f   : > { %v1689_v49 = vsel %vm1657_vm11, %v1656_v8, %v1336_v20  ;;  %v1890_v20 = vadd.f32 %v6180_v35, %v1889_v4  ;;  %v4278_v4 = vrot.slane %v6538_v16, 9  ;;  %vm9083_vm11 = vmmov %vm9035_vm1  ;;  %vm9124_vm4 = vcmask 1040384  }
 0x320   : > { %9069 = vst [vmem:[#allocation10_spill] sm:$0xff] %v6565_v47  ;;  %v6572_v8 = vmax.f32 %v1914_v62, 0.0  ;;  %v6588_v62 = vmax.f32 %v6522_v41, %v4274_v39  ;;  %v4280_v61 = vrot.slane %v6565_v47, 9  ;;  %v4254_v41 = vrot.slane %v6440_v0, 9 }
 0x321   : > { %v1868_v15 = vpop.f32.mrf.mxu0  ;;  %v6580_v30 = vmax.f32 %v1890_v20, 0.0  ;;  %v6605_v39 = vmax.f32 %v6538_v16, %v4278_v4 }
 0x322   : > { %v1429_v9 = vpop.permute.xlu1 %1428  ;;  %v1869_v60 = vadd.f32 %v6180_v35, %v1868_v15  ;;  %v6554_v15 = vrot.slane %v6509_v36, 4  ;;  %9070 = vst [vmem:[#allocation59_spill] sm:$0xff] %v6572_v8  ;;  %v6621_v4 = vrot.slane %v6572_v8, 4  ;;  %v6649_v7 = vmax.f32 %v6565_v47, %v4280_v61 }
 0x323   : > { %v1721_v29 = vsel %vm1690_vm10, %v1688_v37, %v1429_v9  ;;  %v6535_v37 = vrot.slane %v6505_v10, 6  ;;  %9071 = vst [vmem:[#allocation60_spill] sm:$0xff] %v6580_v30  ;;  %v6629_v16 = vrot.slane %v6580_v30, 2  ;;  %v9080_v3 = vrot.slane %v6572_v8, 7 }
 0x324   : > { %4240 = vmatmul.msk.f32.gmra.mxu3 %vm1732_vm12, %v1721_v29  ;;  %v1722_v29 = vsel %vm1690_vm10, %v1689_v49, %v1429_v9  ;;  %v6549_v59 = vmax.f32 %v1869_v60, 0.0  ;;  %9068 = vst [vmem:[#allocation22_spill] sm:$0xff] %v6554_v15  ;;  %v6559_v9 = vrot.slane %v8457_v5, 2  ;;  %v6569_v60 = vrot.slane %v8459_v18, 2  ;;  %v1892_v53 = vpop.f32.mrf.mxu2 }
 0x325   : > { %9065 = vst [vmem:[#allocation15_spill] sm:$0xff] %v6535_v37  ;;  %v4277_v55 = vrot.slane %v6535_v37, 9  ;;  %v4279_v18 = vrot.slane %v6554_v15, 9  ;;  %v6596_v49 = vmax.f32 %v6530_v2, %v4276_v31  ;;  %v6632_v31 = vrot.slane %v6580_v30, 4 }
 0x326   : > { %9067 = vst [vmem:[#allocation154_spill] sm:$0xff] %v6549_v59  ;;  %v8466_v5 = vrot.slane %v6549_v59, 7  ;;  %v2028_v33 = vrot.slane %v6549_v59, 2  ;;  %v6653_v63 = vrot.slane %v9080_v3, 2  ;;  %v9081_v26 = vrot.slane %v6580_v30, 7 }
 0x327   : > { %v6599_v20 = vmax.f32 %v6535_v37, %v4277_v55  ;;  %v3711_v55 = vsel %vm9073_vm5, %v6423_v19, %v6392_v27  ;;  %v6618_v13 = vmax.f32 %v6554_v15, %v4279_v18  ;;  %9074 = vst [vmem:[#allocation100_spill] sm:$0xff] %v6621_v4  ;;  %v6635_v27 = vrot.slane %v6580_v30, 6 }
 0x328   : > { %v6626_v22 = vsel %vm2908_vm14, %v8466_v5, %v3711_v55  ;;  %9075 = vst [vmem:[#allocation109_spill] sm:$0xff] %v6629_v16  ;;  %v3789_v18 = vrot.slane %v6423_v19, 3  ;;  %v6644_v55 = vrot.slane %v6572_v8, 6  ;;  %v6646_v5 = vmax.f32 %v1866_v25, 0.0 }
 0x329   : > { %9076 = vst [vmem:[#allocation124_spill] sm:$0xff] %v6632_v31  ;;  %v6658_v11 = vrot.slane %v9081_v26, 2  ;;  %v4306_v44 = vrot.slane %v6621_v4, 9  ;;  %v9082_v2 = vrot.slane %v6205_v54, 3  ;;  %v3788_v61 = vsel %vm3611_vm9, %v6287_v58, %v3787_v56 }
 0x32a   : > { %9077 = vst [vmem:[#allocation14_spill] sm:$0xff] %v6635_v27  ;;  %v4281_v3 = vrot.slane %v6629_v16, 9  ;;  %v4283_v14 = vrot.slane %v6635_v27, 9  ;;  %v3790_v47 = vsel %vm9083_vm11, %v3789_v18, %v3788_v61  ;;  %v6671_v26 = vmax.f32 %v1917_v42, 0.0  ;;  %vm9127_vm11 = vmmov %vm9124_vm4 }
 0x32b   : > { %9078 = vst [vmem:[#allocation40_spill] sm:$0xff] %v6644_v55  ;;  %v3736_v25 = vsel %vm3611_vm9, %v6284_v40, %v9082_v2  ;;  %v4307_v28 = vrot.slane %v6644_v55, 9  ;;  %v6680_v40 = vsel %vm2908_vm14, %v2028_v33, %v3790_v47  ;;  %v1893_v58 = vadd.f32 %v6180_v35, %v1892_v53 }
 0x32c   : > { %4241 = vmatmul.msk.f32.gmra.mxu3 %vm1732_vm12, %v1722_v29  ;;  %v6577_v29 = vmax.f32 %v6514_v52, %v4272_v32  ;;  %v6593_v32 = vmax.f32 %v6527_v21, %v4275_v17  ;;  %v6610_v17 = vrot.slane %v6572_v8, 2  ;;  %v6641_v21 = vrot.slane %v6549_v59, 6  ;;  %9079 = vst [vmem:[#allocation58_spill] sm:$0xff] %v6646_v5  ;;  %vm9096_vm12 = vmmov %vm9035_vm1 }
 0x32d   : > { %v4282_v52 = vrot.slane %v6632_v31, 9  ;;  %9084 = vst [vmem:[#allocation54_spill] sm:$0xff] %v6671_v26  ;;  %v6684_v56 = vrot.slane %v6646_v5, 6  ;;  %v6692_v18 = vrot.slane %v6423_v19, 6  ;;  %v6697_v47 = vmax.f32 %v6621_v4, %v4306_v44 }
 0x32e   : > { %9072 = vst [vmem:[#allocation4_spill] sm:$0xff] %v6610_v17  ;;  %v4305_v37 = vrot.slane %v6610_v17, 9  ;;  %v6677_v54 = vsel %vm2908_vm14, %v6641_v21, %v6445_v6  ;;  %v3737_v53 = vrot.slane %v6423_v19, 1  ;;  %v9089_v61 = vrot.slane %v6423_v19, 7 }
 0x32f   : > { %9085 = vst [vmem:[#allocation41_spill] sm:$0xff] %v6677_v54  ;;  %v6704_v2 = vmax.f32 %v6629_v16, %v4281_v3  ;;  %v6713_v6 = vrot.slane %v6671_v26, 2  ;;  %v6716_v44 = vmax.f32 %v6644_v55, %v4307_v28  ;;  %v6722_v15 = vmax.f32 %v1893_v58, 0.0 }
 0x330   : > { %9086 = vst [vmem:[#allocation25_spill] sm:$0xff] %v6680_v40  ;;  %v6689_v42 = vmax.f32 %v6610_v17, %v4305_v37  ;;  %v2235_v40 = vrot.slane %v9089_v61, 2  ;;  %v6707_v37 = vmax.f32 %v6632_v31, %v4282_v52  ;;  %v6710_v17 = vmax.f32 %v6635_v27, %v4283_v14 }
 0x331   : > { %9087 = vst [vmem:[#allocation77_spill] sm:$0xff] %v6692_v18  ;;  %v9093_v61 = vrot.slane %v6319_v50, 7  ;;  %v4255_v3 = vrot.slane %v6456_v43, 9  ;;  %v6726_v52 = vrot.slane %v6671_v26, 4  ;;  %v6733_v27 = vrot.slane %v6549_v59, 4 }
 0x332   : > { %9088 = vst [vmem:[#allocation120_spill] sm:$0xff] %v6697_v47  ;;  %v4256_v28 = vrot.slane %v6692_v18, 9  ;;  %v6737_v31 = vrot.slane %v6671_v26, 6  ;;  %v6740_v58 = vsel %vm9035_vm1, %v3737_v53, %v3736_v25  ;;  %v4260_v50 = vrot.slane %v2028_v33, 9 }
 0x333   : > { %9090 = vst [vmem:[#allocation33_spill] sm:$0xff] %v6710_v17  ;;  %v3865_v4 = vsel %vm3611_vm9, %v9093_v61, %v6281_v23  ;;  %v9101_v61 = vrot.slane %v6549_v59, 7  ;;  %v2602_v16 = vmax.f32 %v6423_v19, %v2235_v40  ;;  %v6747_v23 = vrot.slane %v6646_v5, 2 }
 0x334   : > { %9091 = vst [vmem:[#allocation79_spill] sm:$0xff] %v6713_v6  ;;  %v6730_v14 = vsel %vm9096_vm12, %v6684_v56, %v3865_v4  ;;  %v2603_v4 = vmax.f32 %v6440_v0, %v4254_v41  ;;  %v4308_v48 = vrot.slane %v6713_v6, 9  ;;  %v6753_v25 = vrot.slane %v6646_v5, 4 }
 0x335   : > { %9092 = vst [vmem:[#allocation111_spill] sm:$0xff] %v6716_v44  ;;  %v2251_v55 = vrot.slane %v9101_v61, 2  ;;  %v6756_v53 = vrot.slane %v6722_v15, 2  ;;  %v4309_v40 = vrot.slane %v6726_v52, 9  ;;  %v4261_v0 = vrot.slane %v6733_v27, 9 }
 0x336   : > { %9094 = vst [vmem:[#allocation136_spill] sm:$0xff] %v6722_v15  ;;  %v2604_v41 = vmax.f32 %v6456_v43, %v4255_v3  ;;  %v6763_v1 = vrot.slane %v6722_v15, 4  ;;  %v4310_v54 = vrot.slane %v6737_v31, 9  ;;  %v6767_v19 = vmax.f32 %v6692_v18, %v4256_v28 }
 0x337   : > { %9095 = vst [vmem:[#allocation12_spill] sm:$0xff] %v6726_v52  ;;  %v2610_v57 = vmax.f32 %v6549_v59, %v2251_v55  ;;  %v2611_v24 = vmax.f32 %v2028_v33, %v4260_v50  ;;  %v6771_v34 = vrot.slane %v6722_v15, 6  ;;  %v9107_v61 = vrot.slane %v6646_v5, 7 }
 0x338   : > { %9097 = vst [vmem:[#allocation63_spill] sm:$0xff] %v6730_v14  ;;  %v4257_v38 = vrot.slane %v6747_v23, 9  ;;  %v9108_v43 = vrot.slane %v6671_v26, 7  ;;  %v4258_v28 = vrot.slane %v6753_v25, 9  ;;  %v9110_v55 = vrot.slane %v6722_v15, 7 }
 0x339   : > { %9098 = vst [vmem:[#allocation28_spill] sm:$0xff] %v6733_v27  ;;  %v2243_v14 = vrot.slane %v9107_v61, 2  ;;  %v4284_v50 = vrot.slane %v6756_v53, 9  ;;  %v6788_v18 = vmax.f32 %v6726_v52, %v4309_v40  ;;  %v1919_v61 = vpop.f32.mrf.mxu3  ;;  %v2612_v59 = vmax.f32 %v6733_v27, %v4261_v0 }
 0x33a   : > { %9099 = vst [vmem:[#allocation75_spill] sm:$0xff] %v6737_v31  ;;  %v6778_v3 = vrot.slane %v9108_v43, 2  ;;  %v2315_v33 = vrot.slane %v9110_v55, 2  ;;  %v4259_v44 = vrot.slane %v6684_v56, 9  ;;  %v4285_v43 = vrot.slane %v6763_v1, 9 }
 0x33b   : > { %9100 = vst [vmem:[#allocation57_spill] sm:$0xff] %v6740_v58  ;;  %v6781_v58 = vmax.f32 %v6713_v6, %v4308_v48  ;;  %v6794_v48 = vmax.f32 %v6737_v31, %v4310_v54  ;;  %v2722_v17 = vmax.f32 %v2602_v16, %v2610_v57  ;;  %v2723_v55 = vmax.f32 %v2603_v4, %v2611_v24  ;;  %v1895_v57 = vpop.f32.mrf.mxu2 }
 0x33c   : > { %9102 = vst [vmem:[#allocation39_spill] sm:$0xff] %v6747_v23  ;;  %v4286_v47 = vrot.slane %v6771_v34, 9  ;;  %v2606_v52 = vmax.f32 %v6646_v5, %v2243_v14  ;;  %v2607_v0 = vmax.f32 %v6747_v23, %v4257_v38  ;;  %v2608_v54 = vmax.f32 %v6753_v25, %v4258_v28 }
 0x33d   : > { %9103 = vst [vmem:[#allocation43_spill] sm:$0xff] %v6753_v25  ;;  %v2643_v31 = vmax.f32 %v6756_v53, %v4284_v50  ;;  %v2724_v16 = vmax.f32 %v2604_v41, %v2612_v59  ;;  %v2644_v14 = vmax.f32 %v6763_v1, %v4285_v43  ;;  %v2850_v4 = vperm.slane %v2722_v17, 0 }
 0x33e   : > { %9104 = vst [vmem:[#allocation88_spill] sm:$0xff] %v6756_v53  ;;  %v2851_v27 = vperm.slane %v2723_v55, 0  ;;  %vm9126_vm5 = vcmask 1047559   ;;  %vm9131_vm12 = vcmask 1045504   ;;  %vm9132_vm1 = vcmask 1046528  }
 0x33f   : > { %9105 = vst [vmem:[#allocation122_spill] sm:$0xff] %v6763_v1  ;;  %v2852_v55 = vperm.slane %v2724_v16, 0  ;;  %v2740_v25 = vmax.f32 %v6618_v13, %v2644_v14 }
 0x340   : > { %9106 = vst [vmem:[#allocation66_spill] sm:$0xff] %v6771_v34 }
 0x341   : > { %9109 = vst [vmem:[#allocation146_spill] sm:$0xff] %v6781_v58  ;;  %v4262_v58 = vrot.slane %v6641_v21, 9 }
 0x342   : > { %9111 = vst [vmem:[#allocation102_spill] sm:$0xff] %v6788_v18  ;;  %v1920_v18 = vadd.f32 %v6180_v35, %v1919_v61  ;;  %v2645_v61 = vmax.f32 %v6771_v34, %v4286_v47  ;;  %v2739_v47 = vmax.f32 %v6605_v39, %v2643_v31 }
 0x343   : > { %9112 = vst [vmem:[#allocation158_spill] sm:$0xff] %v6794_v48  ;;  %v2642_v48 = vmax.f32 %v6722_v15, %v2315_v33  ;;  %v2613_v38 = vmax.f32 %v6641_v21, %v4262_v58  ;;  %v9118_v21 = vmax.f32 %v6509_v36, %v6569_v60 }
 0x345   : > { %v2738_v17 = vmax.f32 %v9118_v21, %v2642_v48  ;;  %v2741_v48 = vmax.f32 %v6649_v7, %v2645_v61 }
 0x349   : > { %v1871_v6 = vpop.f32.mrf.mxu0 }
 0x34a   : > { %v1872_v40 = vadd.f32 %v6180_v35, %v1871_v6  ;;  %v2609_v6 = vmax.f32 %v6684_v56, %v4259_v44  ;;  %v6822_v56 = vmax.f32 %v1920_v18, 0.0  ;;  %v1896_v44 = vadd.f32 %v6180_v35, %v1895_v57 }
 0x34b   : > { %v2918_v18 = vsel %vm9119_vm0, %v2851_v27, %v2850_v4 }
 0x34c   : > { %v6806_v24 = vmax.f32 %v1872_v40, 0.0  ;;  %9117 = vst [vmem:[#allocation116_spill] sm:$0xff] %v6822_v56  ;;  %v2725_v40 = vmax.f32 %v6767_v19, %v2613_v38  ;;  %v6841_v21 = vmax.f32 %v1896_v44, 0.0  ;;  %v2867_v19 = vperm.slane %v2739_v47, 0 }
 0x34d   : > { %v2919_v23 = vsel %vm2908_vm14, %v2852_v55, %v2918_v18  ;;  %v2868_v44 = vperm.slane %v2740_v25, 0  ;;  %v2869_v55 = vperm.slane %v2741_v48, 0 }
 0x34e   : > { %9113 = vst [vmem:[#allocation16_spill] sm:$0xff] %v6806_v24  ;;  %v6813_v28 = vrot.slane %v6806_v24, 2  ;;  %v6816_v33 = vrot.slane %v6806_v24, 4  ;;  %v8505_v50 = vrot.slane %v6806_v24, 7  ;;  %v6820_v59 = vrot.slane %v6806_v24, 6 }
 0x34f   : > { %9120 = vst [vmem:[#allocation74_spill] sm:$0xff] %v6841_v21  ;;  %v2853_v13 = vperm.slane %v2725_v40, 0  ;;  %v6856_v40 = vrot.slane %v6822_v56, 4  ;;  %v3867_v15 = vrot.slane %v6806_v24, 5 }
 0x350   : > { %9114 = vst [vmem:[#allocation147_spill] sm:$0xff] %v6813_v28  ;;  %v2259_v58 = vrot.slane %v8505_v50, 2  ;;  %v4263_v41 = vrot.slane %v6813_v28, 9  ;;  %v4264_v43 = vrot.slane %v6816_v33, 9  ;;  %v4265_v57 = vrot.slane %v6820_v59, 9 }
 0x351   : > { %9115 = vst [vmem:[#allocation24_spill] sm:$0xff] %v6816_v33  ;;  %v2866_v50 = vperm.slane %v2738_v17, 0  ;;  %v2920_v17 = vsel %vm2910_vm15, %v2853_v13, %v2919_v23  ;;  %v6862_v23 = vrot.slane %v6822_v56, 6 }
 0x352   : > { %9116 = vst [vmem:[#allocation32_spill] sm:$0xff] %v6820_v59  ;;  %v2614_v60 = vmax.f32 %v6806_v24, %v2259_v58  ;;  %v2615_v39 = vmax.f32 %v6813_v28, %v4263_v41  ;;  %v2616_v31 = vmax.f32 %v6816_v33, %v4264_v43  ;;  %v2617_v16 = vmax.f32 %v6820_v59, %v4265_v57 }
 0x353   : > { %v6846_v58 = vrot.slane %v6822_v56, 2  ;;  %v8508_v43 = vrot.slane %v6822_v56, 7  ;;  %9123 = vst [vmem:[#allocation81_spill] sm:$0xff] %v6856_v40 }
 0x354   : > { %v2726_v38 = vmax.f32 %v2606_v52, %v2614_v60  ;;  %v2727_v27 = vmax.f32 %v2607_v0, %v2615_v39  ;;  %v2728_v4 = vmax.f32 %v2608_v54, %v2616_v31  ;;  %v2729_v14 = vmax.f32 %v2609_v6, %v2617_v16  ;;  %9125 = vst [vmem:[#allocation101_spill] sm:$0xff] %v6862_v23 }
 0x355   : > { %9121 = vst [vmem:[#allocation144_spill] sm:$0xff] %v6846_v58  ;;  %v8507_v0 = vrot.slane %v6841_v21, 7  ;;  %v2930_v54 = vsel %vm9122_vm2, %v2867_v19, %v2866_v50  ;;  %v4311_v60 = vrot.slane %v6846_v58, 9  ;;  %v2387_v48 = vrot.slane %v8508_v43, 2  ;;  %vm9145_vm2 = vmmov %vm9124_vm4 }
 0x356   : > { %v2854_v7 = vperm.slane %v2726_v38, 0  ;;  %v2855_v61 = vperm.slane %v2727_v27, 0  ;;  %v2857_v52 = vperm.slane %v2729_v14, 0  ;;  %v2856_v47 = vperm.slane %v2728_v4, 0 }
 0x357   : > { %v2931_v31 = vsel %vm2908_vm14, %v2868_v44, %v2930_v54  ;;  %v6873_v38 = vrot.slane %v6841_v21, 2  ;;  %v2323_v27 = vrot.slane %v8507_v0, 2 }
 0x358   : > { %v2921_v6 = vsel %vm8576_vm3, %v2854_v7, %v2920_v17  ;;  %v2985_v25 = vsel %vm9124_vm4, %v2857_v52, 0.0  ;;  %v6887_v44 = vsel %vm2910_vm15, %v2869_v55, %v2931_v31  ;;  %v4312_v17 = vrot.slane %v6856_v40, 9  ;;  %vm9147_vm4 = vmmov %vm9126_vm5 }
 0x359   : > { %v1874_v18 = vpop.f32.mrf.mxu0  ;;  %v2922_v57 = vsel %vm8575_vm13, %v2855_v61, %v2921_v6  ;;  %v3031_v19 = vrot.slane %v2985_v25, 2  ;;  %9128 = vst [vmem:[#allocation49_spill] sm:$0xff] %v6873_v38  ;;  %v3010_v7 = vrot.slane %v2985_v25, 1  ;;  %v6884_v61 = vrot.slane %v6841_v21, 4 }
 0x35a   : > { %v1875_v39 = vadd.f32 %v6180_v35, %v1874_v18  ;;  %v2923_v50 = vsel %vm9126_vm5, %v2856_v47, %v2922_v57  ;;  %v6891_v52 = vmax.f32 %v6846_v58, %v4311_v60  ;;  %v4287_v25 = vrot.slane %v6873_v38, 9  ;;  %vm9148_vm5 = vmmov %vm9147_vm4 }
 0x35b   : > { %v6870_v16 = vsel %vm9127_vm11, 0.0, %v2923_v50  ;;  %9130 = vst [vmem:[#allocation92_spill] sm:$0xff] %v6884_v61  ;;  %v2646_v60 = vmax.f32 %v6841_v21, %v2323_v27  ;;  %v4288_v43 = vrot.slane %v6884_v61, 9  ;;  %v6932_v28 = vmax.f32 %v6856_v40, %v4312_v17  ;;  %vm9149_vm11 = vmmov %vm9145_vm2 }
 0x35c   : > { %v6877_v4 = vmax.f32 %v1875_v39, 0.0  ;;  %3176 = vrot.lane.b32.xlu2 %v6870_v16, %s4441_s30  ;;  %v3030_v13 = vrot.slane %v6870_v16, 2  ;;  %v3009_v14 = vrot.slane %v6870_v16, 1  ;;  %v6913_v39 = vpop.f32.mrf.mxu2 }
 0x35e   : > { %9129 = vst [vmem:[#allocation138_spill] sm:$0xff] %v6877_v4  ;;  %v6894_v54 = vsel %vm9131_vm12, %v3030_v13, %v3031_v19  ;;  %v6897_v47 = vsel %vm9132_vm1, %v3009_v14, %v3010_v7  ;;  %v6900_v6 = vrot.slane %v6877_v4, 2  ;;  %v6903_v18 = vrot.slane %v6877_v4, 4  ;;  %vm9151_vm12 = vmmov %vm9145_vm2 }
 0x35f   : > { %3224 = vrot.lane.b32.xlu1 %v6894_v54, %s4442_s9  ;;  %3200 = vrot.lane.b32.xlu0 %v6897_v47, %s4443_s11  ;;  %v2036_v55 = vrot.slane %v6877_v4, 6  ;;  %v8512_v57 = vrot.slane %v6877_v4, 7  ;;  %v6918_v19 = vrot.slane %v6841_v21, 6  ;;  %v2678_v13 = vmax.f32 %v6822_v56, %v2387_v48 }
 0x360   : > { %9133 = vst [vmem:[#allocation159_spill] sm:$0xff] %v6903_v18  ;;  %v4266_v50 = vrot.slane %v6900_v6, 9  ;;  %v4267_v31 = vrot.slane %v6903_v18, 9  ;;  %v9136_v56 = vmax.f32 %v6580_v30, %v6658_v11  ;;  %v9139_v11 = vmax.f32 %v6497_v46, %v6545_v12 }
 0x361   : > { %9134 = vst [vmem:[#allocation20_spill] sm:$0xff] %v6918_v19  ;;  %v1877_v14 = vpop.f32.mrf.mxu0  ;;  %v2267_v7 = vrot.slane %v8512_v57, 2  ;;  %v4268_v0 = vrot.slane %v2036_v55, 9  ;;  %v6926_v27 = vsel %vm2910_vm15, %v2036_v55, %v6626_v22  ;;  %v2647_v57 = vmax.f32 %v6873_v38, %v4287_v25 }
 0x362   : > { %9135 = vst [vmem:[#allocation62_spill] sm:$0xff] %v6926_v27  ;;  %v1878_v41 = vadd.f32 %v6180_v35, %v1877_v14  ;;  %v2619_v33 = vmax.f32 %v6900_v6, %v4266_v50  ;;  %v2620_v58 = vmax.f32 %v6903_v18, %v4267_v31  ;;  %v2742_v59 = vmax.f32 %v9136_v56, %v2646_v60 }
 0x363   : > { %v2618_v48 = vmax.f32 %v6877_v4, %v2267_v7  ;;  %v4313_v22 = vrot.slane %v6862_v23, 9  ;;  %v9138_v50 = vmax.f32 %v6572_v8, %v6653_v63  ;;  %v2621_v25 = vmax.f32 %v2036_v55, %v4268_v0 }
 0x364   : > { %v6940_v5 = vmax.f32 %v1878_v41, 0.0  ;;  %3082 = vrot.lane.b32.xlu2 %v6382_v51, %s4435_s12  ;;  %v2731_v35 = vmax.f32 %v2619_v33, %v6577_v29  ;;  %v2732_v17 = vmax.f32 %v2620_v58, %v6584_v45  ;;  %v2648_v41 = vmax.f32 %v6884_v61, %v4288_v43  ;;  %v6971_v0 = vpop.f32.mrf.mxu2 }
 0x365   : > { %v6949_v31 = vmax.f32 %v9138_v50, %v2678_v13  ;;  %v2730_v56 = vmax.f32 %v2618_v48, %v9139_v11  ;;  %v4289_v60 = vrot.slane %v6918_v19, 9  ;;  %v2743_v58 = vmax.f32 %v6704_v2, %v2647_v57 }
 0x366   : > { %9137 = vst [vmem:[#allocation30_spill] sm:$0xff] %v6940_v5  ;;  %v6957_v51 = vrot.slane %v6940_v5, 2  ;;  %v6960_v29 = vrot.slane %v6940_v5, 4  ;;  %v8518_v45 = vrot.slane %v6940_v5, 7  ;;  %v2859_v63 = vperm.slane %v2731_v35, 0 }
 0x367   : > { %3130 = vrot.lane.b32.xlu1 %v6897_v47, %s4439_s16  ;;  %3106 = vrot.lane.b32.xlu0 %v6870_v16, %s4437_s14  ;;  %v2858_v12 = vperm.slane %v2730_v56, 0  ;;  %v6968_v33 = vrot.slane %v6940_v5, 6  ;;  %v2870_v43 = vperm.slane %v2742_v59, 0  ;;  %v2860_v7 = vperm.slane %v2732_v17, 0  ;;  %v1922_v59 = vpop.f32.mrf.mxu3 }
 0x368   : > { %9140 = vst [vmem:[#allocation31_spill] sm:$0xff] %v6957_v51  ;;  %v2275_v55 = vrot.slane %v8518_v45, 2  ;;  %v4269_v13 = vrot.slane %v6957_v51, 9  ;;  %v4270_v14 = vrot.slane %v6960_v29, 9  ;;  %v2733_v48 = vmax.f32 %v2621_v25, %v6588_v62 }
 0x369   : > { %9141 = vst [vmem:[#allocation51_spill] sm:$0xff] %v6968_v33  ;;  %v2924_v35 = vsel %vm9119_vm0, %v2859_v63, %v2858_v12  ;;  %v4271_v50 = vrot.slane %v6968_v33, 9  ;;  %v2759_v2 = vmax.f32 %v6689_v42, %v6891_v52  ;;  %v2649_v45 = vmax.f32 %v6918_v19, %v4289_v60 }
 0x36a   : > { %v2622_v57 = vmax.f32 %v6940_v5, %v2275_v55  ;;  %v2623_v11 = vmax.f32 %v6957_v51, %v4269_v13  ;;  %v2624_v56 = vmax.f32 %v6960_v29, %v4270_v14  ;;  %v2744_v62 = vmax.f32 %v6707_v37, %v2648_v41  ;;  %v7001_v37 = vld [vmem:[%s8330_s2] ss:$0 sm:$0xff] }
 0x36b   : > { %v2625_v17 = vmax.f32 %v6968_v33, %v4271_v50  ;;  %v2871_v25 = vperm.slane %v2743_v58, 0  ;;  %v2933_v63 = vsel %vm8576_vm3, %v2870_v43, %v6887_v44  ;;  %v9142_v42 = vmax.f32 %v6505_v10, %v6559_v9 }
 0x36c   : > { %3154 = vrot.lane.b32.xlu2 %v6894_v54, %s4440_s29  ;;  %v2735_v12 = vmax.f32 %v2623_v11, %v6593_v32  ;;  %v2736_v55 = vmax.f32 %v2624_v56, %v6596_v49  ;;  %v2925_v60 = vsel %vm2908_vm14, %v2860_v7, %v2924_v35  ;;  %v1923_v44 = vadd.f32 %v7001_v37, %v1922_v59  ;;  %v9143_v49 = vld [vmem:[#allocation120_spill] sm:$0xff] }
 0x36d   : > { %v2734_v52 = vmax.f32 %v2622_v57, %v9142_v42  ;;  %v2861_v41 = vperm.slane %v2733_v48, 0  ;;  %v2737_v58 = vmax.f32 %v2625_v17, %v6599_v20  ;;  %v2681_v43 = vmax.f32 %v6862_v23, %v4313_v22  ;;  %v9144_v57 = vld [vmem:[#allocation33_spill] sm:$0xff]  ;;  %v9146_v42 = vld [vmem:[#allocation111_spill] sm:$0xff] }
 0x36e   : > { %v1899_v9 = vadd.f32 %v7001_v37, %v6913_v39  ;;  %v2863_v13 = vperm.slane %v2735_v12, 0  ;;  %v2760_v14 = vmax.f32 %v9143_v49, %v6932_v28  ;;  %v2934_v50 = vsel %vm8575_vm13, %v2871_v25, %v2933_v63  ;;  %v9153_v49 = vld [vmem:[#allocation154_spill] sm:$0xff] }
 0x36f   : > { %v2862_v32 = vperm.slane %v2734_v52, 0  ;;  %v2926_v7 = vsel %vm2910_vm15, %v2861_v41, %v2925_v60  ;;  %v2865_v35 = vperm.slane %v2737_v58, 0  ;;  %v2745_v59 = vmax.f32 %v9144_v57, %v2649_v45 }
 0x370   : > { %v1904_v48 = vpop.f32.mrf.mxu2  ;;  %v2864_v11 = vperm.slane %v2736_v55, 0  ;;  %v2872_v22 = vperm.slane %v2744_v62, 0  ;;  %v7015_v39 = vmax.f32 %v1923_v44, 0.0  ;;  %v2761_v52 = vmax.f32 %v9146_v42, %v2681_v43 }
 0x371   : > { %v2927_v20 = vsel %vm8576_vm3, %v2862_v32, %v2926_v7  ;;  %v2986_v28 = vsel %vm9145_vm2, %v2865_v35, 0.0  ;;  %v7020_v12 = vmax.f32 %v1899_v9, 0.0  ;;  %v7024_v63 = vperm.slane %v2759_v2, 0 }
 0x372   : > { %v2928_v17 = vsel %vm8575_vm13, %v2863_v13, %v2927_v20  ;;  %v2935_v45 = vsel %vm9148_vm5, %v2872_v22, %v2934_v50  ;;  %v1905_v62 = vadd.f32 %v7001_v37, %v1904_v48  ;;  %v2873_v60 = vperm.slane %v2745_v59, 0  ;;  %v1925_v59 = vpop.f32.mrf.mxu3  ;;  %v9157_v22 = vld [vmem:[#allocation57_spill] sm:$0xff] }
 0x373   : > { %v2929_v25 = vsel %vm9147_vm4, %v2864_v11, %v2928_v17  ;;  %v7030_v44 = vperm.slane %v2760_v14, 0  ;;  %v3034_v58 = vrot.slane %v2986_v28, 2  ;;  %v3013_v9 = vrot.slane %v2986_v28, 1 }
 0x374   : > { %v7028_v55 = vsel %vm9149_vm11, 0.0, %v2929_v25  ;;  %v7037_v2 = vsel %vm9151_vm12, 0.0, %v2935_v45  ;;  %v7039_v32 = vperm.slane %v2761_v52, 0  ;;  %v7042_v13 = vrot.slane %v7015_v39, 2 }
 0x375   : > { %9150 = vst [vmem:[#allocation90_spill] sm:$0xff] %v7028_v55  ;;  %3178 = vrot.lane.b32.xlu0 %v7028_v55, %s4441_s30  ;;  %v3033_v41 = vrot.slane %v7028_v55, 2  ;;  %v3012_v43 = vrot.slane %v7028_v55, 1  ;;  %v3816_v14 = vrot.slane %v9153_v49, 3  ;;  %vm9154_vm1 = vcmask 1045504  }
 0x376   : > { %9152 = vst [vmem:[#allocation103_spill] sm:$0xff] %v7037_v2  ;;  %vm9155_vm0 = vcmask 1046528   ;;  %v2058_v50 = vrot.slane %v7020_v12, 2  ;;  %v8522_v57 = vrot.slane %v7015_v39, 7  ;;  %v7053_v48 = vmax.f32 %v1905_v62, 0.0  ;;  %vm9163_vm5 = vmmov %vm9154_vm1 }
 0x377   : > { %v7046_v7 = vsel %vm9154_vm1, %v3033_v41, %v3034_v58  ;;  %v7049_v35 = vsel %vm9155_vm0, %v3012_v43, %v3013_v9  ;;  %v2987_v11 = vsel %vm9145_vm2, %v2873_v60, 0.0  ;;  %v7061_v20 = vrot.slane %v7020_v12, 4  ;;  %v9159_v41 = vld [vmem:[#allocation152_spill] sm:$0xff]  ;;  %vm9162_vm4 = vmmov %vm9155_vm0 }
 0x378   : > { %9156 = vst [vmem:[#allocation110_spill] sm:$0xff] %v7053_v48  ;;  %3226 = vrot.lane.b32.xlu2 %v7046_v7, %s4442_s9  ;;  %3202 = vrot.lane.b32.xlu1 %v7049_v35, %s4443_s11  ;;  %v3739_v17 = vsel %vm2908_vm14, %v9153_v49, %v9157_v22  ;;  %v1902_v28 = vadd.f32 %v7001_v37, %v6971_v0  ;;  %v7070_v52 = vrot.slane %v7015_v39, 4  ;;  %v7073_v25 = vrot.slane %v7015_v39, 6  ;;  %vm9188_vm1 = vmmov %vm9145_vm2 }
 0x379   : > { %v3015_v45 = vrot.slane %v7037_v2, 1  ;;  %v3036_v62 = vrot.slane %v7037_v2, 2  ;;  %v7078_v60 = vrot.slane %v7020_v12, 6  ;;  %v7082_v58 = vsel %vm2908_vm14, %v3816_v14, %v9159_v41  ;;  %vm9189_vm0 = vmmov %vm9188_vm1 }
 0x37a   : > { %9158 = vst [vmem:[#allocation8_spill] sm:$0xff] %v7070_v52  ;;  %v3016_v0 = vrot.slane %v2987_v11, 1  ;;  %v4290_v43 = vrot.slane %v2058_v50, 9  ;;  %v7086_v9 = vrot.slane %v8522_v57, 2  ;;  %v4314_v22 = vrot.slane %v7042_v13, 9  ;;  %v1928_v30 = vpop.f32.mrf.mxu3  ;;  %vm9194_vm2 = vmmov %vm9162_vm4 }
 0x37b   : > { %v3037_v56 = vrot.slane %v2987_v11, 2  ;;  %v7090_v42 = vrot.slane %v7053_v48, 2  ;;  %v4291_v18 = vrot.slane %v7061_v20, 9  ;;  %v7094_v40 = vmax.f32 %v1902_v28, 0.0 }
 0x37c   : > { %v9161_v14 = vrot.slane %v7020_v12, 7  ;;  %v4315_v57 = vrot.slane %v7070_v52, 9  ;;  %v4316_v51 = vrot.slane %v7073_v25, 9  ;;  %v7103_v11 = vsel %vm9162_vm4, %v3015_v45, %v3016_v0 }
 0x37d   : > { %9160 = vst [vmem:[#allocation46_spill] sm:$0xff] %v7094_v40  ;;  %3060 = vrot.lane.b32.xlu0 %v6897_v47, %s4433_s10  ;;  %v7106_v61 = vsel %vm9163_vm5, %v3036_v62, %v3037_v56  ;;  %v7109_v19 = vrot.slane %v7053_v48, 4  ;;  %v4292_v28 = vrot.slane %v7078_v60, 9  ;;  %v1926_v47 = vadd.f32 %v7001_v37, %v1925_v59 }
 0x37e   : > { %v2331_v41 = vrot.slane %v9161_v14, 2  ;;  %v2651_v38 = vmax.f32 %v2058_v50, %v4290_v43  ;;  %v7116_v33 = vmax.f32 %v7042_v13, %v4314_v22  ;;  %v9164_v56 = vrot.slane %v7053_v48, 7 }
 0x37f   : > { %v4296_v62 = vrot.slane %v7090_v42, 9  ;;  %v2652_v59 = vmax.f32 %v7061_v20, %v4291_v18  ;;  %v3719_v0 = vrot.slane %v7053_v48, 1  ;;  %v7130_v14 = vmax.f32 %v7070_v52, %v4315_v57 }
 0x380   : > { %3108 = vrot.lane.b32.xlu2 %v7028_v55, %s4437_s14  ;;  %3084 = vrot.lane.b32.xlu1 %v6894_v54, %s4435_s12  ;;  %v2347_v45 = vrot.slane %v9164_v56, 2  ;;  %v2650_v22 = vmax.f32 %v7020_v12, %v2331_v41  ;;  %v7133_v23 = vmax.f32 %v7073_v25, %v4316_v51  ;;  %v7136_v54 = vrot.slane %v7094_v40, 2 }
 0x381   : > { %v4297_v56 = vrot.slane %v7109_v19, 9  ;;  %v9166_v8 = vrot.slane %v6877_v4, 7  ;;  %v7145_v43 = vsel %vm3611_vm9, %v3719_v0, %v2058_v50  ;;  %v7147_v41 = vmax.f32 %v1926_v47, 0.0 }
 0x382   : > { %9165 = vst [vmem:[#allocation155_spill] sm:$0xff] %v7136_v54  ;;  %v1929_v57 = vadd.f32 %v7001_v37, %v1928_v30  ;;  %v7151_v51 = vrot.slane %v7094_v40, 4  ;;  %v3771_v52 = vrot.slane %v7053_v48, 3  ;;  %v7155_v5 = vrot.slane %v7053_v48, 6 }
 0x383   : > { %v7142_v18 = vsel %vm2910_vm15, %v9166_v8, %v3739_v17  ;;  %v2658_v21 = vmax.f32 %v7053_v48, %v2347_v45  ;;  %v2659_v8 = vmax.f32 %v7090_v42, %v4296_v62  ;;  %v3823_v17 = vrot.slane %v7053_v48, 5 }
 0x384   : > { %9167 = vst [vmem:[#allocation117_spill] sm:$0xff] %v7142_v18  ;;  %v9170_v50 = vrot.slane %v7094_v40, 7  ;;  %v7167_v47 = vmax.f32 %v7078_v60, %v4292_v28  ;;  %v4293_v45 = vrot.slane %v7136_v54, 9  ;;  %v2660_v62 = vmax.f32 %v7109_v19, %v4297_v56 }
 0x385   : > { %9168 = vst [vmem:[#allocation76_spill] sm:$0xff] %v7151_v51  ;;  %3132 = vrot.lane.b32.xlu0 %v7049_v35, %s4439_s16  ;;  %v7174_v34 = vrot.slane %v7094_v40, 6  ;;  %v7178_v1 = vsel %vm3611_vm9, %v3771_v52, %v7061_v20  ;;  %v4294_v28 = vrot.slane %v7151_v51, 9  ;;  %v7184_v49 = vrot.slane %v7147_v41, 2 }
 0x386   : > { %9169 = vst [vmem:[#allocation143_spill] sm:$0xff] %v7155_v5  ;;  %v7164_v30 = vrot.slane %v9170_v50, 2  ;;  %v7180_v50 = vmax.f32 %v1929_v57, 0.0  ;;  %v4298_v0 = vrot.slane %v7155_v5, 9  ;;  %v2746_v20 = vmax.f32 %v2650_v22, %v2658_v21 }
 0x387   : > { %9171 = vst [vmem:[#allocation65_spill] sm:$0xff] %v7174_v34  ;;  %v1907_v56 = vpop.f32.mrf.mxu2  ;;  %v2747_v52 = vmax.f32 %v2651_v38, %v2659_v8  ;;  %v7194_v57 = vsel %vm3611_vm9, %v3823_v17, %v7078_v60  ;;  %v2655_v36 = vmax.f32 %v7136_v54, %v4293_v45  ;;  %v2748_v27 = vmax.f32 %v2652_v59, %v2660_v62 }
 0x388   : > { %9172 = vst [vmem:[#allocation112_spill] sm:$0xff] %v7180_v50  ;;  %3180 = vrot.lane.b32.xlu2 %v7037_v2, %s4441_s30  ;;  %3156 = vrot.lane.b32.xlu1 %v7046_v7, %s4440_s29  ;;  %v1908_v18 = vadd.f32 %v7001_v37, %v1907_v56  ;;  %v2654_v10 = vmax.f32 %v7094_v40, %v7164_v30  ;;  %v4295_v46 = vrot.slane %v7174_v34, 9  ;;  %v7212_v22 = vrot.slane %v7180_v50, 2 }
 0x389   : > { %9173 = vst [vmem:[#allocation19_spill] sm:$0xff] %v7184_v49  ;;  %v7206_v21 = vsel %vm2910_vm15, %v6900_v6, %v7082_v58  ;;  %v2656_v60 = vmax.f32 %v7151_v51, %v4294_v28  ;;  %v7215_v8 = vrot.slane %v7180_v50, 4  ;;  %v2661_v17 = vmax.f32 %v7155_v5, %v4298_v0  ;;  %v1931_v28 = vpop.f32.mrf.mxu3 }
 0x38a   : > { %9174 = vst [vmem:[#allocation161_spill] sm:$0xff] %v7206_v21  ;;  %v7208_v38 = vmax.f32 %v1908_v18, 0.0  ;;  %v2874_v59 = vperm.slane %v2746_v20, 0  ;;  %v2875_v30 = vperm.slane %v2747_v52, 0  ;;  %v2876_v0 = vperm.slane %v2748_v27, 0  ;;  %v9180_v52 = vld [vmem:[#allocation63_spill] sm:$0xff] }
 0x38b   : > { %9176 = vst [vmem:[#allocation123_spill] sm:$0xff] %v7212_v22  ;;  %v2657_v56 = vmax.f32 %v7174_v34, %v4295_v46  ;;  %v7233_v20 = vrot.slane %v7180_v50, 6  ;;  %v3868_v53 = vsel %vm2908_vm14, %v3867_v15, %v9180_v52  ;;  %v2749_v46 = vmax.f32 %v7167_v47, %v2661_v17 }
 0x38c   : > { %9175 = vst [vmem:[#allocation80_spill] sm:$0xff] %v7208_v38  ;;  %v7222_v6 = vrot.slane %v7208_v38, 2  ;;  %v7225_v58 = vrot.slane %v7208_v38, 4  ;;  %v8553_v18 = vrot.slane %v7208_v38, 7  ;;  %v7229_v62 = vrot.slane %v7208_v38, 6 }
 0x38d   : > { %3204 = vrot.lane.b32.xlu0 %v7103_v11, %s4443_s11  ;;  %vm9181_vm11 = vcmask 1042434   ;;  %v9182_v15 = vrot.slane %v7180_v50, 7  ;;  %v1932_v34 = vadd.f32 %v7001_v37, %v1931_v28  ;;  %v4320_v47 = vrot.slane %v7212_v22, 9 }
 0x38e   : > { %9177 = vst [vmem:[#allocation137_spill] sm:$0xff] %v7222_v6  ;;  %v2355_v45 = vrot.slane %v8553_v18, 2  ;;  %v4299_v51 = vrot.slane %v7222_v6, 9  ;;  %v4300_v24 = vrot.slane %v7225_v58, 9  ;;  %v4301_v54 = vrot.slane %v7229_v62, 9  ;;  %vm9195_vm4 = vmmov %vm9181_vm11 }
 0x38f   : > { %9178 = vst [vmem:[#allocation82_spill] sm:$0xff] %v7225_v58  ;;  %v2936_v27 = vsel %vm9181_vm11, %v2875_v30, %v2874_v59  ;;  %v2411_v52 = vrot.slane %v9182_v15, 2  ;;  %v7252_v18 = vsel %vm2910_vm15, %v6960_v29, %v3868_v53  ;;  %v4321_v17 = vrot.slane %v7215_v8, 9  ;;  %vm9196_vm5 = vmmov %vm9195_vm4 }
 0x390   : > { %9179 = vst [vmem:[#allocation167_spill] sm:$0xff] %v7229_v62  ;;  %3062 = vrot.lane.b32.xlu2 %v7049_v35, %s4433_s10  ;;  %3228 = vrot.lane.b32.xlu1 %v7106_v61, %s4442_s9  ;;  %v2662_v40 = vmax.f32 %v7208_v38, %v2355_v45  ;;  %v2663_v35 = vmax.f32 %v7222_v6, %v4299_v51  ;;  %v4322_v59 = vrot.slane %v7233_v20, 9  ;;  %v2877_v28 = vperm.slane %v2749_v46, 0  ;;  %vm9199_vm11 = vmmov %vm9195_vm4 }
 0x391   : > { %9183 = vst [vmem:[#allocation114_spill] sm:$0xff] %v7252_v18  ;;  %v2664_v5 = vmax.f32 %v7225_v58, %v4300_v24  ;;  %v2665_v21 = vmax.f32 %v7229_v62, %v4301_v54  ;;  %v2937_v29 = vsel %vm2908_vm14, %v2876_v0, %v2936_v27  ;;  %v7264_v45 = vrot.slane %v7147_v41, 4  ;;  %v1934_v46 = vpop.f32.mrf.mxu3  ;;  %v9197_v58 = vld [vmem:[#allocation75_spill] sm:$0xff] }
 0x392   : > { %v2750_v30 = vmax.f32 %v2654_v10, %v2662_v40  ;;  %v2751_v15 = vmax.f32 %v2655_v36, %v2663_v35  ;;  %v2690_v24 = vmax.f32 %v7180_v50, %v2411_v52  ;;  %v7267_v51 = vmax.f32 %v1932_v34, 0.0 }
 0x393   : > { %v2752_v53 = vmax.f32 %v2656_v60, %v2664_v5  ;;  %v2753_v18 = vmax.f32 %v2657_v56, %v2665_v21  ;;  %v4317_v10 = vrot.slane %v7184_v49, 9  ;;  %v2938_v36 = vsel %vm2910_vm15, %v2877_v28, %v2937_v29 }
 0x394   : > { %v2878_v54 = vperm.slane %v2750_v30, 0  ;;  %v2879_v62 = vperm.slane %v2751_v15, 0  ;;  %v9184_v40 = vrot.slane %v7147_v41, 7  ;;  %v2691_v60 = vmax.f32 %v7212_v22, %v4320_v47 }
 0x395   : > { %3086 = vrot.lane.b32.xlu0 %v7046_v7, %s4435_s12  ;;  %v2881_v5 = vperm.slane %v2753_v18, 0  ;;  %v2880_v0 = vperm.slane %v2752_v53, 0  ;;  %v7280_v56 = vmax.f32 %v7215_v8, %v4321_v17  ;;  %v7283_v7 = vmax.f32 %v7233_v20, %v4322_v59 }
 0x396   : > { %v7275_v21 = vrot.slane %v9184_v40, 2  ;;  %v2939_v34 = vsel %vm8576_vm3, %v2878_v54, %v2938_v36  ;;  %v9185_v35 = vmax.f32 %v7015_v39, %v7086_v9  ;;  %v7297_v17 = vrot.slane %v7147_v41, 6 }
 0x397   : > { %v1910_v18 = vpop.f32.mrf.mxu2  ;;  %v2940_v27 = vsel %vm8575_vm13, %v2879_v62, %v2939_v34  ;;  %vm9187_vm12 = vcmask 1047559   ;;  %v8559_v15 = vrot.slane %v7267_v51, 7  ;;  %v7303_v53 = vmax.f32 %v7184_v49, %v4317_v10 }
 0x398   : > { %3134 = vrot.lane.b32.xlu2 %v7103_v11, %s4439_s16  ;;  %3110 = vrot.lane.b32.xlu1 %v7037_v2, %s4437_s14  ;;  %v7294_v47 = vmax.f32 %v9185_v35, %v2690_v24  ;;  %9186 = vst [vmem:[#allocation182_spill] sm:$0xff] %v7297_v17  ;;  %v1911_v59 = vadd.f32 %v7001_v37, %v1910_v18  ;;  %v2988_v29 = vsel %vm9189_vm0, %v2881_v5, 0.0  ;;  %v7320_v40 = vrot.slane %v7267_v51, 2  ;;  %v9201_v2 = vld [vmem:[#allocation102_spill] sm:$0xff] }
 0x399   : > { %v2941_v30 = vsel %vm9187_vm12, %v2880_v0, %v2940_v27  ;;  %v2763_v28 = vmax.f32 %v7116_v33, %v2691_v60  ;;  %v2764_v36 = vmax.f32 %v7130_v14, %v7280_v56  ;;  %v2765_v10 = vmax.f32 %v7133_v23, %v7283_v7 }
 0x39a   : > { %v7306_v62 = vsel %vm9188_vm1, 0.0, %v2941_v30  ;;  %v7312_v24 = vmax.f32 %v1911_v59, 0.0  ;;  %9190 = vst [vmem:[#allocation139_spill] sm:$0xff] %v7320_v40  ;;  %v2890_v5 = vperm.slane %v7294_v47, 0  ;;  %v9191_v0 = vrot.slane %v7020_v12, 1  ;;  %vm9205_vm1 = vmmov %vm9195_vm4 }
 0x39b   : > { %v3018_v54 = vrot.slane %v7306_v62, 1  ;;  %v9192_v60 = vrot.slane %v7020_v12, 3  ;;  %v3019_v14 = vrot.slane %v2988_v29, 1  ;;  %v7341_v7 = vrot.slane %v8559_v15, 2  ;;  %vm9207_vm0 = vmmov %vm9205_vm1 }
 0x39c   : > { %v3694_v33 = vsel %vm3611_vm9, %v7053_v48, %v9191_v0  ;;  %v7334_v23 = vrot.slane %v7312_v24, 2  ;;  %v7337_v56 = vrot.slane %v7312_v24, 4  ;;  %v1935_v18 = vadd.f32 %v7001_v37, %v1934_v46 }
 0x39d   : > { %v3746_v34 = vsel %vm3611_vm9, %v7090_v42, %v9192_v60  ;;  %3158 = vrot.lane.b32.xlu0 %v7106_v61, %s4440_s29  ;;  %v3039_v27 = vrot.slane %v7306_v62, 2  ;;  %v7346_v42 = vrot.slane %v7312_v24, 6  ;;  %v2362_v35 = vrot.slane %v7312_v24, 7 }
 0x39e   : > { %v7350_v47 = vsel %vm9194_vm2, %v3018_v54, %v3019_v14  ;;  %v4302_v59 = vrot.slane %v7334_v23, 9  ;;  %v4303_v30 = vrot.slane %v7337_v56, 9  ;;  %v3747_v0 = vrot.slane %v7312_v24, 1  ;;  %v3324_v54 = vld [vmem:[%s8331_s3 + $0x40] sm:$0xff]  ;;  %vm9211_vm2 = vmmov %vm9207_vm0 }
 0x39f   : > { %9193 = vst [vmem:[#allocation64_spill] sm:$0xff] %v7346_v42  ;;  %v7359_v46 = vpop.f32.mrf.mxu3  ;;  %v2363_v60 = vrot.slane %v2362_v35, 2  ;;  %v4304_v15 = vrot.slane %v7346_v42, 9  ;;  %v3695_v14 = vsel %vm9195_vm4, %v2362_v35, %v3694_v33  ;;  %v3721_v52 = vsel %vm9196_vm5, %v7312_v24, %v7145_v43  ;;  %3361 = vmatpush.msra.mxu1 %v3324_v54  ;;  %v9200_v43 = vld [vmem:[#allocation146_spill] sm:$0xff]  ;;  %vm9212_vm4 = vmmov %vm9207_vm0 }
 0x3a0   : > { %3182 = vrot.lane.b32.xlu1 %v7306_v62, %s4441_s30  ;;  %3206 = vrot.lane.b32.xlu2 %v7350_v47, %s4443_s11  ;;  %v3040_v9 = vrot.slane %v2988_v29, 2  ;;  %v2667_v48 = vmax.f32 %v7334_v23, %v4302_v59  ;;  %v2668_v49 = vmax.f32 %v7337_v56, %v4303_v30  ;;  %v3696_v6 = vsel %vm2908_vm14, %v9197_v58, %v3695_v14  ;;  %v9204_v54 = vld [vmem:[#allocation158_spill] sm:$0xff] }
 0x3a1   : > { %v2666_v22 = vmax.f32 %v7312_v24, %v2363_v60  ;;  %v2669_v38 = vmax.f32 %v7346_v42, %v4304_v15  ;;  %v9198_v4 = vrot.slane %v7015_v39, 5  ;;  %v3748_v35 = vsel %vm9199_vm11, %v3747_v0, %v3746_v34 }
 0x3a2   : > { %v2755_v29 = vmax.f32 %v2667_v48, %v9200_v43  ;;  %v2756_v59 = vmax.f32 %v2668_v49, %v9201_v2  ;;  %v2891_v55 = vperm.slane %v2763_v28, 0  ;;  %vm9202_vm12 = vcmask 1045504   ;;  %v7394_v48 = vpop.permute.xlu2 %3056 }
 0x3a3   : > { %v3698_v33 = vsel %vm2910_vm15, %v9198_v4, %v3696_v6  ;;  %v7386_v58 = vsel %vm9202_vm12, %v3039_v27, %v3040_v9  ;;  %v9203_v15 = vmax.f32 %v6671_v26, %v6778_v3  ;;  %v2757_v4 = vmax.f32 %v2669_v38, %v9204_v54  ;;  %v3322_v27 = vld [vmem:[%s8331_s3 + $0x30] sm:$0xff] }
 0x3a4   : > { %v7383_v30 = vsel %vm8576_vm3, %v7215_v8, %v3698_v33  ;;  %v3749_v6 = vsel %vm2908_vm14, %v6671_v26, %v3748_v35  ;;  %v2883_v2 = vperm.slane %v2755_v29, 0  ;;  %v2884_v49 = vperm.slane %v2756_v59, 0  ;;  %v3323_v8 = vld [vmem:[%s8331_s3 + $0x38] sm:$0xff] }
 0x3a5   : > { %v2754_v60 = vmax.f32 %v2666_v22, %v9203_v15  ;;  %3230 = vrot.lane.b32.xlu0 %v7386_v58, %s4442_s9  ;;  %v7402_v9 = vrot.slane %v7267_v51, 4  ;;  %v4323_v3 = vrot.slane %v7320_v40, 9  ;;  %v7405_v38 = vmax.f32 %v1935_v18, 0.0  ;;  %3362 = vmatpush.msra.mxu1 %v3323_v8 }
 0x3a6   : > { %v2694_v28 = vmax.f32 %v7267_v51, %v7341_v7  ;;  %v2892_v34 = vperm.slane %v2764_v36, 0  ;;  %v7412_v0 = vperm.slane %v2765_v10, 0  ;;  %v2948_v14 = vsel %vm9205_vm1, %v2891_v55, %v2890_v5  ;;  %v3321_v55 = vld [vmem:[%s8331_s3 + $0x28] sm:$0xff] }
 0x3a7   : > { %v2882_v22 = vperm.slane %v2754_v60, 0  ;;  %v9206_v33 = vrot.slane %v7015_v39, 7  ;;  %v3724_v18 = vrot.slane %v7180_v50, 5  ;;  %v1940_v36 = vpop.f32.mrf.mxu3  ;;  %v2885_v7 = vperm.slane %v2757_v4, 0  ;;  %3363 = vmatpush.msra.mxu1 %v3322_v27 }
 0x3a8   : > { %3064 = vrot.lane.b32.xlu1 %v7103_v11, %s4433_s10  ;;  %3088 = vrot.lane.b32.xlu2 %v7106_v61, %s4435_s12  ;;  %v9208_v5 = vrot.slane %v6671_v26, 7  ;;  %v1941_v11 = vadd.f32 %v7001_v37, %v1940_v36  ;;  %v4324_v61 = vrot.slane %v7402_v9, 9  ;;  %v2695_v15 = vmax.f32 %v7320_v40, %v4323_v3 }
 0x3a9   : > { %v3750_v35 = vsel %vm2910_vm15, %v9206_v33, %v3749_v6  ;;  %v2942_v43 = vsel %vm9207_vm0, %v2883_v2, %v2882_v22  ;;  %v9209_v54 = vmax.f32 %v7147_v41, %v7275_v21  ;;  %v3700_v6 = vrot.slane %v7405_v38, 3  ;;  %3364 = vmatpush.msra.mxu1 %v3321_v55 }
 0x3aa   : > { %v3751_v10 = vsel %vm8576_vm3, %v7233_v20, %v3750_v35  ;;  %v3722_v29 = vsel %vm2908_vm14, %v9208_v5, %v3721_v52  ;;  %v2943_v59 = vsel %vm2908_vm14, %v2884_v49, %v2942_v43  ;;  %v3320_v20 = vld [vmem:[%s8331_s3 + $0x20] sm:$0xff]  ;;  %v7444_v52 = vrot.slane %v7405_v38, 4 }
 0x3ab   : > { %v2944_v60 = vsel %vm2910_vm15, %v2885_v7, %v2943_v59  ;;  %v2766_v4 = vmax.f32 %v9209_v54, %v2694_v28  ;;  %v7447_v2 = vmax.f32 %v1941_v11, 0.0  ;;  %v9210_v49 = vperm.slane %v6949_v31, 0  ;;  %3365 = vmatpush.msra.mxu1 %v3320_v20  ;;  %v7494_v7 = vpop.permute.xlu2 %3104 }
 0x3ac   : > { %v3723_v21 = vsel %vm2910_vm15, %v7073_v25, %v3722_v29  ;;  %v3773_v3 = vsel %vm9211_vm2, %v7334_v23, %v7178_v1  ;;  %v3752_v28 = vrot.slane %v7405_v38, 5  ;;  %v7464_v31 = vsel %vm9212_vm4, %v7337_v56, %v7194_v57  ;;  %v3319_v1 = vld [vmem:[%s8331_s3 + $0x18] sm:$0xff]  ;;  %v3317_v29 = vld [vmem:[%s8331_s3 + $0x8] sm:$0xff] }
 0x3ad   : > { %v2945_v8 = vsel %vm8576_vm3, %v9210_v49, %v2944_v60  ;;  %v3725_v27 = vsel %vm8576_vm3, %v3724_v18, %v3723_v21  ;;  %3112 = vrot.lane.b32.xlu0 %v7306_v62, %s4437_s14  ;;  %vm9213_vm5 = vcmask 1047559   ;;  %v7477_v23 = vrot.slane %v7447_v2, 4  ;;  %v3318_v18 = vld [vmem:[%s8331_s3 + $0x10] sm:$0xff]  ;;  %3366 = vmatpush.msra.mxu1 %v3319_v1 }
 0x3ae   : > { %v2946_v22 = vsel %vm8575_vm13, %v7024_v63, %v2945_v8  ;;  %v7474_v63 = vrot.slane %v7447_v2, 2  ;;  %v9214_v57 = vrot.slane %v6671_v26, 1  ;;  %v2767_v33 = vmax.f32 %v7303_v53, %v2695_v15  ;;  %vm9217_vm12 = vmmov %vm9213_vm5 }
 0x3af   : > { %v2947_v25 = vsel %vm9213_vm5, %v7030_v44, %v2946_v22  ;;  %v2949_v35 = vsel %vm2908_vm14, %v2892_v34, %v2948_v14  ;;  %v7485_v44 = vrot.slane %v7267_v51, 6  ;;  %v7492_v36 = vsel %vm8575_vm13, %v7444_v52, %v3725_v27  ;;  %v1943_v14 = vpop.f32.mrf.mxu3  ;;  %vm9218_vm1 = vmmov %vm9213_vm5  ;;  %3367 = vmatpush.msra.mxu1 %v3318_v18 }
 0x3b0   : > { %v3775_v56 = vsel %vm2908_vm14, %v9214_v57, %v3773_v3  ;;  %v2696_v43 = vmax.f32 %v7402_v9, %v4324_v61  ;;  %v2894_v55 = vperm.slane %v2766_v4, 0  ;;  %v3701_v53 = vsel %vm8575_vm13, %v3700_v6, %v7383_v30  ;;  %3136 = vrot.lane.b32.xlu1 %v7350_v47, %s4439_s16  ;;  %3160 = vrot.lane.b32.xlu2 %v7386_v58, %s4440_s29  ;;  %vm9225_vm5 = vmmov %vm9218_vm1 }
 0x3b1   : > { %9215 = vst [vmem:[#allocation178_spill] sm:$0xff] %v7485_v44  ;;  %v3753_v34 = vsel %vm8575_vm13, %v3752_v28, %v3751_v10  ;;  %vm9216_vm11 = vcmask 1040384   ;;  %v7512_v11 = vsel %vm9217_vm12, %v7474_v63, %v3701_v53  ;;  %v3776_v10 = vsel %vm2910_vm15, %v7015_v39, %v3775_v56  ;;  %3368 = vmatpush.msra.mxu1 %v3317_v29 }
 0x3b2   : > { %v7505_v5 = vsel %vm9216_vm11, 0.0, %v2947_v25  ;;  %v7516_v30 = vsel %vm9218_vm1, %v7477_v23, %v3753_v34  ;;  %vm9219_vm0 = vmmov %vm9216_vm11  ;;  %v9220_v61 = vrot.slane %v7264_v45, 9  ;;  %v4319_v60 = vrot.slane %v7297_v17, 9 }
 0x3b3   : > { %v2989_v59 = vsel %vm9219_vm0, %v7039_v32, 0.0  ;;  %v3826_v54 = vrot.slane %v6671_v26, 3  ;;  %v2895_v4 = vperm.slane %v2767_v33, 0  ;;  %v2950_v20 = vsel %vm2910_vm15, %v7412_v0, %v2949_v35  ;;  %v3316_v0 = vld [vmem:[%s8331_s3] sm:$0xff]  ;;  %vm9226_vm11 = vmmov %vm9218_vm1 }
 0x3b4   : > { %v2688_v15 = vmax.f32 %v7264_v45, %v9220_v61  ;;  %v4325_v6 = vrot.slane %v7485_v44, 9  ;;  %v7531_v49 = vrot.slane %v7405_v38, 6  ;;  %v1944_v32 = vadd.f32 %v7001_v37, %v1943_v14  ;;  %3369 = vmatpush.msra.mxu1 %v3316_v0  ;;  %vm9230_vm1 = vmmov %vm9219_vm0 }
 0x3b5   : > { %v3042_v8 = vrot.slane %v7505_v5, 2  ;;  %v3021_v21 = vrot.slane %v7505_v5, 1  ;;  %v9221_v3 = vrot.slane %v7180_v50, 7  ;;  %v2951_v27 = vsel %vm8576_vm3, %v2894_v55, %v2950_v20  ;;  %3184 = vrot.lane.b32.xlu0 %v7505_v5, %s4441_s30  ;;  %vm9232_vm0 = vmmov %vm9225_vm5 }
 0x3b6   : > { %v2768_v28 = vmax.f32 %v2688_v15, %v2696_v43  ;;  %v2442_v25 = vrot.slane %v7447_v2, 7  ;;  %v1938_v57 = vadd.f32 %v7001_v37, %v7359_v46  ;;  %v3043_v56 = vrot.slane %v2989_v59, 2  ;;  %v7561_v37 = vpop.permute.xlu2 %3176 }
 0x3b7   : > { %v3777_v22 = vsel %vm8576_vm3, %v9221_v3, %v3776_v10  ;;  %v3022_v33 = vrot.slane %v2989_v59, 1  ;;  %v2426_v35 = vrot.slane %v7405_v38, 7  ;;  %v2689_v18 = vmax.f32 %v7297_v17, %v4319_v60 }
 0x3b8   : > { %v7546_v1 = vsel %vm8575_vm13, %v7531_v49, %v3777_v22  ;;  %v2697_v43 = vmax.f32 %v7485_v44, %v4325_v6  ;;  %v7556_v55 = vrot.slane %v7405_v38, 2  ;;  %v3797_v53 = vrot.slane %v7020_v12, 5 }
 0x3b9   : > { %v7559_v34 = vmax.f32 %v1944_v32, 0.0  ;;  %vm9223_vm2 = vcmask 1045504   ;;  %vm9224_vm4 = vcmask 1046528   ;;  %v2952_v29 = vsel %vm8575_vm13, %v2895_v4, %v2951_v27 }
 0x3ba   : > { %9222 = vst [vmem:[#allocation91_spill] sm:$0xff] %v7556_v55  ;;  %v7564_v46 = vsel %vm9223_vm2, %v3042_v8, %v3043_v56  ;;  %v7567_v14 = vsel %vm9224_vm4, %v3021_v21, %v3022_v33  ;;  %v2896_v10 = vperm.slane %v2768_v28, 0  ;;  %v2443_v59 = vrot.slane %v2442_v25, 2  ;;  %vm9234_vm2 = vmmov %vm9230_vm1 }
 0x3bb   : > { %3232 = vrot.lane.b32.xlu2 %v7564_v46, %s4442_s9  ;;  %3208 = vrot.lane.b32.xlu1 %v7567_v14, %s4443_s11  ;;  %v4332_v61 = vrot.slane %v7474_v63, 9  ;;  %v3802_v15 = vrot.slane %v7015_v39, 1  ;;  %v7576_v60 = vmax.f32 %v1938_v57, 0.0  ;;  %v2427_v20 = vrot.slane %v2426_v35, 2 }
 0x3bc   : > { %v3829_v6 = vrot.slane %v7180_v50, 1  ;;  %v3798_v4 = vsel %vm3611_vm9, %v7109_v19, %v3797_v53  ;;  %v2953_v32 = vsel %vm9225_vm5, %v2896_v10, %v2952_v29  ;;  %v2769_v8 = vmax.f32 %v2689_v18, %v2697_v43 }
 0x3bd   : > { %v4326_v21 = vrot.slane %v7556_v55, 9  ;;  %v3827_v3 = vsel %vm2908_vm14, %v3826_v54, %v7464_v31  ;;  %v2102_v22 = vrot.slane %v7447_v2, 6  ;;  %v4333_v28 = vrot.slane %v7477_v23, 9  ;;  %3066 = vrot.lane.b32.xlu0 %v7350_v47, %s4433_s10 }
 0x3be   : > { %v8571_v27 = vrot.slane %v7559_v34, 7  ;;  %v3828_v0 = vsel %vm2910_vm15, %v7042_v13, %v3827_v3  ;;  %v2706_v57 = vmax.f32 %v7447_v2, %v2443_v59  ;;  %v2707_v19 = vmax.f32 %v7474_v63, %v4332_v61  ;;  %v9229_v61 = vld [vmem:[#allocation79_spill] sm:$0xff] }
 0x3bf   : > { %v3830_v56 = vsel %vm8576_vm3, %v3829_v6, %v3828_v0  ;;  %v3799_v33 = vrot.slane %v7312_v24, 3  ;;  %v4327_v31 = vrot.slane %v7444_v52, 9  ;;  %v8572_v54 = vrot.slane %v7576_v60, 7  ;;  %v7617_v6 = vpop.permute.xlu2 %3082  ;;  %v7624_v0 = vpop.permute.xlu0 %3058 }
 0x3c0   : > { %v2698_v18 = vmax.f32 %v7405_v38, %v2427_v20  ;;  %v3831_v13 = vsel %vm8575_vm13, %v7405_v38, %v3830_v56  ;;  %v7602_v43 = vrot.slane %v7559_v34, 2  ;;  %v2699_v63 = vmax.f32 %v7556_v55, %v4326_v21 }
 0x3c1   : > { %v7606_v53 = vsel %vm9226_vm11, %v2442_v25, %v3831_v13  ;;  %vm9227_vm12 = vcmask 1042434   ;;  %v7610_v47 = vrot.slane %v7576_v60, 2  ;;  %v2451_v10 = vrot.slane %v8571_v27, 2  ;;  %v3081_v13 = vpop.permute.xlu1 %3080 }
 0x3c2   : > { %v3800_v29 = vsel %vm9227_vm12, %v3799_v33, %v3798_v4  ;;  %v2708_v59 = vmax.f32 %v7477_v23, %v4333_v28  ;;  %v4334_v25 = vrot.slane %v2102_v22, 9  ;;  %v2770_v4 = vmax.f32 %v2698_v18, %v2706_v57  ;;  %vm9236_vm4 = vmmov %vm9227_vm12 }
 0x3c3   : > { %9228 = vst [vmem:[#allocation29_spill] sm:$0xff] %v7610_v47  ;;  %v3801_v20 = vsel %vm2908_vm14, %v9229_v61, %v3800_v29  ;;  %3114 = vrot.lane.b32.xlu2 %v7505_v5, %s4437_s14  ;;  %3090 = vrot.lane.b32.xlu1 %v7386_v58, %s4435_s12  ;;  %v2771_v21 = vmax.f32 %v2699_v63, %v2707_v19  ;;  %v2897_v56 = vperm.slane %v2769_v8, 0  ;;  %v2435_v23 = vrot.slane %v8572_v54, 2 }
 0x3c4   : > { %v3803_v3 = vsel %vm2910_vm15, %v3802_v15, %v3801_v20  ;;  %v2700_v28 = vmax.f32 %v7444_v52, %v4327_v31  ;;  %v7632_v29 = vsel %vm9230_vm1, 0.0, %v2953_v32  ;;  %v4328_v58 = vrot.slane %v7531_v49, 9 }
 0x3c5   : > { %v3804_v33 = vsel %vm8576_vm3, %v7180_v50, %v3803_v3  ;;  %v4335_v57 = vrot.slane %v7602_v43, 9  ;;  %v7638_v8 = vrot.slane %v7559_v34, 4  ;;  %v2710_v19 = vmax.f32 %v7559_v34, %v2451_v10  ;;  %3138 = vrot.lane.b32.xlu0 %v7567_v14, %s4439_s16 }
 0x3c6   : > { %v3805_v15 = vsel %vm8575_vm13, %v2426_v35, %v3804_v33  ;;  %v2772_v18 = vmax.f32 %v2700_v28, %v2708_v59  ;;  %v4329_v31 = vrot.slane %v7610_v47, 9  ;;  %v2709_v63 = vmax.f32 %v2102_v22, %v4334_v25 }
 0x3c7   : > { %9231 = vst [vmem:[#allocation125_spill] sm:$0xff] %v7638_v8  ;;  %v7642_v52 = vsel %vm9232_vm0, %v2102_v22, %v3805_v15  ;;  %v2898_v32 = vperm.slane %v2770_v4, 0  ;;  %v2899_v61 = vperm.slane %v2771_v21, 0  ;;  %v3248_v20 = vsel %vm1493_vm6, 0.0, %v7394_v48  ;;  %v3129_v54 = vpop.permute.xlu0 %3128 }
 0x3c8   : > { %v7650_v35 = vrot.slane %v7576_v60, 4  ;;  %v2702_v10 = vmax.f32 %v7576_v60, %v2435_v23  ;;  %v2990_v59 = vsel %vm9234_vm2, %v2897_v56, 0.0  ;;  %v2701_v3 = vmax.f32 %v7531_v49, %v4328_v58 }
 0x3c9   : > { %v2711_v28 = vmax.f32 %v7602_v43, %v4335_v57  ;;  %v7657_v22 = vrot.slane %v7559_v34, 6  ;;  %v3024_v25 = vrot.slane %v7632_v29, 1  ;;  %v4336_v48 = vrot.slane %v7638_v8, 9  ;;  %v3153_v15 = vpop.permute.xlu1 %3152 }
 0x3ca   : > { %9233 = vst [vmem:[#allocation67_spill] sm:$0xff] %v7650_v35  ;;  %v2774_v4 = vmax.f32 %v2702_v10, %v2710_v19  ;;  %v2900_v21 = vperm.slane %v2772_v18, 0  ;;  %v2703_v56 = vmax.f32 %v7610_v47, %v4329_v31  ;;  %v2773_v49 = vmax.f32 %v2701_v3, %v2709_v63  ;;  %v7672_v19 = vpop.permute.xlu2 %3154 }
 0x3cb   : > { %9235 = vst [vmem:[#allocation5_spill] sm:$0xff] %v7657_v22  ;;  %3186 = vrot.lane.b32.xlu2 %v7632_v29, %s4441_s30  ;;  %3162 = vrot.lane.b32.xlu1 %v7564_v46, %s4440_s29  ;;  %v2954_v23 = vsel %vm9236_vm4, %v2899_v61, %v2898_v32  ;;  %v7668_v33 = vrot.slane %v7576_v60, 6  ;;  %v4330_v58 = vrot.slane %v7650_v35, 9  ;;  %v3256_v57 = vsel %vm1558_vm7, %v3248_v20, %v3081_v13 }
 0x3cc   : > { %v3025_v18 = vrot.slane %v2990_v59, 1  ;;  %v2775_v10 = vmax.f32 %v2703_v56, %v2711_v28  ;;  %v4337_v27 = vrot.slane %v7657_v22, 9  ;;  %v3045_v31 = vrot.slane %v7632_v29, 2 }
 0x3cd   : > { %9237 = vst [vmem:[#allocation47_spill] sm:$0xff] %v7668_v33  ;;  %v2712_v63 = vmax.f32 %v7638_v8, %v4336_v48  ;;  %v2902_v32 = vperm.slane %v2774_v4, 0  ;;  %v2955_v61 = vsel %vm2908_vm14, %v2900_v21, %v2954_v23  ;;  %vm9238_vm5 = vcmask 1046528  }
 0x3ce   : > { %v3026_v3 = vsel %vm9238_vm5, %v3024_v25, %v3025_v18  ;;  %v2901_v55 = vperm.slane %v2773_v49, 0  ;;  %v4331_v13 = vrot.slane %v7668_v33, 9  ;;  %v3264_v20 = vsel %vm1624_vm8, %v3256_v57, %v7494_v7 }
 0x3cf   : > { %3210 = vrot.lane.b32.xlu0 %v3026_v3, %s4443_s11  ;;  %v3046_v28 = vrot.slane %v2990_v59, 2  ;;  %v2704_v56 = vmax.f32 %v7650_v35, %v4330_v58  ;;  %vm3280_vm11 = vcmask 326656   ;;  %v2903_v50 = vperm.slane %v2775_v10, 0 }
 0x3d0   : > { %v2956_v48 = vsel %vm2910_vm15, %v2901_v55, %v2955_v61  ;;  %v2713_v4 = vmax.f32 %v7657_v22, %v4337_v27  ;;  %v3272_v21 = vsel %vm1690_vm10, %v3264_v20, %v3129_v54  ;;  %vm9239_vm12 = vcmask 1045504  }
 0x3d1   : > { %v3047_v25 = vsel %vm9239_vm12, %v3045_v31, %v3046_v28  ;;  %v2776_v49 = vmax.f32 %v2704_v56, %v2712_v63  ;;  %v2957_v23 = vsel %vm8576_vm3, %v2902_v32, %v2956_v48  ;;  %vm3289_vm1 = vcmask 392192   ;;  %v3225_v59 = vpop.permute.xlu1 %3224  ;;  %v3201_v18 = vpop.permute.xlu0 %3200  ;;  %v9244_v56 = vld [vmem:[#allocation130_spill] sm:$0xff] }
 0x3d2   : > { %v2705_v7 = vmax.f32 %v7668_v33, %v4331_v13  ;;  %vm3298_vm0 = vcmask 457728   ;;  %v3281_v55 = vsel %vm3280_vm11, %v3272_v21, %v3153_v15  ;;  %v3227_v27 = vpop.permute.xlu2 %3226  ;;  %vm8600_vm2 = vcmask 523264  }
 0x3d3   : > { %3068 = vrot.lane.b32.xlu2 %v7567_v14, %s4433_s10  ;;  %3234 = vrot.lane.b32.xlu1 %v3047_v25, %s4442_s9  ;;  %v2958_v54 = vsel %vm8575_vm13, %v2903_v50, %v2957_v23  ;;  %v3290_v57 = vsel %vm3289_vm1, %v3281_v55, %v7561_v37  ;;  %vm8599_vm4 = vcmask 588800   ;;  %v2904_v10 = vperm.slane %v2776_v49, 0 }
 0x3d4   : > { %v2777_v58 = vmax.f32 %v2705_v7, %v2713_v4  ;;  %v3299_v14 = vsel %vm3298_vm0, %v3290_v57, %v3201_v18  ;;  %vm9240_vm5 = vcmask 1047559   ;;  %vm9241_vm12 = vcmask 1040384  }
 0x3d5   : > { %v3308_v31 = vsel %vm8600_vm2, %v3299_v14, %v3225_v59  ;;  %v2959_v15 = vsel %vm9240_vm5, %v2904_v10, %v2958_v54  ;;  %vm9242_vm13 = vmmov %vm9241_vm12  ;;  %vm9243_vm3 = vcmask 1046528   ;;  %v3249_v48 = vsel %vm1493_vm6, %v9244_v56, %v7624_v0 }
 0x3d6   : > { %4338 = vmatmul.msk.f32.vlgmr.msra.gmra.mxu1 %vm8599_vm4, %v3308_v31  ;;  %v2905_v63 = vperm.slane %v2777_v58, 0  ;;  %v2983_v50 = vsel %vm9241_vm12, 0.0, %v2959_v15  ;;  %v3257_v4 = vsel %vm1558_vm7, %v3249_v48, %v7617_v6 }
 0x3d7   : > { %3092 = vrot.lane.b32.xlu0 %v7564_v46, %s4435_s12  ;;  %v3050_v61 = vrot.slane %v2983_v50, 1  ;;  %v3053_v28 = vrot.slane %v2983_v50, 2 }
 0x3d8   : > { %v2991_v32 = vsel %vm9242_vm13, %v2905_v63, 0.0  ;;  %vm9245_vm13 = vcmask 1045504   ;;  %v9248_v63 = vld [vmem:[#allocation45_spill] sm:$0xff] }
 0x3d9   : > { %v3051_v46 = vrot.slane %v2991_v32, 1  ;;  %v3107_v13 = vpop.permute.xlu0 %3106  ;;  %v3131_v21 = vpop.permute.xlu1 %3130  ;;  %v3054_v23 = vrot.slane %v2991_v32, 2 }
 0x3da   : > { %v3109_v37 = vpop.permute.xlu2 %3108  ;;  %v3265_v7 = vsel %vm1624_vm8, %v3257_v4, %v3107_v13 }
 0x3db   : > { %3140 = vrot.lane.b32.xlu2 %v3026_v3, %s4439_s16  ;;  %3116 = vrot.lane.b32.xlu1 %v7632_v29, %s4437_s14  ;;  %v3052_v20 = vsel %vm9243_vm3, %v3050_v61, %v3051_v46  ;;  %v3055_v55 = vsel %vm9245_vm13, %v3053_v28, %v3054_v23  ;;  %v3273_v59 = vsel %vm1690_vm10, %v3265_v7, %v3131_v21  ;;  %vm9258_vm3 = vcmask 1042434  }
 0x3dc   : > { %v3282_v0 = vsel %vm3280_vm11, %v3273_v59, %v7672_v19  ;;  %v9246_v19 = vmov 0.0   ;;  %vm9259_vm5 = vmmov %vm9258_vm3  ;;  %vm9265_vm13 = vcmask 1045509  }
 0x3dd   : > { %vm9260_vm12 = vmmov %vm9258_vm3 }
 0x3df   : > { %3164 = vrot.lane.b32.xlu0 %v3047_v25, %s4440_s29 }
 0x3e2   : > { %v3181_v49 = vpop.permute.xlu2 %3180 }
 0x3e3   : > { %3188 = vrot.lane.b32.xlu1 %v2983_v50, %s4441_s30  ;;  %3212 = vrot.lane.b32.xlu2 %v3052_v20, %s4443_s11 }
 0x3e7   : > { %3236 = vrot.lane.b32.xlu0 %v3055_v55, %s4442_s9  ;;  %v3179_v54 = vpop.permute.xlu0 %3178 }
 0x3e8   : > { %v3291_v6 = vsel %vm3289_vm1, %v3282_v0, %v3179_v54 }
 0x3ea   : > { %v3063_v58 = vpop.permute.xlu2 %3062  ;;  %v3203_v57 = vpop.permute.xlu1 %3202 }
 0x3eb   : > { %3070 = vrot.lane.b32.xlu1 %v3026_v3, %s4433_s10  ;;  %3094 = vrot.lane.b32.xlu2 %v3047_v25, %s4435_s12  ;;  %v3300_v18 = vsel %vm3298_vm0, %v3291_v6, %v3203_v57 }
 0x3ec   : > { %v3309_v10 = vsel %vm8600_vm2, %v3300_v18, %v3227_v27  ;;  %v9247_v27 = vld [vmem:[#allocation2_spill] sm:$0xff] }
 0x3ed   : > { %4339 = vmatmul.msk.f32.gmra.mxu1 %vm8599_vm4, %v3309_v10 }
 0x3ef   : > { %3118 = vrot.lane.b32.xlu0 %v2983_v50, %s4437_s14  ;;  %v3061_v14 = vpop.permute.xlu0 %3060 }
 0x3f0   : > { %v3250_v15 = vsel %vm1493_vm6, %v6870_v16, %v3061_v14 }
 0x3f2   : > { %v3085_v3 = vpop.permute.xlu1 %3084  ;;  %v3135_v25 = vpop.permute.xlu2 %3134 }
 0x3f3   : > { %3142 = vrot.lane.b32.xlu1 %v3052_v20, %s4439_s16  ;;  %3166 = vrot.lane.b32.xlu2 %v3055_v55, %s4440_s29  ;;  %v3258_v50 = vsel %vm1558_vm7, %v3250_v15, %v3085_v3  ;;  %v9249_v55 = vld [vmem:[#allocation90_spill] sm:$0xff] }
 0x3f4   : > { %v3266_v61 = vsel %vm1624_vm8, %v3258_v50, %v3109_v37  ;;  %v3251_v37 = vsel %vm1493_vm6, %v9249_v55, %v3063_v58 }
 0x3f7   : > { %3190 = vrot.lane.b32.xlu0 %v9246_v19, %s4441_s30  ;;  %v3133_v31 = vpop.permute.xlu0 %3132 }
 0x3f8   : > { %v3274_v46 = vsel %vm1690_vm10, %v3266_v61, %v3133_v31 }
 0x3fa   : > { %v3157_v32 = vpop.permute.xlu1 %3156  ;;  %v3207_v13 = vpop.permute.xlu2 %3206 }
 0x3fb   : > { %3214 = vrot.lane.b32.xlu1 %v9247_v27, %s4443_s11  ;;  %3238 = vrot.lane.b32.xlu2 %v9248_v63, %s4442_s9  ;;  %v3283_v20 = vsel %vm3280_vm11, %v3274_v46, %v3157_v32  ;;  %v9250_v27 = vld [vmem:[#allocation103_spill] sm:$0xff] }
 0x3fc   : > { %v3292_v56 = vsel %vm3289_vm1, %v3283_v20, %v3181_v49 }
 0x3ff   : > { %v3205_v28 = vpop.permute.xlu0 %3204 }
 0x400   : > { %v3301_v16 = vsel %vm3298_vm0, %v3292_v56, %v3205_v28 }
 0x402   : > { %v3229_v48 = vpop.permute.xlu1 %3228  ;;  %v3089_v21 = vpop.permute.xlu2 %3088 }
 0x403   : > { %v3310_v4 = vsel %vm8600_vm2, %v3301_v16, %v3229_v48 }
 0x404   : > { %4340 = vmatmul.msk.f32.gmra.mxu1 %vm8599_vm4, %v3310_v4 }
 0x407   : > { %v3087_v23 = vpop.permute.xlu0 %3086 }
 0x408   : > { %v3259_v59 = vsel %vm1558_vm7, %v3251_v37, %v3087_v23 }
 0x40a   : > { %v3111_v7 = vpop.permute.xlu1 %3110  ;;  %v3161_v6 = vpop.permute.xlu2 %3160 }
 0x40b   : > { %v3267_v54 = vsel %vm1624_vm8, %v3259_v59, %v3111_v7 }
 0x40c   : > { %v3275_v49 = vsel %vm1690_vm10, %v3267_v54, %v3135_v25 }
 0x40f   : > { %v3159_v0 = vpop.permute.xlu0 %3158 }
 0x410   : > { %v3284_v18 = vsel %vm3280_vm11, %v3275_v49, %v3159_v0 }
 0x412   : > { %v3183_v57 = vpop.permute.xlu1 %3182 }
 0x413   : > { %v3293_v10 = vsel %vm3289_vm1, %v3284_v18, %v3183_v57 }
 0x414   : > { %v3302_v3 = vsel %vm3298_vm0, %v3293_v10, %v3207_v13 }
 0x415   : > { %v3233_v31 = vpop.permute.xlu2 %3232 }
 0x417   : > { %v3231_v14 = vpop.permute.xlu0 %3230 }
 0x418   : > { %v3311_v19 = vsel %vm8600_vm2, %v3302_v3, %v3231_v14 }
 0x419   : > { %4341 = vmatmul.msk.f32.gmra.mxu1 %vm8599_vm4, %v3311_v19 }
 0x41a   : > { %v3065_v58 = vpop.permute.xlu1 %3064 }
 0x41b   : > { %v3252_v63 = vsel %vm1493_vm6, %v9250_v27, %v3065_v58 }
 0x41c   : > { %v3260_v25 = vsel %vm1558_vm7, %v3252_v63, %v3089_v21 }
 0x41d   : > { %v3115_v32 = vpop.permute.xlu2 %3114 }
 0x41f   : > { %v3113_v15 = vpop.permute.xlu0 %3112 }
 0x420   : > { %v3268_v61 = vsel %vm1624_vm8, %v3260_v25, %v3113_v15 }
 0x422   : > { %v3137_v50 = vpop.permute.xlu1 %3136 }
 0x423   : > { %v3276_v46 = vsel %vm1690_vm10, %v3268_v61, %v3137_v50 }
 0x424   : > { %v3285_v13 = vsel %vm3280_vm11, %v3276_v46, %v3161_v6 }
 0x425   : > { %v3187_v4 = vpop.permute.xlu2 %3186 }
 0x427   : > { %v3185_v20 = vpop.permute.xlu0 %3184 }
 0x428   : > { %v3294_v28 = vsel %vm3289_vm1, %v3285_v13, %v3185_v20 }
 0x42d   : > { %v3209_v56 = vpop.permute.xlu1 %3208  ;;  %v3069_v37 = vpop.permute.xlu2 %3068 }
 0x42e   : > { %v3303_v16 = vsel %vm3298_vm0, %v3294_v28, %v3209_v56  ;;  %v3254_v15 = vsel %vm1493_vm6, %v7505_v5, %v3069_v37 }
 0x42f   : > { %v3312_v48 = vsel %vm8600_vm2, %v3303_v16, %v3233_v31  ;;  %v3067_v23 = vpop.permute.xlu0 %3066 }
 0x430   : > { %4342 = vmatmul.msk.f32.gmra.mxu1 %vm8599_vm4, %v3312_v48  ;;  %v3253_v55 = vsel %vm1493_vm6, %v7306_v62, %v3067_v23 }
 0x435   : > { %v3091_v21 = vpop.permute.xlu1 %3090  ;;  %v3141_v3 = vpop.permute.xlu2 %3140 }
 0x436   : > { %v3261_v59 = vsel %vm1558_vm7, %v3253_v55, %v3091_v21 }
 0x437   : > { %v3139_v7 = vpop.permute.xlu0 %3138  ;;  %v3269_v0 = vsel %vm1624_vm8, %v3261_v59, %v3115_v32 }
 0x438   : > { %v3277_v6 = vsel %vm1690_vm10, %v3269_v0, %v3139_v7 }
 0x43d   : > { %v3163_v54 = vpop.permute.xlu1 %3162  ;;  %v3213_v31 = vpop.permute.xlu2 %3212 }
 0x43e   : > { %v3286_v49 = vsel %vm3280_vm11, %v3277_v6, %v3163_v54 }
 0x43f   : > { %v3295_v18 = vsel %vm3289_vm1, %v3286_v49, %v3187_v4 }
 0x441   : > { %v3211_v57 = vpop.permute.xlu0 %3210 }
 0x442   : > { %v3304_v10 = vsel %vm3298_vm0, %v3295_v18, %v3211_v57 }
 0x445   : > { %v3235_v14 = vpop.permute.xlu1 %3234  ;;  %v3095_v20 = vpop.permute.xlu2 %3094 }
 0x446   : > { %v3313_v19 = vsel %vm8600_vm2, %v3304_v10, %v3235_v14 }
 0x447   : > { %4343 = vmatmul.msk.f32.gmra.mxu1 %vm8599_vm4, %v3313_v19 }
 0x449   : > { %v3093_v62 = vpop.permute.xlu0 %3092 }
 0x44a   : > { %v3262_v27 = vsel %vm1558_vm7, %v3254_v15, %v3093_v62 }
 0x44d   : > { %v3117_v58 = vpop.permute.xlu1 %3116  ;;  %v3167_v48 = vpop.permute.xlu2 %3166 }
 0x44e   : > { %v3270_v50 = vsel %vm1624_vm8, %v3262_v27, %v3117_v58 }
 0x44f   : > { %v3278_v32 = vsel %vm1690_vm10, %v3270_v50, %v3141_v3  ;;  %v7801_v3 = vld [vmem:[%s8332_s4] ss:$0 sm:$0xff] }
 0x451   : > { %v3165_v63 = vpop.permute.xlu0 %3164 }
 0x452   : > { %v3287_v61 = vsel %vm3280_vm11, %v3278_v32, %v3165_v63 }
 0x455   : > { %v3189_v25 = vpop.permute.xlu1 %3188  ;;  %v3239_v54 = vpop.permute.xlu2 %3238 }
 0x456   : > { %v3296_v46 = vsel %vm3289_vm1, %v3287_v61, %v3189_v25 }
 0x457   : > { %v3305_v28 = vsel %vm3298_vm0, %v3296_v46, %v3213_v31 }
 0x459   : > { %v3237_v13 = vpop.permute.xlu0 %3236 }
 0x45a   : > { %v3314_v56 = vsel %vm8600_vm2, %v3305_v28, %v3237_v13 }
 0x45b   : > { %4344 = vmatmul.msk.f32.gmra.mxu1 %vm8599_vm4, %v3314_v56 }
 0x45d   : > { %v3071_v5 = vpop.permute.xlu1 %3070 }
 0x45e   : > { %v3255_v4 = vsel %vm1493_vm6, %v7632_v29, %v3071_v5  ;;  %v3371_v29 = vpop.f32.mrf.mxu1 }
 0x45f   : > { %v3263_v21 = vsel %vm1558_vm7, %v3255_v4, %v3095_v20  ;;  %v3372_v62 = vadd.f32 %v7801_v3, %v3371_v29 }
 0x461   : > { %v3119_v16 = vpop.permute.xlu0 %3118  ;;  %v7805_v31 = vmax.f32 %v3372_v62, 0.0 }
 0x462   : > { %v3271_v7 = vsel %vm1624_vm8, %v3263_v21, %v3119_v16 }
 0x463   : > { %9251 = vst [vmem:[#allocation105_spill] sm:$0xff] %v7805_v31  ;;  %v3413_v63 = vrot.slane %v7805_v31, 6  ;;  %v3411_v32 = vrot.slane %v7805_v31, 2  ;;  %v3412_v61 = vrot.slane %v7805_v31, 4 }
 0x465   : > { %v3143_v23 = vpop.permute.xlu1 %3142  ;;  %v4349_v28 = vrot.slane %v3413_v63, 9  ;;  %v4347_v4 = vrot.slane %v3411_v32, 9 }
 0x466   : > { %v3279_v55 = vsel %vm1690_vm10, %v3271_v7, %v3143_v23  ;;  %v4348_v23 = vrot.slane %v3412_v61, 9 }
 0x467   : > { %v3288_v59 = vsel %vm3280_vm11, %v3279_v55, %v3167_v48 }
 0x468   : > { %v7835_v62 = vmax.f32 %v3412_v61, %v4348_v23 }
 0x469   : > { %v3191_v37 = vpop.permute.xlu0 %3190 }
 0x46a   : > { %v3297_v0 = vsel %vm3289_vm1, %v3288_v59, %v3191_v37  ;;  %v3374_v18 = vpop.f32.mrf.mxu1 }
 0x46b   : > { %v3375_v58 = vadd.f32 %v7801_v3, %v3374_v18 }
 0x46d   : > { %v3215_v6 = vpop.permute.xlu1 %3214  ;;  %v7807_v15 = vmax.f32 %v3375_v58, 0.0  ;;  %v7837_v58 = vmax.f32 %v3411_v32, %v4347_v4 }
 0x46e   : > { %v3306_v49 = vsel %vm3298_vm0, %v3297_v0, %v3215_v6  ;;  %v7826_v0 = vmax.f32 %v3413_v63, %v4349_v28  ;;  %v9256_v6 = vld [vmem:[#allocation138_spill] sm:$0xff] }
 0x46f   : > { %v3315_v57 = vsel %vm8600_vm2, %v3306_v49, %v3239_v54  ;;  %9252 = vst [vmem:[#allocation160_spill] sm:$0xff] %v7807_v15  ;;  %v3416_v46 = vrot.slane %v7807_v15, 6  ;;  %v3414_v20 = vrot.slane %v7807_v15, 2  ;;  %v3415_v13 = vrot.slane %v7807_v15, 4 }
 0x470   : > { %4345 = vmatmul.msk.f32.gmra.mxu1 %vm8599_vm4, %v3315_v57  ;;  %vm9273_vm4 = vcmask 1047559  }
 0x471   : > { %v4353_v21 = vrot.slane %v3416_v46, 9  ;;  %v4351_v7 = vrot.slane %v3414_v20, 9  ;;  %v4352_v55 = vrot.slane %v3415_v13, 9 }
 0x481   : > { %v3377_v10 = vpop.f32.mrf.mxu1 }
 0x482   : > { %v3378_v25 = vadd.f32 %v7801_v3, %v3377_v10 }
 0x484   : > { %v7820_v16 = vmax.f32 %v3378_v25, 0.0  ;;  %v7843_v25 = vmax.f32 %v3414_v20, %v4351_v7 }
 0x486   : > { %9254 = vst [vmem:[#allocation183_spill] sm:$0xff] %v7820_v16  ;;  %v3419_v57 = vrot.slane %v7820_v16, 6  ;;  %v3418_v63 = vrot.slane %v7820_v16, 4  ;;  %v3588_v26 = vmax.f32 %v7837_v58, %v7843_v25 }
 0x496   : > { %v3380_v14 = vpop.f32.mrf.mxu1 }
 0x497   : > { %v3381_v50 = vadd.f32 %v7801_v3, %v3380_v14 }
 0x499   : > { %v7817_v56 = vmax.f32 %v3381_v50, 0.0  ;;  %v7841_v50 = vmax.f32 %v3415_v13, %v4352_v55  ;;  %v4356_v55 = vrot.slane %v3418_v63, 9 }
 0x49b   : > { %9253 = vst [vmem:[#allocation131_spill] sm:$0xff] %v7817_v56  ;;  %v3422_v59 = vrot.slane %v7817_v56, 6  ;;  %v3420_v29 = vrot.slane %v7817_v56, 2  ;;  %v3421_v18 = vrot.slane %v7817_v56, 4  ;;  %v3589_v49 = vmax.f32 %v7835_v62, %v7841_v50 }
 0x49c   : > { %v3565_v50 = vmax.f32 %v3418_v63, %v4356_v55 }
 0x49d   : > { %v4361_v28 = vrot.slane %v3422_v59, 9  ;;  %v4359_v61 = vrot.slane %v3420_v29, 9  ;;  %v4360_v23 = vrot.slane %v3421_v18, 9 }
 0x49f   : > { %v3569_v8 = vmax.f32 %v3421_v18, %v4360_v23 }
 0x4a1   : > { %v3593_v18 = vmax.f32 %v3565_v50, %v3569_v8 }
 0x4ad   : > { %v3383_v19 = vpop.f32.mrf.mxu1 }
 0x4ae   : > { %v3384_v48 = vadd.f32 %v7801_v3, %v3383_v19  ;;  %v3562_v19 = vmax.f32 %v3416_v46, %v4353_v21  ;;  %v4357_v46 = vrot.slane %v3419_v57, 9 }
 0x4b0   : > { %v7832_v10 = vmax.f32 %v3384_v48, 0.0  ;;  %v3590_v20 = vmax.f32 %v7826_v0, %v3562_v19  ;;  %v3566_v22 = vmax.f32 %v3419_v57, %v4357_v46 }
 0x4b2   : > { %9257 = vst [vmem:[#allocation174_spill] sm:$0xff] %v7832_v10  ;;  %v3425_v32 = vrot.slane %v7832_v10, 6  ;;  %v3423_v4 = vrot.slane %v7832_v10, 2  ;;  %v3424_v21 = vrot.slane %v7832_v10, 4  ;;  %v3568_v10 = vmax.f32 %v3420_v29, %v4359_v61 }
 0x4b4   : > { %v4365_v56 = vrot.slane %v3425_v32, 9  ;;  %v4364_v19 = vrot.slane %v3424_v21, 9  ;;  %v4363_v33 = vrot.slane %v3423_v4, 9 }
 0x4b6   : > { %v3574_v29 = vmax.f32 %v3425_v32, %v4365_v56  ;;  %v3573_v35 = vmax.f32 %v3424_v21, %v4364_v19  ;;  %v3572_v17 = vmax.f32 %v3423_v4, %v4363_v33 }
 0x4c4   : > { %v3386_v27 = vpop.f32.mrf.mxu1 }
 0x4c5   : > { %v3387_v5 = vadd.f32 %v7801_v3, %v3386_v27  ;;  %v3417_v27 = vrot.slane %v7820_v16, 2 }
 0x4c7   : > { %v7824_v54 = vmax.f32 %v3387_v5, 0.0  ;;  %v4355_v7 = vrot.slane %v3417_v27, 9 }
 0x4c9   : > { %9255 = vst [vmem:[#allocation50_spill] sm:$0xff] %v7824_v54  ;;  %v3426_v5 = vrot.slane %v7824_v54, 2  ;;  %v3427_v48 = vrot.slane %v7824_v54, 4  ;;  %v3564_v25 = vmax.f32 %v3417_v27, %v4355_v7 }
 0x4cb   : > { %v4368_v40 = vrot.slane %v3427_v48, 9  ;;  %v4367_v16 = vrot.slane %v3426_v5, 9  ;;  %v3592_v46 = vmax.f32 %v3564_v25, %v3568_v10 }
 0x4cd   : > { %v3577_v31 = vmax.f32 %v3427_v48, %v4368_v40  ;;  %v3576_v15 = vmax.f32 %v3426_v5, %v4367_v16  ;;  %v3621_v32 = vperm.slane %v3592_v46, 0 }
 0x4cf   : > { %v3597_v40 = vmax.f32 %v3573_v35, %v3577_v31  ;;  %v3596_v16 = vmax.f32 %v3572_v17, %v3576_v15  ;;  %v3620_v17 = vperm.slane %v3588_v26, 0 }
 0x4d1   : > { %v3636_v19 = vperm.slane %v3597_v40, 0  ;;  %v9268_v40 = vld [vmem:[#allocation78_spill] sm:$0xff] }
 0x4d8   : > { %v3389_v37 = vpop.f32.mrf.mxu1 }
 0x4d9   : > { %v3390_v14 = vadd.f32 %v7801_v3, %v3389_v37  ;;  %v3428_v37 = vrot.slane %v7824_v54, 6  ;;  %v3570_v54 = vmax.f32 %v3422_v59, %v4361_v28 }
 0x4db   : > { %v7851_v13 = vmax.f32 %v3390_v14, 0.0  ;;  %v4369_v42 = vrot.slane %v3428_v37, 9  ;;  %v3594_v28 = vmax.f32 %v3566_v22, %v3570_v54  ;;  %v3648_v22 = vperm.slane %v3590_v20, 0 }
 0x4dd   : > { %v3431_v44 = vrot.slane %v7851_v13, 6  ;;  %v3430_v0 = vrot.slane %v7851_v13, 4  ;;  %v3429_v58 = vrot.slane %v7851_v13, 2  ;;  %v3578_v59 = vmax.f32 %v3428_v37, %v4369_v42 }
 0x4de   : > { %v3649_v5 = vperm.slane %v3594_v28, 0  ;;  %v3635_v37 = vperm.slane %v3593_v18, 0  ;;  %v9261_v28 = vld [vmem:[#allocation42_spill] sm:$0xff] }
 0x4df   : > { %v4373_v61 = vrot.slane %v3431_v44, 9  ;;  %v4372_v23 = vrot.slane %v3430_v0, 9  ;;  %v4371_v27 = vrot.slane %v3429_v58, 9  ;;  %v3598_v42 = vmax.f32 %v3574_v29, %v3578_v59 }
 0x4e0   : > { %v3652_v31 = vsel %vm3611_vm9, %v3649_v5, %v3648_v22  ;;  %v3714_v29 = vrot.slane %v9261_v28, 5 }
 0x4e1   : > { %v3582_v10 = vmax.f32 %v3431_v44, %v4373_v61  ;;  %v3581_v48 = vmax.f32 %v3430_v0, %v4372_v23  ;;  %v3580_v21 = vmax.f32 %v3429_v58, %v4371_v27  ;;  %v3650_v55 = vperm.slane %v3598_v42, 0  ;;  %v9262_v61 = vld [vmem:[#allocation41_spill] sm:$0xff]  ;;  %v9266_v42 = vld [vmem:[#allocation135_spill] sm:$0xff] }
 0x4e2   : > { %v9263_v23 = vrot.slane %v9256_v6, 5 }
 0x4e3   : > { %v3653_v58 = vsel %vm9258_vm3, %v3650_v55, %v3652_v31  ;;  %vm9267_vm3 = vmmov %vm9265_vm13  ;;  %v3792_v55 = vrot.slane %v9256_v6, 1  ;;  %v9282_v31 = vld [vmem:[#allocation122_spill] sm:$0xff] }
 0x4ed   : > { %v3392_v14 = vpop.f32.mrf.mxu1 }
 0x4ee   : > { %v3393_v62 = vadd.f32 %v7801_v3, %v3392_v14  ;;  %v3634_v14 = vperm.slane %v3589_v49, 0 }
 0x4f0   : > { %v7862_v57 = vmax.f32 %v3393_v62, 0.0  ;;  %v3622_v62 = vperm.slane %v3596_v16, 0  ;;  %v3638_v15 = vsel %vm3611_vm9, %v3635_v37, %v3634_v14  ;;  %v3690_v16 = vrot.slane %v9268_v40, 3  ;;  %v9274_v37 = vld [vmem:[#allocation88_spill] sm:$0xff]  ;;  %v9278_v14 = vld [vmem:[#allocation154_spill] sm:$0xff] }
 0x4f1   : > { %v3639_v59 = vsel %vm9259_vm5, %v3636_v19, %v3638_v15  ;;  %vm9270_vm5 = vcmask 1046534   ;;  %v3764_v19 = vrot.slane %v9278_v14, 1 }
 0x4f2   : > { %v3434_v47 = vrot.slane %v7862_v57, 6  ;;  %v3433_v3 = vrot.slane %v7862_v57, 4  ;;  %v3432_v63 = vrot.slane %v7862_v57, 2 }
 0x4f4   : > { %v4377_v54 = vrot.slane %v3434_v47, 9  ;;  %v4376_v56 = vrot.slane %v3433_v3, 9  ;;  %v4375_v8 = vrot.slane %v3432_v63, 9 }
 0x4f6   : > { %v3586_v33 = vmax.f32 %v3434_v47, %v4377_v54  ;;  %v3585_v4 = vmax.f32 %v3433_v3, %v4376_v56  ;;  %v3584_v7 = vmax.f32 %v3432_v63, %v4375_v8  ;;  %v3624_v47 = vsel %vm3611_vm9, %v3621_v32, %v3620_v17  ;;  %v9264_v63 = vld [vmem:[#allocation62_spill] sm:$0xff]  ;;  %v9271_v56 = vld [vmem:[#allocation136_spill] sm:$0xff] }
 0x4f7   : > { %v3625_v49 = vsel %vm9260_vm12, %v3622_v62, %v3624_v47  ;;  %v3688_v3 = vsel %vm2910_vm15, %v9263_v23, %v9262_v61  ;;  %v3715_v27 = vsel %vm9265_vm13, %v3714_v29, %v9264_v63  ;;  %v9269_v54 = vld [vmem:[#allocation22_spill] sm:$0xff]  ;;  %v3717_v8 = vrot.slane %v9271_v56, 3  ;;  %vm9272_vm12 = vmmov %vm9270_vm5 }
 0x4f8   : > { %v3602_v50 = vmax.f32 %v3582_v10, %v3586_v33  ;;  %v3601_v20 = vmax.f32 %v3581_v48, %v3585_v4  ;;  %v3600_v35 = vmax.f32 %v3580_v21, %v3584_v7  ;;  %v3689_v22 = vsel %vm9267_vm3, %v9266_v42, %v3688_v3  ;;  %vm9275_vm13 = vmmov %vm9273_vm4  ;;  %v9276_v33 = vld [vmem:[#allocation117_spill] sm:$0xff]  ;;  %v9288_v29 = vld [vmem:[#allocation10_spill] sm:$0xff] }
 0x4f9   : > { %v3716_v5 = vsel %vm9270_vm5, %v9269_v54, %v3715_v27  ;;  %v3691_v10 = vsel %vm9272_vm12, %v3690_v16, %v3689_v22  ;;  %v9277_v4 = vld [vmem:[#allocation61_spill] sm:$0xff]  ;;  %v3742_v7 = vrot.slane %v9268_v40, 5  ;;  %v9286_v47 = vrot.slane %v9261_v28, 7  ;;  %v9296_v22 = vld [vmem:[#allocation143_spill] sm:$0xff]  ;;  %v9297_v54 = vld [vmem:[#allocation134_spill] sm:$0xff] }
 0x4fa   : > { %v3651_v44 = vperm.slane %v3602_v50, 0  ;;  %v3637_v0 = vperm.slane %v3601_v20, 0  ;;  %v3623_v25 = vperm.slane %v3600_v35, 0  ;;  %v3718_v48 = vsel %vm9273_vm4, %v3717_v8, %v3716_v5  ;;  %vm9279_vm4 = vmmov %vm9270_vm5  ;;  %v9281_v35 = vld [vmem:[#allocation48_spill] sm:$0xff]  ;;  %v9293_v27 = vld [vmem:[#allocation161_spill] sm:$0xff] }
 0x4fb   : > { %v3692_v32 = vsel %vm9275_vm13, %v9274_v37, %v3691_v10  ;;  %v3741_v21 = vsel %vm9267_vm3, %v9277_v4, %v9276_v33  ;;  %v3727_v50 = vrot.slane %v7447_v2, 3  ;;  %v3765_v17 = vsel %vm2908_vm14, %v3764_v19, %v9281_v35  ;;  %vm9283_vm5 = vmmov %vm9275_vm13  ;;  %v9303_v4 = vld [vmem:[#allocation12_spill] sm:$0xff] }
 0x4fc   : > { %v3654_v18 = vsel %vm2908_vm14, %v3651_v44, %v3653_v58  ;;  %v3640_v26 = vsel %vm2908_vm14, %v3637_v0, %v3639_v59  ;;  %v3626_v46 = vsel %vm2908_vm14, %v3623_v25, %v3625_v49  ;;  %v3743_v62 = vsel %vm9279_vm4, %v3742_v7, %v3741_v21  ;;  %vm9284_vm12 = vmmov %vm9283_vm5 }
 0x4fd   : > { %3655 = vrot.lane.b32.xlu2 %v3654_v18, %s4441_s30  ;;  %3641 = vrot.lane.b32.xlu1 %v3640_v26, %s4439_s16  ;;  %v3744_v15 = vsel %vm9283_vm5, %v9282_v31, %v3743_v62  ;;  %v3766_v44 = vsel %vm2910_vm15, %v9256_v6, %v3765_v17  ;;  %v3728_v0 = vsel %vm9284_vm12, %v3727_v50, %v7492_v36  ;;  %vm9285_vm13 = vmmov %vm9267_vm3  ;;  %v3779_v59 = vrot.slane %v7447_v2, 5  ;;  %v9306_v50 = vld [vmem:[#allocation28_spill] sm:$0xff]  ;;  %v9308_v17 = vld [vmem:[#allocation46_spill] sm:$0xff] }
 0x4fe   : > { %3627 = vrot.lane.b32.xlu0 %v3626_v46, %s4435_s12  ;;  %v3767_v58 = vsel %vm9267_vm3, %v9286_v47, %v3766_v44  ;;  %v9287_v49 = vrot.slane %v9268_v40, 7  ;;  %vm9289_vm5 = vmmov %vm9279_vm4  ;;  %v3769_v36 = vrot.slane %v9271_v56, 5  ;;  %v3850_v26 = vrot.slane %v7312_v24, 5  ;;  %v9290_v46 = vld [vmem:[#allocation66_spill] sm:$0xff]  ;;  %v9311_v47 = vld [vmem:[#allocation27_spill] sm:$0xff] }
 0x4ff   : > { %v3768_v18 = vsel %vm9289_vm5, %v9288_v29, %v3767_v58  ;;  %v3819_v3 = vrot.slane %v9261_v28, 1  ;;  %vm9292_vm3 = vmmov %vm9284_vm12  ;;  %v9295_v24 = vrot.slane %v7020_v12, 7  ;;  %vm9298_vm5 = vcmask 1042434   ;;  %v9315_v29 = vld [vmem:[#allocation30_spill] sm:$0xff] }
 0x500   : > { %v3770_v63 = vsel %vm9292_vm3, %v3769_v36, %v3768_v18  ;;  %v3843_v8 = vrot.slane %v9256_v6, 3  ;;  %v3853_v62 = vrot.slane %v7015_v39, 3  ;;  %v3901_v31 = vrot.slane %v9308_v17, 1 }
 0x501   : > { %v3849_v16 = vsel %vm3611_vm9, %v9296_v22, %v9295_v24  ;;  %v3891_v58 = vrot.slane %v9311_v47, 1  ;;  %v3895_v18 = vrot.slane %v9315_v29, 5  ;;  %v9321_v24 = vld [vmem:[#allocation59_spill] sm:$0xff] }
 0x502   : > { %v3851_v5 = vsel %vm9298_vm5, %v3850_v26, %v3849_v16  ;;  %v9322_v22 = vrot.slane %v9321_v24, 7 }
 0x503   : > { %v3852_v21 = vsel %vm2908_vm14, %v9303_v4, %v3851_v5 }
 0x504   : > { %v3854_v39 = vsel %vm2910_vm15, %v3853_v62, %v3852_v21 }
 0x505   : > { %3729 = vrot.lane.b32.xlu2 %v3718_v48, %s4435_s12  ;;  %3705 = vrot.lane.b32.xlu1 %v7512_v11, %s4433_s10  ;;  %v9280_v11 = vld [vmem:[#allocation25_spill] sm:$0xff] }
 0x506   : > { %3703 = vrot.lane.b32.xlu0 %v3692_v32, %s4433_s10  ;;  %v3793_v20 = vsel %vm2910_vm15, %v3792_v55, %v9280_v11  ;;  %v9300_v48 = vld [vmem:[#allocation53_spill] sm:$0xff]  ;;  %v9302_v32 = vld [vmem:[#allocation55_spill] sm:$0xff]  ;;  %v9305_v55 = vld [vmem:[#allocation52_spill] sm:$0xff]  ;;  %v9307_v11 = vrot.slane %v9271_v56, 7  ;;  %s4444_s10 = smov 72  }
 0x507   : > { %v3794_v25 = vsel %vm9285_vm13, %v9261_v28, %v3793_v20  ;;  %vm9291_vm13 = vmmov %vm9284_vm12  ;;  %v9301_v37 = vrot.slane %v9300_v48, 7  ;;  %v3870_v19 = vrot.slane %v9305_v55, 3 }
 0x508   : > { %v3780_v23 = vsel %vm9291_vm13, %v3779_v59, %v7546_v1  ;;  %v3840_v1 = vrot.slane %v9297_v54, 5  ;;  %vm9304_vm13 = vmmov %vm9298_vm5  ;;  %v9312_v59 = vld [vmem:[#allocation74_spill] sm:$0xff] }
 0x509   : > { %v3839_v33 = vsel %vm3611_vm9, %v9302_v32, %v9301_v37  ;;  %v9324_v54 = vld [vmem:[#allocation58_spill] sm:$0xff]  ;;  %v9328_v37 = vld [vmem:[#allocation32_spill] sm:$0xff] }
 0x50a   : > { %v3841_v7 = vsel %vm9304_vm13, %v3840_v1, %v3839_v33  ;;  %v9325_v1 = vrot.slane %v9324_v54, 7  ;;  %v9329_v32 = vld [vmem:[#allocation40_spill] sm:$0xff]  ;;  %v3945_v62 = vrot.slane %v9324_v54, 1 }
 0x50b   : > { %v3842_v6 = vsel %vm2908_vm14, %v9306_v50, %v3841_v7  ;;  %v9332_v7 = vld [vmem:[#allocation116_spill] sm:$0xff] }
 0x50c   : > { %v3844_v35 = vsel %vm2910_vm15, %v3843_v8, %v3842_v6 }
 0x50d   : > { %3757 = vrot.lane.b32.xlu2 %v7516_v30, %s4437_s14  ;;  %3755 = vrot.lane.b32.xlu1 %v3744_v15, %s4437_s14  ;;  %v3795_v30 = vsel %vm9279_vm4, %v9287_v49, %v3794_v25  ;;  %vm9294_vm4 = vcmask 1045509   ;;  %v9309_v15 = vld [vmem:[#allocation114_spill] sm:$0xff]  ;;  %v3873_v49 = vrot.slane %v9312_v59, 1  ;;  %s4446_s14 = smov 80  }
 0x50e   : > { %3731 = vrot.lane.b32.xlu0 %v3728_v0, %s4435_s12  ;;  %v3796_v61 = vsel %vm9284_vm12, %v9290_v46, %v3795_v30  ;;  %v3820_v42 = vsel %vm9294_vm4, %v3819_v3, %v9293_v27  ;;  %vm9299_vm12 = vcmask 1046534   ;;  %v3871_v44 = vsel %vm9294_vm4, %v3870_v19, %v9309_v15  ;;  %v9310_v0 = vld [vmem:[#allocation80_spill] sm:$0xff]  ;;  %v9313_v30 = vld [vmem:[#allocation98_spill] sm:$0xff]  ;;  %vm9314_vm5 = vmmov %vm9294_vm4  ;;  %s4445_s12 = smov 88  }
 0x50f   : > { %v3821_v10 = vsel %vm9299_vm12, %v9268_v40, %v3820_v42  ;;  %v3902_v25 = vsel %vm3611_vm9, %v9310_v0, %v3901_v31  ;;  %v9316_v36 = vrot.slane %v9310_v0, 7  ;;  %v9317_v46 = vld [vmem:[#allocation109_spill] sm:$0xff]  ;;  %vm9319_vm13 = vmmov %vm9294_vm4  ;;  %v3846_v3 = vrot.slane %v9268_v40, 1 }
 0x510   : > { %v3822_v20 = vsel %vm9292_vm3, %v9307_v11, %v3821_v10  ;;  %v3856_v42 = vrot.slane %v7405_v38, 1  ;;  %vm9323_vm3 = vcmask 1042434   ;;  %v3927_v38 = vrot.slane %v9310_v0, 1  ;;  %v9335_v11 = vld [vmem:[#allocation101_spill] sm:$0xff] }
 0x511   : > { %v3875_v26 = vsel %vm3611_vm9, %v9316_v36, %v9308_v17  ;;  %v3903_v16 = vsel %vm9323_vm3, %v9322_v22, %v3902_v25  ;;  %vm9326_vm4 = vmmov %vm9323_vm3  ;;  %v3877_v19 = vrot.slane %v9332_v7, 5  ;;  %v3905_v15 = vrot.slane %v7147_v41, 5  ;;  %v9337_v25 = vld [vmem:[#allocation89_spill] sm:$0xff]  ;;  %v9341_v36 = vld [vmem:[#allocation99_spill] sm:$0xff] }
 0x515   : > { %3807 = vrot.lane.b32.xlu2 %v3796_v61, %s4440_s29  ;;  %3783 = vrot.lane.b32.xlu1 %v3780_v23, %s4439_s16  ;;  %v9318_v61 = vld [vmem:[#allocation123_spill] sm:$0xff] }
 0x516   : > { %3781 = vrot.lane.b32.xlu0 %v3770_v63, %s4439_s16  ;;  %v3855_v23 = vsel %vm9319_vm13, %v9318_v61, %v3854_v39  ;;  %v9320_v63 = vld [vmem:[#allocation68_spill] sm:$0xff]  ;;  %v3922_v39 = vrot.slane %v9305_v55, 5  ;;  %s4447_s16 = smov 96  }
 0x517   : > { %v3892_v27 = vsel %vm3611_vm9, %v9320_v63, %v3891_v58  ;;  %v3917_v8 = vrot.slane %v9320_v63, 1  ;;  %v9342_v61 = vld [vmem:[#allocation60_spill] sm:$0xff] }
 0x518   : > { %v3893_v5 = vsel %vm9326_vm4, %v9325_v1, %v3892_v27  ;;  %v3969_v1 = vrot.slane %v9320_v63, 3 }
 0x519   : > { %v3894_v40 = vsel %vm2908_vm14, %v9328_v37, %v3893_v5 }
 0x51a   : > { %v3896_v21 = vsel %vm2910_vm15, %v3895_v18, %v3894_v40 }
 0x51d   : > { %3835 = vrot.lane.b32.xlu2 %v7606_v53, %s4441_s30  ;;  %3833 = vrot.lane.b32.xlu1 %v3822_v20, %s4441_s30  ;;  %v3845_v53 = vsel %vm9314_vm5, %v9313_v30, %v3844_v35  ;;  %vm9327_vm5 = vmmov %vm9299_vm12  ;;  %v3904_v20 = vsel %vm2908_vm14, %v9335_v11, %v3903_v16  ;;  %v3943_v35 = vrot.slane %v9311_v47, 3  ;;  %v9354_v11 = vld [vmem:[#allocation49_spill] sm:$0xff]  ;;  %s4449_s30 = smov 104  }
 0x51e   : > { %3809 = vrot.lane.b32.xlu0 %v7642_v52, %s4440_s29  ;;  %v3872_v52 = vsel %vm9299_vm12, %v9317_v46, %v3871_v44  ;;  %v3847_v10 = vsel %vm9327_vm5, %v3846_v3, %v3845_v53  ;;  %vm9330_vm12 = vmmov %vm9323_vm3  ;;  %vm9333_vm3 = vcmask 1047559   ;;  %v9340_v53 = vld [vmem:[#allocation155_spill] sm:$0xff]  ;;  %v3906_v46 = vsel %vm2910_vm15, %v3905_v15, %v3904_v20  ;;  %s4448_s29 = smov 112  }
 0x51f   : > { %v3876_v33 = vsel %vm9330_vm12, %v9329_v32, %v3875_v26  ;;  %vm9331_vm13 = vmmov %vm9327_vm5  ;;  %v3874_v50 = vsel %vm9333_vm3, %v3873_v49, %v3872_v52  ;;  %vm9338_vm12 = vcmask 1045509   ;;  %v9339_v49 = vld [vmem:[#allocation11_spill] sm:$0xff]  ;;  %v3928_v18 = vsel %vm3611_vm9, %v3927_v38, %v9340_v53 }
 0x520   : > { %v3857_v4 = vsel %vm9331_vm13, %v3856_v42, %v3855_v23  ;;  %vm9334_vm4 = vmmov %vm9333_vm3  ;;  %v3878_v44 = vsel %vm2908_vm14, %v3877_v19, %v3876_v33  ;;  %v3897_v58 = vsel %vm9338_vm12, %v9337_v25, %v3896_v21  ;;  %v3944_v30 = vsel %vm3611_vm9, %v9339_v49, %v3943_v35  ;;  %v9344_v42 = vld [vmem:[#allocation16_spill] sm:$0xff]  ;;  %v9356_v35 = vld [vmem:[#allocation29_spill] sm:$0xff] }
 0x521   : > { %v3858_v6 = vsel %vm9334_vm4, %v7447_v2, %v3857_v4  ;;  %vm9336_vm5 = vmmov %vm9333_vm3  ;;  %v3918_v26 = vsel %vm3611_vm9, %v3917_v8, %v9341_v36  ;;  %v3908_v52 = vrot.slane %v7576_v60, 3  ;;  %v3898_v23 = vrot.slane %v9342_v61, 3  ;;  %v9361_v53 = vld [vmem:[#allocation15_spill] sm:$0xff] }
 0x522   : > { %v3848_v31 = vsel %vm9336_vm5, %v9271_v56, %v3847_v10  ;;  %vm9343_vm13 = vcmask 1042434   ;;  %v3879_v27 = vsel %vm2910_vm15, %v7264_v45, %v3878_v44  ;;  %vm9346_vm4 = vcmask 1046534  }
 0x523   : > { %v3946_v3 = vsel %vm9343_vm13, %v3945_v62, %v3944_v30  ;;  %vm9345_vm3 = vmmov %vm9343_vm13  ;;  %v3899_v5 = vsel %vm9346_vm4, %v3898_v23, %v3897_v58  ;;  %v3880_v8 = vrot.slane %v7267_v51, 3  ;;  %v3883_v10 = vrot.slane %v7559_v34, 1  ;;  %v9360_v58 = vld [vmem:[#allocation121_spill] sm:$0xff]  ;;  %v9363_v23 = vld [vmem:[#allocation182_spill] sm:$0xff] }
 0x524   : > { %v3947_v22 = vsel %vm2908_vm14, %v9344_v42, %v3946_v3  ;;  %v3919_v16 = vsel %vm9345_vm3, %v9324_v54, %v3918_v26  ;;  %vm9347_vm5 = vmmov %vm9345_vm3  ;;  %v3907_v45 = vsel %vm9338_vm12, %v7402_v9, %v3906_v46  ;;  %v9348_v40 = vrot.slane %v9344_v42, 7  ;;  %v9362_v26 = vld [vmem:[#allocation76_spill] sm:$0xff] }
 0x525   : > { %3885 = vrot.lane.b32.xlu2 %v3874_v50, %s4442_s9  ;;  %3861 = vrot.lane.b32.xlu1 %v3858_v6, %s4443_s11  ;;  %v3929_v37 = vsel %vm9347_vm5, %v9321_v24, %v3928_v18  ;;  %v3979_v33 = vrot.slane %v9310_v0, 3  ;;  %v3972_v38 = vrot.slane %v9344_v42, 1  ;;  %vm9349_vm13 = vmmov %vm9346_vm4  ;;  %v9351_v19 = vrot.slane %v9315_v29, 7  ;;  %v9352_v50 = vld [vmem:[#allocation51_spill] sm:$0xff] }
 0x526   : > { %3859 = vrot.lane.b32.xlu0 %v3848_v31, %s4443_s11  ;;  %v3920_v32 = vsel %vm2908_vm14, %v9348_v40, %v3919_v16  ;;  %v3909_v4 = vsel %vm9349_vm13, %v3908_v52, %v3907_v45  ;;  %vm9350_vm3 = vmmov %vm9338_vm12  ;;  %vm9353_vm4 = vcmask 1047559   ;;  %v9358_v15 = vrot.slane %v9332_v7, 7  ;;  %v9367_v16 = vld [vmem:[#allocation137_spill] sm:$0xff]  ;;  %v9368_v40 = vld [vmem:[#allocation4_spill] sm:$0xff]  ;;  %s4208_s11 = sshll.u32 %s9468_s5, 2 }
 0x527   : > { %v3881_v21 = vsel %vm9350_vm3, %v3880_v8, %v3879_v27  ;;  %v3948_v62 = vsel %vm2910_vm15, %v9351_v19, %v3947_v22  ;;  %v3921_v6 = vsel %vm2910_vm15, %v9352_v50, %v3920_v32  ;;  %v3910_v9 = vsel %vm9353_vm4, %v7602_v43, %v3909_v4  ;;  %vm9355_vm5 = vmmov %vm9353_vm4  ;;  %v9365_v22 = vld [vmem:[#allocation39_spill] sm:$0xff]  ;;  %v9371_v19 = vld [vmem:[#allocation124_spill] sm:$0xff]  ;;  %s316_s25 = scalar_lea.vmem %s8336_s8, %s4208_s11 }
 0x528   : > { %v3900_v20 = vsel %vm9355_vm5, %v9354_v11, %v3899_v5  ;;  %vm9357_vm12 = vmmov %vm9349_vm13  ;;  %v3930_v44 = vsel %vm2908_vm14, %v9358_v15, %v3929_v37  ;;  %v3970_v49 = vsel %vm3611_vm9, %v3969_v1, %v9360_v58  ;;  %v3953_v43 = vrot.slane %v9308_v17, 3 }
 0x529   : > { %v3882_v31 = vsel %vm9357_vm12, %v9356_v35, %v3881_v21  ;;  %vm9359_vm13 = vmmov %vm9353_vm4  ;;  %v4021_v30 = vrot.slane %v9320_v63, 5  ;;  %v3949_v18 = vsel %vm9350_vm3, %v9361_v53, %v3948_v62  ;;  %v3950_v36 = vrot.slane %v9342_v61, 5 }
 0x52a   : > { %v3884_v25 = vsel %vm9359_vm13, %v3883_v10, %v3882_v31  ;;  %v3980_v46 = vsel %vm3611_vm9, %v3979_v33, %v9362_v26  ;;  %v4027_v52 = vrot.slane %v9305_v55, 1  ;;  %v3931_v3 = vsel %vm2910_vm15, %v9363_v23, %v3930_v44  ;;  %vm9364_vm4 = vmmov %vm9350_vm3  ;;  %v9370_v33 = vld [vmem:[#allocation153_spill] sm:$0xff]  ;;  %v9375_v31 = vld [vmem:[#allocation92_spill] sm:$0xff] }
 0x52b   : > { %v3923_v27 = vsel %vm9364_vm4, %v3922_v39, %v3921_v6  ;;  %vm9366_vm5 = vcmask 1042434   ;;  %v3954_v1 = vsel %vm3611_vm9, %v9367_v16, %v3953_v43  ;;  %v3932_v5 = vrot.slane %v7267_v51, 5  ;;  %vm9372_vm4 = vmmov %vm9357_vm12  ;;  %v9373_v6 = vld [vmem:[#allocation67_spill] sm:$0xff] }
 0x52c   : > { %v3971_v63 = vsel %vm9366_vm5, %v9365_v22, %v3970_v49  ;;  %v3935_v8 = vrot.slane %v7559_v34, 3  ;;  %v3955_v37 = vrot.slane %v9321_v24, 1  ;;  %v3951_v45 = vsel %vm9357_vm12, %v3950_v36, %v3949_v18  ;;  %vm9369_vm13 = vmmov %vm9366_vm5  ;;  %v9381_v36 = vld [vmem:[#allocation43_spill] sm:$0xff] }
 0x52d   : > { %3913 = vrot.lane.b32.xlu2 %v3910_v9, %s4444_s10  ;;  %3911 = vrot.lane.b32.xlu1 %v3900_v20, %s4444_s10  ;;  %v3973_v10 = vsel %vm2908_vm14, %v3972_v38, %v3971_v63  ;;  %v3981_v32 = vsel %vm9369_vm13, %v9368_v40, %v3980_v46  ;;  %v4022_v4 = vsel %vm3611_vm9, %v4021_v30, %v9370_v33  ;;  %v3982_v38 = vrot.slane %v9332_v7, 1  ;;  %vm9374_vm12 = vmmov %vm9372_vm4  ;;  %v9383_v46 = vld [vmem:[#allocation82_spill] sm:$0xff]  ;;  %v9385_v63 = vld [vmem:[#allocation160_spill] sm:$0xff] }
 0x52e   : > { %3887 = vrot.lane.b32.xlu0 %v3884_v25, %s4442_s9  ;;  %v3974_v39 = vsel %vm2910_vm15, %v9315_v29, %v3973_v10  ;;  %v3933_v21 = vsel %vm9350_vm3, %v3932_v5, %v3931_v3  ;;  %v3924_v62 = vsel %vm9372_vm4, %v9371_v19, %v3923_v27  ;;  %v3956_v50 = vsel %vm9366_vm5, %v3955_v37, %v3954_v1  ;;  %v9384_v27 = vld [vmem:[#allocation73_spill] sm:$0xff]  ;;  %s4450_s9 = smov 120  }
 0x52f   : > { %v3934_v9 = vsel %vm9374_vm12, %v9373_v6, %v3933_v21  ;;  %v3925_v11 = vrot.slane %v9312_v59, 3  ;;  %v4005_v20 = vrot.slane %v9308_v17, 5  ;;  %v3995_v35 = vrot.slane %v9311_v47, 5  ;;  %v9395_v6 = vld [vmem:[#allocation31_spill] sm:$0xff] }
 0x530   : > { %vm9376_vm13 = vcmask 1047559   ;;  %v3983_v25 = vsel %vm2908_vm14, %v3982_v38, %v3981_v32  ;;  %v9378_v58 = vrot.slane %v9305_v55, 7  ;;  %vm9379_vm4 = vcmask 1045509  }
 0x531   : > { %v3952_v15 = vsel %vm9376_vm13, %v9375_v31, %v3951_v45  ;;  %vm9377_vm3 = vmmov %vm9376_vm13  ;;  %v3957_v30 = vsel %vm2908_vm14, %v9332_v7, %v3956_v50  ;;  %v4024_v53 = vrot.slane %v9344_v42, 3  ;;  %v3997_v18 = vrot.slane %v9324_v54, 3  ;;  %v9386_v42 = vld [vmem:[#allocation14_spill] sm:$0xff]  ;;  %v9397_v31 = vld [vmem:[#allocation47_spill] sm:$0xff] }
 0x532   : > { %v3936_v44 = vsel %vm9377_vm3, %v3935_v8, %v3934_v9  ;;  %v3975_v49 = vsel %vm9379_vm4, %v9378_v58, %v3974_v39  ;;  %vm9380_vm5 = vmmov %vm9377_vm3  ;;  %vm9382_vm12 = vcmask 1042434   ;;  %v4006_v23 = vsel %vm3611_vm9, %v9383_v46, %v4005_v20  ;;  %v9389_v39 = vld [vmem:[#allocation105_spill] sm:$0xff] }
 0x533   : > { %v3926_v43 = vsel %vm9380_vm5, %v3925_v11, %v3924_v62  ;;  %v4023_v26 = vsel %vm9382_vm12, %v9381_v36, %v4022_v4  ;;  %v4007_v3 = vrot.slane %v9321_v24, 3  ;;  %v3996_v22 = vsel %vm3611_vm9, %v9384_v27, %v3995_v35  ;;  %vm9390_vm3 = vmmov %vm9382_vm12  ;;  %v9396_v11 = vld [vmem:[#allocation147_spill] sm:$0xff] }
 0x534   : > { %v4350_v16 = vrot.slane %v9385_v63, 9  ;;  %v3984_v1 = vsel %vm2910_vm15, %v7147_v41, %v3983_v25  ;;  %vm9387_vm13 = vcmask 1046534   ;;  %v3977_v8 = vrot.slane %v9312_v59, 5  ;;  %vm9391_vm4 = vmmov %vm9390_vm3 }
 0x535   : > { %3963 = vrot.lane.b32.xlu2 %v3952_v15, %s4445_s12  ;;  %3939 = vrot.lane.b32.xlu1 %v3936_v44, %s4446_s14  ;;  %v3976_v5 = vsel %vm9387_vm13, %v9386_v42, %v3975_v49  ;;  %v3987_v10 = vrot.slane %v7559_v34, 5  ;;  %v9388_v37 = vrot.slane %v7147_v41, 7  ;;  %v3960_v40 = vrot.slane %v7576_v60, 5  ;;  %v9398_v44 = vld [vmem:[#allocation178_spill] sm:$0xff] }
 0x536   : > { %3937 = vrot.lane.b32.xlu0 %v3926_v43, %s4446_s14  ;;  %v4000_v32 = vrot.slane %v9315_v29, 1  ;;  %v4346_v33 = vrot.slane %v9389_v39, 9  ;;  %v4025_v4 = vsel %vm2908_vm14, %v4024_v53, %v4023_v26  ;;  %v4008_v21 = vsel %vm9390_vm3, %v4007_v3, %v4006_v23  ;;  %v9403_v26 = vld [vmem:[#allocation125_spill] sm:$0xff] }
 0x537   : > { %v3958_v45 = vsel %vm2910_vm15, %v9388_v37, %v3957_v30  ;;  %v3998_v19 = vsel %vm9391_vm4, %v3997_v18, %v3996_v22  ;;  %v9392_v62 = vrot.slane %v7267_v51, 7  ;;  %vm9393_vm5 = vcmask 1045509   ;;  %v9402_v30 = vld [vmem:[#allocation144_spill] sm:$0xff]  ;;  %v9407_v22 = vld [vmem:[#allocation167_spill] sm:$0xff] }
 0x538   : > { %vm9394_vm12 = vcmask 1047559   ;;  %v4026_v9 = vsel %vm2910_vm15, %v9395_v6, %v4025_v4  ;;  %v3999_v20 = vsel %vm2908_vm14, %v9396_v11, %v3998_v19  ;;  %v8161_v35 = vmax.f32 %v9385_v63, %v4350_v16  ;;  %vm9399_vm3 = vmmov %vm9393_vm5 }
 0x539   : > { %v3985_v38 = vsel %vm9393_vm5, %v9392_v62, %v3984_v1  ;;  %v3978_v50 = vsel %vm9394_vm12, %v3977_v8, %v3976_v5  ;;  %v3959_v25 = vsel %vm9399_vm3, %v9398_v44, %v3958_v45  ;;  %v4031_v58 = vrot.slane %v9310_v0, 5  ;;  %vm9400_vm4 = vmmov %vm9394_vm12  ;;  %v9408_v5 = vld [vmem:[#allocation65_spill] sm:$0xff] }
 0x53a   : > { %v3986_v15 = vsel %vm9387_vm13, %v9397_v31, %v3985_v38  ;;  %vm9401_vm5 = vmmov %vm9387_vm13  ;;  %v4009_v53 = vsel %vm2908_vm14, %v9402_v30, %v4008_v21  ;;  %v4001_v18 = vsel %vm2910_vm15, %v4000_v32, %v3999_v20  ;;  %v3555_v36 = vmax.f32 %v9389_v39, %v4346_v33  ;;  %v9417_v39 = vld [vmem:[#allocation24_spill] sm:$0xff]  ;;  %v9426_v20 = vld [vmem:[#allocation81_spill] sm:$0xff] }
 0x53b   : > { %v3988_v49 = vsel %vm9400_vm4, %v3987_v10, %v3986_v15  ;;  %v3961_v43 = vsel %vm9401_vm5, %v3960_v40, %v3959_v25  ;;  %vm9404_vm12 = vmmov %vm9400_vm4  ;;  %v4010_v23 = vrot.slane %v7147_v41, 1  ;;  %v4048_v0 = vrot.slane %v9324_v54, 5  ;;  %v9418_v33 = vld [vmem:[#allocation100_spill] sm:$0xff]  ;;  %v9429_v25 = vld [vmem:[#allocation3_spill] sm:$0xff] }
 0x53c   : > { %v3962_v46 = vsel %vm9404_vm12, %v9403_v26, %v3961_v43  ;;  %vm9405_vm13 = vmmov %vm9399_vm3  ;;  %v9406_v27 = vrot.slane %v9308_v17, 7  ;;  %v4058_v16 = vrot.slane %v9321_v24, 5  ;;  %v4051_v1 = vrot.slane %v9315_v29, 3  ;;  %v9410_v17 = vld [vmem:[#allocation108_spill] sm:$0xff] }
 0x53d   : > { %3991 = vrot.lane.b32.xlu2 %v3988_v49, %s4447_s16  ;;  %3989 = vrot.lane.b32.xlu1 %v3978_v50, %s4447_s16  ;;  %v4028_v3 = vsel %vm9405_vm13, %v4027_v52, %v4026_v9  ;;  %v4011_v42 = vsel %vm2910_vm15, %v4010_v23, %v4009_v53  ;;  %v4002_v54 = vsel %vm9399_vm3, %v9305_v55, %v4001_v18  ;;  %v9409_v52 = vrot.slane %v9311_v47, 7  ;;  %vm9411_vm4 = vmmov %vm9401_vm5  ;;  %v9424_v9 = vld [vmem:[#allocation5_spill] sm:$0xff]  ;;  %v9427_v31 = vld [vmem:[#allocation20_spill] sm:$0xff] }
 0x53e   : > { %3965 = vrot.lane.b32.xlu0 %v3962_v46, %s4445_s12  ;;  %v4057_v63 = vsel %vm3611_vm9, %v9407_v22, %v9406_v27  ;;  %v4032_v8 = vsel %vm3611_vm9, %v4031_v58, %v9408_v5  ;;  %v3587_v10 = vmax.f32 %v3555_v36, %v8161_v35  ;;  %v4029_v24 = vsel %vm9411_vm4, %v9342_v61, %v4028_v3  ;;  %vm9414_vm13 = vmmov %vm9399_vm3  ;;  %v9430_v53 = vld [vmem:[#allocation131_spill] sm:$0xff] }
 0x53f   : > { %v4047_v37 = vsel %vm3611_vm9, %v9410_v17, %v9409_v52  ;;  %vm9412_vm5 = vcmask 1042434   ;;  %v4012_v55 = vsel %vm9414_vm13, %v7267_v51, %v4011_v42  ;;  %v9415_v40 = vrot.slane %v9342_v61, 7  ;;  %vm9416_vm3 = vmmov %vm9411_vm4  ;;  %v9431_v36 = vld [vmem:[#allocation19_spill] sm:$0xff] }
 0x540   : > { %v4059_v29 = vsel %vm9412_vm5, %v4058_v16, %v4057_v63  ;;  %vm9413_vm12 = vmmov %vm9412_vm5  ;;  %v9420_v21 = vrot.slane %v7576_v60, 7  ;;  %v4034_v38 = vrot.slane %v9332_v7, 3  ;;  %v9422_v50 = vrot.slane %v9312_v59, 7  ;;  %v9432_v23 = vld [vmem:[#allocation183_spill] sm:$0xff] }
 0x541   : > { %v4049_v45 = vsel %vm9413_vm12, %v4048_v0, %v4047_v37  ;;  %v4003_v32 = vsel %vm9416_vm3, %v9415_v40, %v4002_v54  ;;  %vm9419_vm2 = vmmov %vm9412_vm5  ;;  %vm9423_vm5 = vcmask 1047559   ;;  %v4060_v35 = vsel %vm2908_vm14, %v9426_v20, %v4059_v29  ;;  %v9433_v3 = vld [vmem:[#allocation139_spill] sm:$0xff] }
 0x542   : > { %v4050_v47 = vsel %vm2908_vm14, %v9417_v39, %v4049_v45  ;;  %v4033_v4 = vsel %vm9419_vm2, %v9418_v33, %v4032_v8  ;;  %vm9421_vm4 = vmmov %vm9416_vm3  ;;  %v4030_v6 = vsel %vm9423_vm5, %v9422_v50, %v4029_v24  ;;  %v4061_v44 = vrot.slane %v7147_v41, 3  ;;  %v9440_v24 = vld [vmem:[#allocation50_spill] sm:$0xff] }
 0x543   : > { %v4013_v19 = vsel %vm9421_vm4, %v9420_v21, %v4012_v55  ;;  %v4052_v62 = vsel %vm2910_vm15, %v4051_v1, %v4050_v47  ;;  %vm9425_vm12 = vmmov %vm9423_vm5  ;;  %v4035_v7 = vsel %vm2908_vm14, %v4034_v38, %v4033_v4  ;;  %v4064_v43 = vrot.slane %v7576_v60, 1  ;;  %v9441_v45 = vld [vmem:[#allocation174_spill] sm:$0xff] }
 0x544   : > { %v4014_v11 = vsel %vm9425_vm12, %v9424_v9, %v4013_v19  ;;  %vm9428_vm2 = vmmov %vm9423_vm5  ;;  %v4053_v58 = vsel %vm9414_vm13, %v9429_v25, %v4052_v62  ;;  %v4062_v49 = vsel %vm2910_vm15, %v4061_v44, %v4060_v35  ;;  %v4054_v30 = vrot.slane %v9342_v61, 1 }
 0x545   : > { %4041 = vrot.lane.b32.xlu2 %v4030_v6, %s4448_s29  ;;  %4017 = vrot.lane.b32.xlu1 %v4014_v11, %s4449_s30  ;;  %v4004_v15 = vsel %vm9428_vm2, %v9427_v31, %v4003_v32  ;;  %v4358_v18 = vrot.slane %v9430_v53, 9  ;;  %v4036_v26 = vsel %vm2910_vm15, %v9431_v36, %v4035_v7  ;;  %v4037_v41 = vrot.slane %v7267_v51, 1  ;;  %vm9434_vm4 = vmmov %vm9414_vm13 }
 0x546   : > { %4015 = vrot.lane.b32.xlu0 %v4004_v15, %s4449_s30  ;;  %v4055_v46 = vsel %vm9416_vm3, %v4054_v30, %v4053_v58  ;;  %v4354_v0 = vrot.slane %v9432_v23, 9  ;;  %v4063_v27 = vsel %vm9434_vm4, %v9433_v3, %v4062_v49  ;;  %vm9435_vm5 = vmmov %vm9416_vm3  ;;  %v9438_v42 = vrot.slane %v7559_v34, 7 }
 0x547   : > { %v4065_v22 = vsel %vm9435_vm5, %v4064_v43, %v4063_v27  ;;  %vm9436_vm12 = vmmov %vm9434_vm4  ;;  %v3567_v61 = vmax.f32 %v9430_v53, %v4358_v18  ;;  %v3607_v52 = vperm.slane %v3587_v10, 0  ;;  %v4366_v29 = vrot.slane %v9440_v24, 9  ;;  %v9447_v27 = vld [vmem:[#allocation110_spill] sm:$0xff] }
 0x548   : > { %v4038_v63 = vsel %vm9436_vm12, %v4037_v41, %v4036_v26  ;;  %v4066_v16 = vsel %vm9428_vm2, %v7559_v34, %v4065_v22  ;;  %vm9437_vm13 = vmmov %vm9428_vm2  ;;  %v3563_v5 = vmax.f32 %v9432_v23, %v4354_v0  ;;  %v4362_v55 = vrot.slane %v9441_v45, 9  ;;  %v9445_v0 = vld [vmem:[#allocation77_spill] sm:$0xff] }
 0x549   : > { %v4056_v1 = vsel %vm9437_vm13, %v9312_v59, %v4055_v46  ;;  %v4039_v51 = vsel %vm9416_vm3, %v7576_v60, %v4038_v63  ;;  %vm9439_vm4 = vmmov %vm9428_vm2  ;;  %v4374_v60 = vrot.slane %v7862_v57, 9  ;;  %v4370_v34 = vrot.slane %v7851_v13, 9  ;;  %v9443_v46 = vld [vmem:[#allocation38_spill] sm:$0xff] }
 0x54a   : > { %v4040_v54 = vsel %vm9439_vm4, %v9438_v42, %v4039_v51  ;;  %v3591_v8 = vmax.f32 %v3563_v5, %v3567_v61  ;;  %v3575_v40 = vmax.f32 %v9440_v24, %v4366_v29  ;;  %v3571_v39 = vmax.f32 %v9441_v45, %v4362_v55  ;;  %v9452_v42 = vld [vmem:[#allocation54_spill] sm:$0xff] }
 0x54b   : > { %v3583_v32 = vmax.f32 %v7862_v57, %v4374_v60  ;;  %v3579_v10 = vmax.f32 %v7851_v13, %v4370_v34  ;;  %vm9442_vm5 = vcmask 1042434   ;;  %vm4111_vm12 = vcmask 519168   ;;  %v9455_v24 = vld [vmem:[#allocation26_spill] sm:$0xff]  ;;  %v9457_v60 = vld [vmem:[#allocation112_spill] sm:$0xff] }
 0x54c   : > { %v3608_v17 = vperm.slane %v3591_v8, 0  ;;  %v3595_v33 = vmax.f32 %v3571_v39, %v3575_v40  ;;  %v3663_v36 = vrot.slane %v9278_v14, 5  ;;  %v9444_v41 = vrot.slane %v9443_v46, 7  ;;  %vm9446_vm2 = vmmov %vm9442_vm5  ;;  %v9451_v14 = vld [vmem:[#allocation159_spill] sm:$0xff] }
 0x54d   : > { %4069 = vrot.lane.b32.xlu2 %v4066_v16, %s4450_s9  ;;  %4067 = vrot.lane.b32.xlu1 %v4056_v1, %s4450_s9  ;;  %v3599_v4 = vmax.f32 %v3579_v10, %v3583_v32  ;;  %v9448_v22 = vrot.slane %v9447_v27, 7  ;;  %v9449_v16 = vld [vmem:[#allocation64_spill] sm:$0xff]  ;;  %vm9450_vm13 = vmmov %vm9446_vm2  ;;  %vm9453_vm3 = vcmask 1045509   ;;  %v3676_v45 = vrot.slane %v9457_v60, 3 }
 0x54e   : > { %4043 = vrot.lane.b32.xlu0 %v4040_v54, %s4448_s29  ;;  %v3612_v37 = vsel %vm3611_vm9, %v3608_v17, %v3607_v52  ;;  %v3609_v21 = vperm.slane %v3595_v33, 0  ;;  %v3661_v23 = vsel %vm3611_vm9, %v9444_v41, %v9300_v48  ;;  %v3673_v54 = vrot.slane %v9452_v42, 5  ;;  %vm9458_vm4 = vmmov %vm9453_vm3  ;;  %v9460_v33 = vld [vmem:[#allocation91_spill] sm:$0xff] }
 0x54f   : > { %v3610_v19 = vperm.slane %v3599_v4, 0  ;;  %v3662_v3 = vsel %vm9446_vm2, %v9445_v0, %v3661_v23  ;;  %v3671_v63 = vsel %vm3611_vm9, %v9448_v22, %v7020_v12  ;;  %v3666_v48 = vrot.slane %v9261_v28, 3  ;;  %v9454_v12 = vld [vmem:[#allocation8_spill] sm:$0xff] }
 0x550   : > { %v3613_v38 = vsel %vm9442_vm5, %v3609_v21, %v3612_v37  ;;  %v3664_v61 = vsel %vm2908_vm14, %v3663_v36, %v3662_v3  ;;  %v3672_v1 = vsel %vm9450_vm13, %v9449_v16, %v3671_v63  ;;  %vm9456_vm9 = vcmask 1046534  }
 0x551   : > { %v3614_v50 = vsel %vm2908_vm14, %v3610_v19, %v3613_v38  ;;  %v3665_v51 = vsel %vm2910_vm15, %v9451_v14, %v3664_v61  ;;  %v3674_v52 = vsel %vm2908_vm14, %v3673_v54, %v3672_v1  ;;  %v3669_v55 = vrot.slane %v9271_v56, 1  ;;  %vm9461_vm14 = vmmov %vm9456_vm9 }
 0x552   : > { %v3667_v17 = vsel %vm9453_vm3, %v3666_v48, %v3665_v51  ;;  %v3679_v28 = vrot.slane %v7447_v2, 1  ;;  %vm9459_vm5 = vcmask 1047559   ;;  %vm4097_vm2 = vcmask 785408  }
 0x553   : > { %v3668_v29 = vsel %vm9456_vm9, %v9455_v24, %v3667_v17 }
 0x554   : > { %v3670_v40 = vsel %vm9459_vm5, %v3669_v55, %v3668_v29 }
 0x557   : > { %v3656_v59 = vpop.permute.xlu2 %3655 }
 0x55f   : > { %v3730_v47 = vpop.permute.xlu2 %3729 }
 0x567   : > { %v3758_v9 = vpop.permute.xlu2 %3757 }
 0x56f   : > { %v3642_v62 = vpop.permute.xlu1 %3641  ;;  %v3808_v31 = vpop.permute.xlu2 %3807 }
 0x570   : > { %v3628_v6 = vpop.permute.xlu0 %3627 }
 0x571   : > { %v3658_v13 = vsel %vm1558_vm7, %v3614_v50, %v3628_v6 }
 0x572   : > { %v3659_v57 = vsel %vm1690_vm10, %v3658_v13, %v3642_v62 }
 0x573   : > { %v3660_v11 = vsel %vm3289_vm1, %v3659_v57, %v3656_v59  ;;  %v3675_v59 = vsel %vm2910_vm15, %v9454_v12, %v3674_v52  ;;  %vm9462_vm15 = vmmov %vm9459_vm5 }
 0x574   : > { %4112 = vst.msk [vmem:[%s316_s25] sm:$0xf] %vm4111_vm12, %v3660_v11  ;;  %v3677_v34 = vsel %vm9458_vm4, %v3676_v45, %v3675_v59 }
 0x575   : > { %v3678_v4 = vsel %vm9461_vm14, %v9460_v33, %v3677_v34 }
 0x576   : > { %v3680_v21 = vsel %vm9462_vm15, %v3679_v28, %v3678_v4 }
 0x577   : > { %v3706_v20 = vpop.permute.xlu1 %3705  ;;  %v3836_v7 = vpop.permute.xlu2 %3835 }
 0x578   : > { %v3704_v35 = vpop.permute.xlu0 %3703  ;;  %v4074_v62 = vsel %vm1493_vm6, %v3680_v21, %v3706_v20 }
 0x579   : > { %v4073_v39 = vsel %vm1493_vm6, %v3670_v40, %v3704_v35  ;;  %vm4091_vm6 = vcmask 654336  }
 0x57a   : > { %v4075_v19 = vsel %vm1558_vm7, %v4073_v39, %v3730_v47 }
 0x57f   : > { %v3756_v15 = vpop.permute.xlu1 %3755  ;;  %v3886_v49 = vpop.permute.xlu2 %3885 }
 0x580   : > { %v3732_v44 = vpop.permute.xlu0 %3731  ;;  %v4077_v56 = vsel %vm1624_vm8, %v4075_v19, %v3756_v15 }
 0x581   : > { %v4076_v38 = vsel %vm1558_vm7, %v4074_v62, %v3732_v44  ;;  %vm9463_vm7 = vcmask 523264  }
 0x582   : > { %v4078_v13 = vsel %vm1624_vm8, %v4076_v38, %v3758_v9  ;;  %vm9464_vm8 = vcmask 588800   ;;  %vm9465_vm12 = vmmov %vm9463_vm7 }
 0x583   : > { %vm9466_vm13 = vmmov %vm9464_vm8 }
 0x587   : > { %v3784_v25 = vpop.permute.xlu1 %3783  ;;  %v3914_v26 = vpop.permute.xlu2 %3913 }
 0x588   : > { %v3782_v58 = vpop.permute.xlu0 %3781  ;;  %v4080_v35 = vsel %vm1690_vm10, %v4078_v13, %v3784_v25 }
 0x589   : > { %v4079_v2 = vsel %vm1690_vm10, %v4077_v56, %v3782_v58  ;;  %vm4094_vm10 = vcmask 719872  }
 0x58a   : > { %v4081_v57 = vsel %vm3280_vm11, %v4079_v2, %v3808_v31 }
 0x58f   : > { %v3834_v43 = vpop.permute.xlu1 %3833  ;;  %v3964_v37 = vpop.permute.xlu2 %3963 }
 0x590   : > { %v3810_v30 = vpop.permute.xlu0 %3809  ;;  %v4083_v36 = vsel %vm3289_vm1, %v4081_v57, %v3834_v43 }
 0x591   : > { %v4082_v47 = vsel %vm3280_vm11, %v4080_v35, %v3810_v30  ;;  %vm4100_vm11 = vcmask 850944  }
 0x592   : > { %v4084_v15 = vsel %vm3289_vm1, %v4082_v47, %v3836_v7  ;;  %vm4103_vm1 = vcmask 916480  }
 0x597   : > { %v3862_v53 = vpop.permute.xlu1 %3861  ;;  %v3992_v50 = vpop.permute.xlu2 %3991 }
 0x598   : > { %v3860_v18 = vpop.permute.xlu0 %3859  ;;  %v4086_v58 = vsel %vm3298_vm0, %v4084_v15, %v3862_v53 }
 0x599   : > { %v4085_v20 = vsel %vm3298_vm0, %v4083_v36, %v3860_v18  ;;  %vm4106_vm0 = vcmask 982016  }
 0x59a   : > { %v4087_v44 = vsel %vm9463_vm7, %v4085_v20, %v3886_v49 }
 0x59f   : > { %v3912_v5 = vpop.permute.xlu1 %3911  ;;  %v4042_v31 = vpop.permute.xlu2 %4041 }
 0x5a0   : > { %v3888_v8 = vpop.permute.xlu0 %3887  ;;  %v4089_v9 = vsel %vm9464_vm8, %v4087_v44, %v3912_v5 }
 0x5a1   : > { %v4088_v46 = vsel %vm9465_vm12, %v4086_v58, %v3888_v8 }
 0x5a2   : > { %v4090_v18 = vsel %vm9466_vm13, %v4088_v46, %v3914_v26 }
 0x5a7   : > { %v3940_v32 = vpop.permute.xlu1 %3939  ;;  %v4070_v16 = vpop.permute.xlu2 %4069 }
 0x5a8   : > { %v3938_v10 = vpop.permute.xlu0 %3937  ;;  %v4093_v7 = vsel %vm4091_vm6, %v4090_v18, %v3940_v32 }
 0x5a9   : > { %v4092_v25 = vsel %vm4091_vm6, %v4089_v9, %v3938_v10 }
 0x5aa   : > { %v4095_v41 = vsel %vm4094_vm10, %v4092_v25, %v3964_v37 }
 0x5af   : > { %v3990_v6 = vpop.permute.xlu1 %3989 }
 0x5b0   : > { %v3966_v11 = vpop.permute.xlu0 %3965  ;;  %v4098_v23 = vsel %vm4097_vm2, %v4095_v41, %v3990_v6 }
 0x5b1   : > { %v4096_v49 = vsel %vm4094_vm10, %v4093_v7, %v3966_v11 }
 0x5b2   : > { %v4099_v53 = vsel %vm4097_vm2, %v4096_v49, %v3992_v50 }
 0x5b7   : > { %v4018_v43 = vpop.permute.xlu1 %4017 }
 0x5b8   : > { %v4016_v30 = vpop.permute.xlu0 %4015  ;;  %v4102_v22 = vsel %vm4100_vm11, %v4099_v53, %v4018_v43 }
 0x5b9   : > { %v4101_v0 = vsel %vm4100_vm11, %v4098_v23, %v4016_v30 }
 0x5ba   : > { %v4104_v27 = vsel %vm4103_vm1, %v4101_v0, %v4042_v31 }
 0x5bf   : > { %v4068_v3 = vpop.permute.xlu1 %4067 }
 0x5c0   : > { %v4107_v63 = vsel %vm4106_vm0, %v4104_v27, %v4068_v3  ;;  %v4044_v61 = vpop.permute.xlu0 %4043 }
 0x5c1   : > { %4109 = vst [vmem:[%s312_s13] sm:$0xff] %v4107_v63  ;;  %v4105_v26 = vsel %vm4103_vm1, %v4102_v22, %v4044_v61 }
 0x5c2   : > { %v4108_v1 = vsel %vm4106_vm0, %v4105_v26, %v4070_v16 }
 0x5c3   : > { %4110 = vst [vmem:[%s312_s13 + $0x8] sm:$0xff] %v4108_v1 }
 0x5c4 PF: > { %s19_s27 = sadd.s32 1, %s4429_s27  }
 0x5c5   : > { %p16_p4 = scmp.ge.s32.totalorder %s19_s27, 4  }
 0x5c7   :  { %18 = sbr.rel (!%p16_p4) target bundleno = 1 (0x1), region = 90 }

</bundles_post_ra>
